<compile_context>
chip_gen: v6e
topology: v6e:2x2x1
jax: 0.10.0
libtpu: 0.0.40
codegen_flags: <defaults>
</compile_context>

<pallas_src>
import jax
import jax.numpy as jnp
from jax import lax
from jax.experimental import pallas as pl
from jax.experimental.pallas import tpu as pltpu


def init_params(key, D, E, K):
    """PyTorch-default-style uniform init, weights stored as [in, out]."""
    def linear(k, fan_in, fan_out):
        k1, k2 = jax.random.split(k)
        bound = 1.0 / float(fan_in) ** 0.5
        w = jax.random.uniform(k1, (fan_in, fan_out), jnp.float32, -bound, bound)
        b = jax.random.uniform(k2, (1, fan_out), jnp.float32, -bound, bound)
        return w, b

    ks = jax.random.split(key, 6)
    w_emb, b_emb = linear(ks[0], D, E)          # IClassifier.embedding
    w_fc, b_fc = linear(ks[1], E, K)            # IClassifier.fc
    wq1, bq1 = linear(ks[2], E, 128)            # BClassifier.q[0]
    wq2, bq2 = linear(ks[3], 128, 128)          # BClassifier.q[2]
    cbound = 1.0 / float(K * E) ** 0.5          # Conv1d(K, K, kernel_size=E)
    w_conv = jax.random.uniform(ks[4], (K, K, E), jnp.float32, -cbound, cbound)
    b_conv = jax.random.uniform(ks[5], (1, K), jnp.float32, -cbound, cbound)
    return dict(w_emb=w_emb, b_emb=b_emb, w_fc=w_fc, b_fc=b_fc,
                wq1=wq1, bq1=bq1, wq2=wq2, bq2=bq2,
                w_conv=w_conv, b_conv=b_conv)


def _folded_projections(x, p):
    """feats / c / Q with the kernel's host-side weight folding + bf16 numerics.

    (x @ w_emb) @ w is folded into x @ (w_emb @ w); mathematically identical to
    the module, and matching the kernel's bf16 operand rounding so the instance
    argmax is taken on the same scores.
    """
    f32, bf16 = jnp.float32, jnp.bfloat16
    w_emb, b_emb = p["w_emb"], p["b_emb"]
    w_q1 = (w_emb @ p["wq1"]).astype(bf16)
    b_q1 = b_emb @ p["wq1"] + p["bq1"]
    w_c = (w_emb @ p["w_fc"]).astype(bf16)
    b_c = b_emb @ p["w_fc"] + p["b_fc"]
    xb = x.astype(bf16)
    feats = jnp.dot(xb, w_emb.astype(bf16), preferred_element_type=f32) + b_emb
    c = jnp.dot(xb, w_c, preferred_element_type=f32) + b_c
    h = jnp.maximum(jnp.dot(xb, w_q1, preferred_element_type=f32) + b_q1, 0.0)
    q = jnp.tanh(jnp.dot(h.astype(bf16), p["wq2"].astype(bf16),
                         preferred_element_type=f32) + p["bq2"])
    return feats, c, q


def dsmil_forward(x, params, *, tile_n=512, use_cache=None):
    f32, bf16 = jnp.float32, jnp.bfloat16
    N, D = x.shape
    E = params["w_emb"].shape[1]
    K = params["w_fc"].shape[1]
    assert K <= 128, "class dim is padded to a single 128-lane tile"
    assert params["wq1"].shape[1] == 128 and params["wq2"].shape == (128, 128)
    assert tile_n % 128 == 0, "instance tile must be a multiple of 128"

    E_pad = ((E + 127) // 128) * 128
    n_pad = ((N + tile_n - 1) // tile_n) * tile_n
    nt = n_pad // tile_n

    # Q/feats cache: n_pad * (128 + E_pad) bf16 bytes; enable when comfortably
    # inside even the v7x 64 MiB (32 MiB scoped default) VMEM budget.
    if use_cache is None:
        use_cache = n_pad * 2 * (128 + E_pad) <= (20 << 20)

    # ---- host-side weight folding / padding --------------------------------
    w_emb, b_emb = params["w_emb"], params["b_emb"]
    w_q1f = w_emb @ params["wq1"]                                   # [D, 128]
    b_q1f = b_emb @ params["wq1"] + params["bq1"]                   # [1, 128]
    w_cf = jnp.pad(w_emb @ params["w_fc"], ((0, 0), (0, 128 - K)))  # [D, 128]
    b_cf = jnp.pad(b_emb @ params["w_fc"] + params["b_fc"],
                   ((0, 0), (0, 128 - K)))                          # [1, 128]
    w_ff = jnp.pad(w_emb, ((0, 0), (0, E_pad - E)))                 # [D, E_pad]
    b_ff = jnp.pad(b_emb, ((0, 0), (0, E_pad - E)))                 # [1, E_pad]

    if use_cache:
        # pass 0 needs q1 | c | feats (feats go straight into the cache)
        w0 = jnp.concatenate([w_q1f, w_cf, w_ff], axis=1).astype(bf16)
        b0 = jnp.concatenate([b_q1f, b_cf, b_ff], axis=1)
        # pass 1 reads the caches; pass-1 projection weights are unused dummies
        w1 = jnp.zeros((8, 128), bf16)
        b1 = jnp.zeros((1, 128), f32)
    else:
        w0 = jnp.concatenate([w_q1f, w_cf], axis=1).astype(bf16)    # [D, 256]
        b0 = jnp.concatenate([b_q1f, b_cf], axis=1)
        w1 = jnp.concatenate([w_q1f, w_ff], axis=1).astype(bf16)    # [D, 128+E_pad]
        b1 = jnp.concatenate([b_q1f, b_ff], axis=1)

    w_q2 = params["wq2"].astype(bf16)                               # [128, 128]
    b_q2 = params["bq2"]                                            # [1, 128]
    # Conv1d weight rearranged to [k_out, e, j_in] and padded to 128 lanes.
    w_fcc = jnp.pad(jnp.transpose(params["w_conv"], (0, 2, 1)),
                    ((0, 0), (0, E_pad - E), (0, 128 - K)))         # [K, E_pad, 128]
    b_fcc = jnp.pad(params["b_conv"], ((0, 0), (0, 128 - K)))       # [1, 128]

    xb = x.astype(bf16)
    if n_pad != N:
        xb = jnp.pad(xb, ((0, n_pad - N), (0, 0)))

    INIT = -3.0e38          # running-max init (finite to avoid inf-inf NaNs)
    MASK = -1.0e30          # score for padded instances
    inv_sqrt_d = 1.0 / (128.0 ** 0.5)

    def kernel(x_ref, w0_ref, b0_ref, w1_ref, b1_ref, wq2_ref, bq2_ref,
               wfcc_ref, bfcc_ref, out_ref,
               maxc_sc, qz_sc, m_sc, l_sc, accb_sc, *cache_sc):
        p = pl.program_id(0)          # 0 = argmax/select pass, 1 = softmax pass
        j = pl.program_id(1)          # instance tile
        n_tiles = pl.num_programs(1)

        row = lax.broadcasted_iota(jnp.int32, (tile_n, 1), 0)      # local row id
        valid = (row + j * tile_n) < N                             # [tN, 1]

        # ---- pass 0: instance scores, first-argmax select, optional caches --
        @pl.when(p == 0)
        def _pass0():
            @pl.when(j == 0)
            def _init0():
                maxc_sc[...] = jnp.full((1, 128), INIT, f32)
                qz_sc[...] = jnp.zeros((128, 128), f32)

            fused = jnp.dot(x_ref[...], w0_ref[...],
                            preferred_element_type=f32) + b0_ref[...]
            h = jnp.maximum(fused[:, :128], 0.0)
            z = jnp.dot(h.astype(bf16), wq2_ref[...],
                        preferred_element_type=f32) + bq2_ref[...]   # pre-tanh

            if use_cache:
                q_cache, f_cache = cache_sc
                qv = jnp.tanh(z)
                base = pl.multiple_of(j * tile_n, tile_n)
                q_cache[pl.ds(base, tile_n), :] = qv.astype(bf16)
                f_cache[pl.ds(base, tile_n), :] = fused[:, 256:].astype(bf16)
                sel = qv            # tanh already paid for the cache
            else:
                sel = z             # tanh deferred to pass-1 init (commutes)

            c = jnp.where(valid, fused[:, 128:256], MASK)            # [tN, 128]
            local_max = jnp.max(c, axis=0, keepdims=True)            # [1, 128]
            upd = local_max > maxc_sc[...]        # strict > keeps first occurrence
            first = jnp.min(jnp.where(c == local_max, row, tile_n),
                            axis=0, keepdims=True)                   # [1, 128]
            onehot = (row == first).astype(bf16)                     # [tN, 128]
            selT = lax.dot_general(sel.astype(bf16), onehot,
                                   (((0,), (0,)), ((), ())),
                                   preferred_element_type=f32)       # [128, 128]
            qz_sc[...] = jnp.where(upd, selT, qz_sc[...])
            maxc_sc[...] = jnp.maximum(maxc_sc[...], local_max)

        # ---- pass 1: online softmax, B^T accumulation, conv finalize --------
        @pl.when(p == 1)
        def _pass1():
            @pl.when(j == 0)
            def _init1():
                m_sc[...] = jnp.full((1, 128), INIT, f32)
                l_sc[...] = jnp.zeros((1, 128), f32)
                accb_sc[...] = jnp.zeros((E_pad, 128), f32)
                if use_cache:
                    qz_sc[...] = qz_sc[...] * inv_sqrt_d
                else:
                    qz_sc[...] = jnp.tanh(qz_sc[...]) * inv_sqrt_d

            if use_cache:
                q_cache, f_cache = cache_sc
                base = pl.multiple_of(j * tile_n, tile_n)
                q_blk = q_cache[pl.ds(base, tile_n), :]              # bf16 [tN,128]
                f_blk = f_cache[pl.ds(base, tile_n), :]              # bf16 [tN,E_pad]
            else:
                fused = jnp.dot(x_ref[...], w1_ref[...],
                                preferred_element_type=f32) + b1_ref[...]
                h = jnp.maximum(fused[:, :128], 0.0)
                q_blk = jnp.tanh(jnp.dot(h.astype(bf16), wq2_ref[...],
                                         preferred_element_type=f32)
                                 + bq2_ref[...]).astype(bf16)
                f_blk = fused[:, 128:].astype(bf16)

            s = jnp.dot(q_blk, qz_sc[...].astype(bf16),
                        preferred_element_type=f32)                  # [tN, 128]
            s = jnp.where(valid, s, MASK)
            m_new = jnp.maximum(m_sc[...], jnp.max(s, axis=0, keepdims=True))
            alpha = jnp.exp(m_sc[...] - m_new)                       # [1, 128]
            pt = jnp.exp(s - m_new)                                  # [tN, 128]
            l_sc[...] = alpha * l_sc[...] + jnp.sum(pt, axis=0, keepdims=True)
            accb_sc[...] = alpha * accb_sc[...] + lax.dot_general(
                f_blk, pt.astype(bf16), (((0,), (0,)), ((), ())),
                preferred_element_type=f32)                          # [E_pad, 128]
            m_sc[...] = m_new

            @pl.when(j == n_tiles - 1)
            def _finalize():
                # approx reciprocal is within the 2e-2 output tolerance
                bT = accb_sc[...] * pl.reciprocal(l_sc[...], approx=True)
                lane = lax.broadcasted_iota(jnp.int32, (1, 128), 1)
                c_out = bfcc_ref[...]                                # [1, 128]
                for k in range(K):    # K is tiny: VPU mul + reduce, no MXU
                    ck = jnp.sum(jnp.sum(bT * wfcc_ref[k], axis=0, keepdims=True),
                                 axis=1, keepdims=True)              # [1, 1]
                    c_out = c_out + jnp.where(lane == k, ck, 0.0)
                out_ref[...] = c_out                                 # lane-dense

    def _const_spec(a):
        nd = a.ndim
        return pl.BlockSpec(a.shape, lambda p, j, nd=nd: (0,) * nd)

    weight_args = (w0, b0, w1, b1, w_q2, b_q2, w_fcc, b_fcc)
    if use_cache:
        # pin the x block index to 0 during pass 1 so its DMA is elided
        x_spec = pl.BlockSpec((tile_n, D), lambda p, j: (j * (1 - p), 0))
    else:
        x_spec = pl.BlockSpec((tile_n, D), lambda p, j: (j, 0))
    in_specs = [x_spec] + [_const_spec(a) for a in weight_args]

    scratch = [
        pltpu.VMEM((1, 128), f32),        # running per-class max of c
        pltpu.VMEM((128, 128), f32),      # selected q_max^T (or z_max^T pre-tanh)
        pltpu.VMEM((1, 128), f32),        # online-softmax running max m
        pltpu.VMEM((1, 128), f32),        # online-softmax running denom l
        pltpu.VMEM((E_pad, 128), f32),    # B^T accumulator
    ]
    if use_cache:
        scratch += [pltpu.VMEM((n_pad, 128), bf16),     # Q cache
                    pltpu.VMEM((n_pad, E_pad), bf16)]   # feats cache

    # ---- VMEM sizing: weights + double-buffered x + scratch + temporaries ---
    w_bytes = sum(int(a.size) * a.dtype.itemsize for a in weight_args)
    x_bytes = 2 * tile_n * D * 2                                    # bf16, 2 buffers
    sc_bytes = 4 * (3 * 128 + 128 * 128 + E_pad * 128) + 4 * 128
    if use_cache:
        sc_bytes += n_pad * 2 * (128 + E_pad)
    tmp_bytes = tile_n * (w0.shape[1] + 6 * 128 + 2 * E_pad) * 4    # in-kernel temps
    vmem_limit = int(min(max(2 * (w_bytes + x_bytes + sc_bytes + tmp_bytes),
                             32 << 20), 48 << 20))

    out = pl.pallas_call(
        kernel,
        out_shape=jax.ShapeDtypeStruct((1, 128), f32),
        grid=(2, nt),
        in_specs=in_specs,
        out_specs=pl.BlockSpec((1, 128), lambda p, j: (0, 0)),
        scratch_shapes=scratch,
        compiler_params=pltpu.CompilerParams(
            dimension_semantics=("arbitrary", "arbitrary"),
            vmem_limit_bytes=vmem_limit),
    )(xb, *weight_args)
    return out[0, :K]       # matches torch.squeeze of the [1, K, 1] conv output


def dsmil_ref(x, p):
    """Reference forward: module semantics, instance projections mirroring the
    kernel's folded-weight bf16 numerics; attention/softmax/conv in f32."""
    feats, c, q = _folded_projections(x, p)
    idx = jnp.argmax(c, axis=0)         # == torch.sort(c,0,desc)[1][0,:] (first max)
    q_max = q[idx]                      # q-net commutes with row selection
    a = jnp.dot(q, q_max.T) / jnp.sqrt(jnp.float32(q.shape[1]))
    a = jax.nn.softmax(a, axis=0)
    b = jnp.dot(a.T, feats)             # passing_v=False -> V = feats
    return jnp.einsum("kje,je->k", p["w_conv"], b) + p["b_conv"][0]


if __name__ == "__main__":
    # Bag of N instances, D input features, E-dim hidden space, K classes.
    # N=300 is deliberately not a multiple of the tile to exercise masking.
    N, D, E, K = 300, 64, 32, 2
    key = jax.random.PRNGKey(0)
    kx, kp = jax.random.split(key)
    x = jax.random.normal(kx, (N, D), jnp.float32)
    params = init_params(kp, D, E, K)

    ref = dsmil_ref(x, params)

    # default config (big tile, Q/feats cache), multi-tile cached path, and the
    # recompute fallback path are all exercised.
    out_main = jax.block_until_ready(dsmil_forward(x, params))
    out_tiled = jax.block_until_ready(dsmil_forward(x, params, tile_n=128))
    out_nocache = jax.block_until_ready(
        dsmil_forward(x, params, tile_n=128, use_cache=False))

    for out in (out_main, out_tiled, out_nocache):
        assert out.shape == (K,)
        assert jnp.allclose(out, ref, rtol=2e-2, atol=2e-2), (out, ref)
    print("KERNEL_OK")
</pallas_src>

<mosaic_0001>
module attributes {stable_mosaic.version = 11 : i64} {
  func.func @kernel(%arg0: i32, %arg1: i32, %arg2: memref<512x64xbf16, #tpu.memory_space<vmem>>, %arg3: memref<64x384xbf16, #tpu.memory_space<vmem>>, %arg4: memref<1x384xf32, #tpu.memory_space<vmem>>, %arg5: memref<8x128xbf16, #tpu.memory_space<vmem>>, %arg6: memref<1x128xf32, #tpu.memory_space<vmem>>, %arg7: memref<128x128xbf16, #tpu.memory_space<vmem>>, %arg8: memref<1x128xf32, #tpu.memory_space<vmem>>, %arg9: memref<2x128x128xf32, #tpu.memory_space<vmem>>, %arg10: memref<1x128xf32, #tpu.memory_space<vmem>>, %arg11: memref<1x128xf32, #tpu.memory_space<vmem>>, %arg12: memref<1x128xf32, #tpu.memory_space<vmem>>, %arg13: memref<128x128xf32, #tpu.memory_space<vmem>>, %arg14: memref<1x128xf32, #tpu.memory_space<vmem>>, %arg15: memref<1x128xf32, #tpu.memory_space<vmem>>, %arg16: memref<128x128xf32, #tpu.memory_space<vmem>>, %arg17: memref<512x128xbf16, #tpu.memory_space<vmem>>, %arg18: memref<512x128xbf16, #tpu.memory_space<vmem>>) attributes {dimension_semantics = [#tpu.dimension_semantics<arbitrary>, #tpu.dimension_semantics<arbitrary>], iteration_bounds = array<i64: 2, 1>, scalar_prefetch = 0 : i64, scratch_operands = 7 : i64, tpu.core_type = #tpu.core_type<tc>, window_params = [{transform_indices = @transform_0, window_bounds = array<i64: 512, 64>}, {pipeline_mode = #tpu.pipeline_mode<synchronous>, transform_indices = @transform_1, window_bounds = array<i64: 64, 384>}, {pipeline_mode = #tpu.pipeline_mode<synchronous>, transform_indices = @transform_2, window_bounds = array<i64: 1, 384>}, {pipeline_mode = #tpu.pipeline_mode<synchronous>, transform_indices = @transform_3, window_bounds = array<i64: 8, 128>}, {pipeline_mode = #tpu.pipeline_mode<synchronous>, transform_indices = @transform_4, window_bounds = array<i64: 1, 128>}, {pipeline_mode = #tpu.pipeline_mode<synchronous>, transform_indices = @transform_5, window_bounds = array<i64: 128, 128>}, {pipeline_mode = #tpu.pipeline_mode<synchronous>, transform_indices = @transform_6, window_bounds = array<i64: 1, 128>}, {pipeline_mode = #tpu.pipeline_mode<synchronous>, transform_indices = @transform_7, window_bounds = array<i64: 2, 128, 128>}, {pipeline_mode = #tpu.pipeline_mode<synchronous>, transform_indices = @transform_8, window_bounds = array<i64: 1, 128>}, {pipeline_mode = #tpu.pipeline_mode<synchronous>, transform_indices = @transform_9, window_bounds = array<i64: 1, 128>}]} {
    %0 = tpu.iota {dimensions = array<i32: 0>} : vector<512x1xi32>
    %c512_i32 = arith.constant 512 : i32
    %1 = arith.muli %arg1, %c512_i32 : i32
    %2 = vector.broadcast %1 : i32 to vector<512x1xi32>
    %3 = arith.addi %0, %2 : vector<512x1xi32>
    %c300_i32 = arith.constant 300 : i32
    %4 = vector.broadcast %c300_i32 : i32 to vector<512x1xi32>
    %5 = arith.cmpi slt, %3, %4 : vector<512x1xi32>
    %c0_i32 = arith.constant 0 : i32
    %6 = arith.cmpi eq, %arg0, %c0_i32 : i32
    %7 = arith.extui %6 : i1 to i32
    %c0_i32_0 = arith.constant 0 : i32
    %8 = arith.cmpi ne, %7, %c0_i32_0 : i32
    scf.if %8 {
      %c0_i32_2 = arith.constant 0 : i32
      %12 = arith.cmpi eq, %arg1, %c0_i32_2 : i32
      %13 = arith.extui %12 : i1 to i32
      %c0_i32_3 = arith.constant 0 : i32
      %14 = arith.cmpi ne, %13, %c0_i32_3 : i32
      scf.if %14 {
        %cst_33 = arith.constant -3.000000e+38 : f32
        %73 = vector.broadcast %cst_33 : f32 to vector<1x128xf32>
        %c0_34 = arith.constant 0 : index
        %c0_35 = arith.constant 0 : index
        %74 = vector.load %arg12[%c0_34, %c0_35] : memref<1x128xf32, #tpu.memory_space<vmem>>, vector<1x128xf32>
        tpu.vector_store %arg12[%c0_34, %c0_35], %73 {strides = array<i32>} : memref<1x128xf32, #tpu.memory_space<vmem>>, vector<1x128xf32>,
        %cst_36 = arith.constant 0.000000e+00 : f32
        %75 = vector.broadcast %cst_36 : f32 to vector<128x128xf32>
        %c0_37 = arith.constant 0 : index
        %c0_38 = arith.constant 0 : index
        %76 = vector.load %arg13[%c0_37, %c0_38] : memref<128x128xf32, #tpu.memory_space<vmem>>, vector<128x128xf32>
        tpu.vector_store %arg13[%c0_37, %c0_38], %75 {strides = array<i32>} : memref<128x128xf32, #tpu.memory_space<vmem>>, vector<128x128xf32>,
      } else {
      }
      %c0 = arith.constant 0 : index
      %c0_4 = arith.constant 0 : index
      %15 = vector.load %arg2[%c0, %c0_4] : memref<512x64xbf16, #tpu.memory_space<vmem>>, vector<512x64xbf16>
      %c0_5 = arith.constant 0 : index
      %c0_6 = arith.constant 0 : index
      %16 = vector.load %arg3[%c0_5, %c0_6] : memref<64x384xbf16, #tpu.memory_space<vmem>>, vector<64x384xbf16>
      %cst = arith.constant dense<0.000000e+00> : vector<512x384xf32>
      %17 = tpu.matmul %15, %16, %cst {dimension_numbers = #tpu.dot_dimension_numbers<[1], [0], [0], [1], [0, 0, 1, 1], [], []>} : vector<512x64xbf16>, vector<64x384xbf16>, vector<512x384xf32> -> vector<512x384xf32>
      %c0_7 = arith.constant 0 : index
      %c0_8 = arith.constant 0 : index
      %18 = vector.load %arg4[%c0_7, %c0_8] : memref<1x384xf32, #tpu.memory_space<vmem>>, vector<1x384xf32>
      %19 = vector.broadcast %18 : vector<1x384xf32> to vector<512x384xf32>
      %20 = arith.addf %17, %19 : vector<512x384xf32>
      %21 = vector.extract_strided_slice %20 {offsets = [0, 0], sizes = [512, 128], strides = [1, 1]} : vector<512x384xf32> to vector<512x128xf32>
      %cst_9 = arith.constant 0.000000e+00 : f32
      %22 = vector.broadcast %cst_9 : f32 to vector<512x128xf32>
      %23 = arith.maximumf %21, %22 : vector<512x128xf32>
      %24 = arith.truncf %23 : vector<512x128xf32> to vector<512x128xbf16>
      %c0_10 = arith.constant 0 : index
      %c0_11 = arith.constant 0 : index
      %25 = vector.load %arg7[%c0_10, %c0_11] : memref<128x128xbf16, #tpu.memory_space<vmem>>, vector<128x128xbf16>
      %cst_12 = arith.constant dense<0.000000e+00> : vector<512x128xf32>
      %26 = tpu.matmul %24, %25, %cst_12 {dimension_numbers = #tpu.dot_dimension_numbers<[1], [0], [0], [1], [0, 0, 1, 1], [], []>} : vector<512x128xbf16>, vector<128x128xbf16>, vector<512x128xf32> -> vector<512x128xf32>
      %c0_13 = arith.constant 0 : index
      %c0_14 = arith.constant 0 : index
      %27 = vector.load %arg8[%c0_13, %c0_14] : memref<1x128xf32, #tpu.memory_space<vmem>>, vector<1x128xf32>
      %28 = vector.broadcast %27 : vector<1x128xf32> to vector<512x128xf32>
      %29 = arith.addf %26, %28 : vector<512x128xf32>
      %30 = math.tanh %29 : vector<512x128xf32>
      %c512_i32_15 = arith.constant 512 : i32
      %31 = arith.muli %arg1, %c512_i32_15 : i32
      %32 = tpu.assume_multiple %31, 512 : i32
      %33 = arith.truncf %30 : vector<512x128xf32> to vector<512x128xbf16>
      %34 = arith.index_cast %32 : i32 to index
      %c0_16 = arith.constant 0 : index
      %35 = vector.load %arg17[%34, %c0_16] : memref<512x128xbf16, #tpu.memory_space<vmem>>, vector<512x128xbf16>
      tpu.vector_store %arg17[%34, %c0_16], %33 {strides = array<i32>} : memref<512x128xbf16, #tpu.memory_space<vmem>>, vector<512x128xbf16>,
      %36 = vector.extract_strided_slice %20 {offsets = [0, 256], sizes = [512, 128], strides = [1, 1]} : vector<512x384xf32> to vector<512x128xf32>
      %37 = arith.truncf %36 : vector<512x128xf32> to vector<512x128xbf16>
      %38 = arith.index_cast %32 : i32 to index
      %c0_17 = arith.constant 0 : index
      %39 = vector.load %arg18[%38, %c0_17] : memref<512x128xbf16, #tpu.memory_space<vmem>>, vector<512x128xbf16>
      tpu.vector_store %arg18[%38, %c0_17], %37 {strides = array<i32>} : memref<512x128xbf16, #tpu.memory_space<vmem>>, vector<512x128xbf16>,
      %40 = vector.extract_strided_slice %20 {offsets = [0, 128], sizes = [512, 128], strides = [1, 1]} : vector<512x384xf32> to vector<512x128xf32>
      %cst_18 = arith.constant -1.000000e+30 : f32
      %41 = vector.shape_cast %5 : vector<512x1xi1> to vector<512x1xi1>
      %42 = vector.broadcast %41 : vector<512x1xi1> to vector<512x128xi1>
      %43 = vector.broadcast %cst_18 : f32 to vector<512x128xf32>
      %44 = arith.select %42, %40, %43 : vector<512x128xi1>, vector<512x128xf32>
      %cst_19 = arith.constant dense<0xFF800000> : vector<128xf32>
      %45 = vector.multi_reduction <maximumf>, %44, %cst_19 [0] : vector<512x128xf32> to vector<128xf32>
      %46 = vector.shape_cast %45 : vector<128xf32> to vector<1x128xf32>
      %c0_20 = arith.constant 0 : index
      %c0_21 = arith.constant 0 : index
      %47 = vector.load %arg12[%c0_20, %c0_21] : memref<1x128xf32, #tpu.memory_space<vmem>>, vector<1x128xf32>
      %48 = arith.cmpf ogt, %46, %47 : vector<1x128xf32>
      %49 = vector.broadcast %46 : vector<1x128xf32> to vector<512x128xf32>
      %50 = arith.cmpf oeq, %44, %49 : vector<512x128xf32>
      %c512_i32_22 = arith.constant 512 : i32
      %51 = vector.shape_cast %0 : vector<512x1xi32> to vector<512x1xi32>
      %52 = vector.broadcast %51 : vector<512x1xi32> to vector<512x128xi32>
      %53 = vector.broadcast %c512_i32_22 : i32 to vector<512x128xi32>
      %54 = arith.select %50, %52, %53 : vector<512x128xi1>, vector<512x128xi32>
      %cst_23 = arith.constant dense<2147483647> : vector<128xi32>
      %55 = vector.multi_reduction <minsi>, %54, %cst_23 [0] : vector<512x128xi32> to vector<128xi32>
      %56 = vector.shape_cast %55 : vector<128xi32> to vector<1x128xi32>
      %57 = vector.broadcast %0 : vector<512x1xi32> to vector<512x128xi32>
      %58 = vector.broadcast %56 : vector<1x128xi32> to vector<512x128xi32>
      %59 = arith.cmpi eq, %57, %58 : vector<512x128xi32>
      %60 = arith.extui %59 : vector<512x128xi1> to vector<512x128xi32>
      %61 = arith.sitofp %60 : vector<512x128xi32> to vector<512x128xf32>
      %62 = arith.truncf %61 : vector<512x128xf32> to vector<512x128xbf16>
      %63 = arith.truncf %30 : vector<512x128xf32> to vector<512x128xbf16>
      %cst_24 = arith.constant dense<0.000000e+00> : vector<128x128xf32>
      %64 = tpu.matmul %63, %62, %cst_24 {dimension_numbers = #tpu.dot_dimension_numbers<[0], [0], [1], [1], [0, 1, 1, 1], [], []>} : vector<512x128xbf16>, vector<512x128xbf16>, vector<128x128xf32> -> vector<128x128xf32>
      %c0_25 = arith.constant 0 : index
      %c0_26 = arith.constant 0 : index
      %65 = vector.load %arg13[%c0_25, %c0_26] : memref<128x128xf32, #tpu.memory_space<vmem>>, vector<128x128xf32>
      %66 = vector.shape_cast %48 : vector<1x128xi1> to vector<1x128xi1>
      %67 = vector.broadcast %66 : vector<1x128xi1> to vector<128x128xi1>
      %68 = arith.select %67, %64, %65 : vector<128x128xi1>, vector<128x128xf32>
      %c0_27 = arith.constant 0 : index
      %c0_28 = arith.constant 0 : index
      %69 = vector.load %arg13[%c0_27, %c0_28] : memref<128x128xf32, #tpu.memory_space<vmem>>, vector<128x128xf32>
      tpu.vector_store %arg13[%c0_27, %c0_28], %68 {strides = array<i32>} : memref<128x128xf32, #tpu.memory_space<vmem>>, vector<128x128xf32>,
      %c0_29 = arith.constant 0 : index
      %c0_30 = arith.constant 0 : index
      %70 = vector.load %arg12[%c0_29, %c0_30] : memref<1x128xf32, #tpu.memory_space<vmem>>, vector<1x128xf32>
      %71 = arith.maximumf %70, %46 : vector<1x128xf32>
      %c0_31 = arith.constant 0 : index
      %c0_32 = arith.constant 0 : index
      %72 = vector.load %arg12[%c0_31, %c0_32] : memref<1x128xf32, #tpu.memory_space<vmem>>, vector<1x128xf32>
      tpu.vector_store %arg12[%c0_31, %c0_32], %71 {strides = array<i32>} : memref<1x128xf32, #tpu.memory_space<vmem>>, vector<1x128xf32>,
    } else {
    }
    %c1_i32 = arith.constant 1 : i32
    %9 = arith.cmpi eq, %arg0, %c1_i32 : i32
    %10 = arith.extui %9 : i1 to i32
    %c0_i32_1 = arith.constant 0 : i32
    %11 = arith.cmpi ne, %10, %c0_i32_1 : i32
    scf.if %11 {
      %c0_i32_2 = arith.constant 0 : i32
      %12 = arith.cmpi eq, %arg1, %c0_i32_2 : i32
      %13 = arith.extui %12 : i1 to i32
      %c0_i32_3 = arith.constant 0 : i32
      %14 = arith.cmpi ne, %13, %c0_i32_3 : i32
      scf.if %14 {
        %cst_28 = arith.constant -3.000000e+38 : f32
        %55 = vector.broadcast %cst_28 : f32 to vector<1x128xf32>
        %c0_29 = arith.constant 0 : index
        %c0_30 = arith.constant 0 : index
        %56 = vector.load %arg14[%c0_29, %c0_30] : memref<1x128xf32, #tpu.memory_space<vmem>>, vector<1x128xf32>
        tpu.vector_store %arg14[%c0_29, %c0_30], %55 {strides = array<i32>} : memref<1x128xf32, #tpu.memory_space<vmem>>, vector<1x128xf32>,
        %cst_31 = arith.constant 0.000000e+00 : f32
        %57 = vector.broadcast %cst_31 : f32 to vector<1x128xf32>
        %c0_32 = arith.constant 0 : index
        %c0_33 = arith.constant 0 : index
        %58 = vector.load %arg15[%c0_32, %c0_33] : memref<1x128xf32, #tpu.memory_space<vmem>>, vector<1x128xf32>
        tpu.vector_store %arg15[%c0_32, %c0_33], %57 {strides = array<i32>} : memref<1x128xf32, #tpu.memory_space<vmem>>, vector<1x128xf32>,
        %cst_34 = arith.constant 0.000000e+00 : f32
        %59 = vector.broadcast %cst_34 : f32 to vector<128x128xf32>
        %c0_35 = arith.constant 0 : index
        %c0_36 = arith.constant 0 : index
        %60 = vector.load %arg16[%c0_35, %c0_36] : memref<128x128xf32, #tpu.memory_space<vmem>>, vector<128x128xf32>
        tpu.vector_store %arg16[%c0_35, %c0_36], %59 {strides = array<i32>} : memref<128x128xf32, #tpu.memory_space<vmem>>, vector<128x128xf32>,
        %c0_37 = arith.constant 0 : index
        %c0_38 = arith.constant 0 : index
        %61 = vector.load %arg13[%c0_37, %c0_38] : memref<128x128xf32, #tpu.memory_space<vmem>>, vector<128x128xf32>
        %cst_39 = arith.constant 0.0883883461 : f32
        %62 = vector.broadcast %cst_39 : f32 to vector<128x128xf32>
        %63 = arith.mulf %61, %62 : vector<128x128xf32>
        %c0_40 = arith.constant 0 : index
        %c0_41 = arith.constant 0 : index
        %64 = vector.load %arg13[%c0_40, %c0_41] : memref<128x128xf32, #tpu.memory_space<vmem>>, vector<128x128xf32>
        tpu.vector_store %arg13[%c0_40, %c0_41], %63 {strides = array<i32>} : memref<128x128xf32, #tpu.memory_space<vmem>>, vector<128x128xf32>,
      } else {
      }
      %c512_i32_4 = arith.constant 512 : i32
      %15 = arith.muli %arg1, %c512_i32_4 : i32
      %16 = tpu.assume_multiple %15, 512 : i32
      %17 = arith.index_cast %16 : i32 to index
      %c0 = arith.constant 0 : index
      %18 = vector.load %arg17[%17, %c0] : memref<512x128xbf16, #tpu.memory_space<vmem>>, vector<512x128xbf16>
      %19 = arith.index_cast %16 : i32 to index
      %c0_5 = arith.constant 0 : index
      %20 = vector.load %arg18[%19, %c0_5] : memref<512x128xbf16, #tpu.memory_space<vmem>>, vector<512x128xbf16>
      %c0_6 = arith.constant 0 : index
      %c0_7 = arith.constant 0 : index
      %21 = vector.load %arg13[%c0_6, %c0_7] : memref<128x128xf32, #tpu.memory_space<vmem>>, vector<128x128xf32>
      %22 = arith.truncf %21 : vector<128x128xf32> to vector<128x128xbf16>
      %cst = arith.constant dense<0.000000e+00> : vector<512x128xf32>
      %23 = tpu.matmul %18, %22, %cst {dimension_numbers = #tpu.dot_dimension_numbers<[1], [0], [0], [1], [0, 0, 1, 1], [], []>} : vector<512x128xbf16>, vector<128x128xbf16>, vector<512x128xf32> -> vector<512x128xf32>
      %cst_8 = arith.constant -1.000000e+30 : f32
      %24 = vector.shape_cast %5 : vector<512x1xi1> to vector<512x1xi1>
      %25 = vector.broadcast %24 : vector<512x1xi1> to vector<512x128xi1>
      %26 = vector.broadcast %cst_8 : f32 to vector<512x128xf32>
      %27 = arith.select %25, %23, %26 : vector<512x128xi1>, vector<512x128xf32>
      %c0_9 = arith.constant 0 : index
      %c0_10 = arith.constant 0 : index
      %28 = vector.load %arg14[%c0_9, %c0_10] : memref<1x128xf32, #tpu.memory_space<vmem>>, vector<1x128xf32>
      %cst_11 = arith.constant dense<0xFF800000> : vector<128xf32>
      %29 = vector.multi_reduction <maximumf>, %27, %cst_11 [0] : vector<512x128xf32> to vector<128xf32>
      %30 = vector.shape_cast %29 : vector<128xf32> to vector<1x128xf32>
      %31 = arith.maximumf %28, %30 : vector<1x128xf32>
      %c0_12 = arith.constant 0 : index
      %c0_13 = arith.constant 0 : index
      %32 = vector.load %arg14[%c0_12, %c0_13] : memref<1x128xf32, #tpu.memory_space<vmem>>, vector<1x128xf32>
      %33 = arith.subf %32, %31 : vector<1x128xf32>
      %34 = math.exp %33 : vector<1x128xf32>
      %35 = vector.broadcast %31 : vector<1x128xf32> to vector<512x128xf32>
      %36 = arith.subf %27, %35 : vector<512x128xf32>
      %37 = math.exp %36 : vector<512x128xf32>
      %c0_14 = arith.constant 0 : index
      %c0_15 = arith.constant 0 : index
      %38 = vector.load %arg15[%c0_14, %c0_15] : memref<1x128xf32, #tpu.memory_space<vmem>>, vector<1x128xf32>
      %39 = arith.mulf %34, %38 : vector<1x128xf32>
      %cst_16 = arith.constant dense<0.000000e+00> : vector<128xf32>
      %40 = vector.multi_reduction <add>, %37, %cst_16 [0] : vector<512x128xf32> to vector<128xf32>
      %41 = vector.shape_cast %40 : vector<128xf32> to vector<1x128xf32>
      %42 = arith.addf %39, %41 : vector<1x128xf32>
      %c0_17 = arith.constant 0 : index
      %c0_18 = arith.constant 0 : index
      %43 = vector.load %arg15[%c0_17, %c0_18] : memref<1x128xf32, #tpu.memory_space<vmem>>, vector<1x128xf32>
      tpu.vector_store %arg15[%c0_17, %c0_18], %42 {strides = array<i32>} : memref<1x128xf32, #tpu.memory_space<vmem>>, vector<1x128xf32>,
      %c0_19 = arith.constant 0 : index
      %c0_20 = arith.constant 0 : index
      %44 = vector.load %arg16[%c0_19, %c0_20] : memref<128x128xf32, #tpu.memory_space<vmem>>, vector<128x128xf32>
      %45 = vector.broadcast %34 : vector<1x128xf32> to vector<128x128xf32>
      %46 = arith.mulf %45, %44 : vector<128x128xf32>
      %47 = arith.truncf %37 : vector<512x128xf32> to vector<512x128xbf16>
      %cst_21 = arith.constant dense<0.000000e+00> : vector<128x128xf32>
      %48 = tpu.matmul %20, %47, %cst_21 {dimension_numbers = #tpu.dot_dimension_numbers<[0], [0], [1], [1], [0, 1, 1, 1], [], []>} : vector<512x128xbf16>, vector<512x128xbf16>, vector<128x128xf32> -> vector<128x128xf32>
      %49 = arith.addf %46, %48 : vector<128x128xf32>
      %c0_22 = arith.constant 0 : index
      %c0_23 = arith.constant 0 : index
      %50 = vector.load %arg16[%c0_22, %c0_23] : memref<128x128xf32, #tpu.memory_space<vmem>>, vector<128x128xf32>
      tpu.vector_store %arg16[%c0_22, %c0_23], %49 {strides = array<i32>} : memref<128x128xf32, #tpu.memory_space<vmem>>, vector<128x128xf32>,
      %c0_24 = arith.constant 0 : index
      %c0_25 = arith.constant 0 : index
      %51 = vector.load %arg14[%c0_24, %c0_25] : memref<1x128xf32, #tpu.memory_space<vmem>>, vector<1x128xf32>
      tpu.vector_store %arg14[%c0_24, %c0_25], %31 {strides = array<i32>} : memref<1x128xf32, #tpu.memory_space<vmem>>, vector<1x128xf32>,
      %c0_i32_26 = arith.constant 0 : i32
      %52 = arith.cmpi eq, %arg1, %c0_i32_26 : i32
      %53 = arith.extui %52 : i1 to i32
      %c0_i32_27 = arith.constant 0 : i32
      %54 = arith.cmpi ne, %53, %c0_i32_27 : i32
      scf.if %54 {
        %c0_28 = arith.constant 0 : index
        %c0_29 = arith.constant 0 : index
        %55 = vector.load %arg16[%c0_28, %c0_29] : memref<128x128xf32, #tpu.memory_space<vmem>>, vector<128x128xf32>
        %c0_30 = arith.constant 0 : index
        %c0_31 = arith.constant 0 : index
        %56 = vector.load %arg15[%c0_30, %c0_31] : memref<1x128xf32, #tpu.memory_space<vmem>>, vector<1x128xf32>
        %57 = tpu.reciprocal %56 {approx = true} : vector<1x128xf32> -> vector<1x128xf32>
        %58 = vector.broadcast %57 : vector<1x128xf32> to vector<128x128xf32>
        %59 = arith.mulf %55, %58 : vector<128x128xf32>
        %60 = tpu.iota {dimensions = array<i32: 1>} : vector<1x128xi32>
        %c0_32 = arith.constant 0 : index
        %c0_33 = arith.constant 0 : index
        %61 = vector.load %arg10[%c0_32, %c0_33] : memref<1x128xf32, #tpu.memory_space<vmem>>, vector<1x128xf32>
        %c0_34 = arith.constant 0 : index
        %c0_35 = arith.constant 0 : index
        %c0_36 = arith.constant 0 : index
        %62 = vector.load %arg9[%c0_34, %c0_35, %c0_36] : memref<2x128x128xf32, #tpu.memory_space<vmem>>, vector<1x128x128xf32>
        %63 = vector.shape_cast %62 : vector<1x128x128xf32> to vector<128x128xf32>
        %64 = arith.mulf %59, %63 : vector<128x128xf32>
        %cst_37 = arith.constant dense<0.000000e+00> : vector<128xf32>
        %65 = vector.multi_reduction <add>, %64, %cst_37 [0] : vector<128x128xf32> to vector<128xf32>
        %66 = vector.shape_cast %65 : vector<128xf32> to vector<1x128xf32>
        %cst_38 = arith.constant dense<0.000000e+00> : vector<1xf32>
        %67 = vector.multi_reduction <add>, %66, %cst_38 [1] : vector<1x128xf32> to vector<1xf32>
        %68 = vector.shape_cast %67 : vector<1xf32> to vector<1x1xf32>
        %c0_i32_39 = arith.constant 0 : i32
        %69 = vector.broadcast %c0_i32_39 : i32 to vector<1x128xi32>
        %70 = arith.cmpi eq, %60, %69 : vector<1x128xi32>
        %cst_40 = arith.constant 0.000000e+00 : f32
        %71 = vector.shape_cast %68 : vector<1x1xf32> to vector<1x1xf32>
        %72 = vector.broadcast %71 : vector<1x1xf32> to vector<1x128xf32>
        %73 = vector.broadcast %cst_40 : f32 to vector<1x128xf32>
        %74 = arith.select %70, %72, %73 : vector<1x128xi1>, vector<1x128xf32>
        %75 = arith.addf %61, %74 : vector<1x128xf32>
        %c1 = arith.constant 1 : index
        %c0_41 = arith.constant 0 : index
        %c0_42 = arith.constant 0 : index
        %76 = vector.load %arg9[%c1, %c0_41, %c0_42] : memref<2x128x128xf32, #tpu.memory_space<vmem>>, vector<1x128x128xf32>
        %77 = vector.shape_cast %76 : vector<1x128x128xf32> to vector<128x128xf32>
        %78 = arith.mulf %59, %77 : vector<128x128xf32>
        %cst_43 = arith.constant dense<0.000000e+00> : vector<128xf32>
        %79 = vector.multi_reduction <add>, %78, %cst_43 [0] : vector<128x128xf32> to vector<128xf32>
        %80 = vector.shape_cast %79 : vector<128xf32> to vector<1x128xf32>
        %cst_44 = arith.constant dense<0.000000e+00> : vector<1xf32>
        %81 = vector.multi_reduction <add>, %80, %cst_44 [1] : vector<1x128xf32> to vector<1xf32>
        %82 = vector.shape_cast %81 : vector<1xf32> to vector<1x1xf32>
        %c1_i32_45 = arith.constant 1 : i32
        %83 = vector.broadcast %c1_i32_45 : i32 to vector<1x128xi32>
        %84 = arith.cmpi eq, %60, %83 : vector<1x128xi32>
        %cst_46 = arith.constant 0.000000e+00 : f32
        %85 = vector.shape_cast %82 : vector<1x1xf32> to vector<1x1xf32>
        %86 = vector.broadcast %85 : vector<1x1xf32> to vector<1x128xf32>
        %87 = vector.broadcast %cst_46 : f32 to vector<1x128xf32>
        %88 = arith.select %84, %86, %87 : vector<1x128xi1>, vector<1x128xf32>
        %89 = arith.addf %75, %88 : vector<1x128xf32>
        %c0_47 = arith.constant 0 : index
        %c0_48 = arith.constant 0 : index
        %90 = vector.load %arg11[%c0_47, %c0_48] : memref<1x128xf32, #tpu.memory_space<vmem>>, vector<1x128xf32>
        tpu.vector_store %arg11[%c0_47, %c0_48], %89 {strides = array<i32>} : memref<1x128xf32, #tpu.memory_space<vmem>>, vector<1x128xf32>,
      } else {
      }
    } else {
    }
    return
  }
  func.func @transform_0(%arg0: i32, %arg1: i32) -> (i32, i32) {
    %c1_i32 = arith.constant 1 : i32
    %0 = arith.subi %c1_i32, %arg0 : i32
    %1 = arith.muli %arg1, %0 : i32
    %c0_i32 = arith.constant 0 : i32
    %c0_i32_0 = arith.constant 0 : i32
    return %1, %c0_i32 : i32, i32
  }
  func.func @transform_1(%arg0: i32, %arg1: i32) -> (i32, i32) {
    %c0_i32 = arith.constant 0 : i32
    %c0_i32_0 = arith.constant 0 : i32
    %c0_i32_1 = arith.constant 0 : i32
    return %c0_i32, %c0_i32_0 : i32, i32
  }
  func.func @transform_2(%arg0: i32, %arg1: i32) -> (i32, i32) {
    %c0_i32 = arith.constant 0 : i32
    %c0_i32_0 = arith.constant 0 : i32
    %c0_i32_1 = arith.constant 0 : i32
    return %c0_i32, %c0_i32_0 : i32, i32
  }
  func.func @transform_3(%arg0: i32, %arg1: i32) -> (i32, i32) {
    %c0_i32 = arith.constant 0 : i32
    %c0_i32_0 = arith.constant 0 : i32
    %c0_i32_1 = arith.constant 0 : i32
    return %c0_i32, %c0_i32_0 : i32, i32
  }
  func.func @transform_4(%arg0: i32, %arg1: i32) -> (i32, i32) {
    %c0_i32 = arith.constant 0 : i32
    %c0_i32_0 = arith.constant 0 : i32
    %c0_i32_1 = arith.constant 0 : i32
    return %c0_i32, %c0_i32_0 : i32, i32
  }
  func.func @transform_5(%arg0: i32, %arg1: i32) -> (i32, i32) {
    %c0_i32 = arith.constant 0 : i32
    %c0_i32_0 = arith.constant 0 : i32
    %c0_i32_1 = arith.constant 0 : i32
    return %c0_i32, %c0_i32_0 : i32, i32
  }
  func.func @transform_6(%arg0: i32, %arg1: i32) -> (i32, i32) {
    %c0_i32 = arith.constant 0 : i32
    %c0_i32_0 = arith.constant 0 : i32
    %c0_i32_1 = arith.constant 0 : i32
    return %c0_i32, %c0_i32_0 : i32, i32
  }
  func.func @transform_7(%arg0: i32, %arg1: i32) -> (i32, i32, i32) {
    %c0_i32 = arith.constant 0 : i32
    %c0_i32_0 = arith.constant 0 : i32
    %c0_i32_1 = arith.constant 0 : i32
    %c0_i32_2 = arith.constant 0 : i32
    return %c0_i32, %c0_i32_0, %c0_i32_1 : i32, i32, i32
  }
  func.func @transform_8(%arg0: i32, %arg1: i32) -> (i32, i32) {
    %c0_i32 = arith.constant 0 : i32
    %c0_i32_0 = arith.constant 0 : i32
    %c0_i32_1 = arith.constant 0 : i32
    return %c0_i32, %c0_i32_0 : i32, i32
  }
  func.func @transform_9(%arg0: i32, %arg1: i32) -> (i32, i32) {
    %c0_i32 = arith.constant 0 : i32
    %c0_i32_0 = arith.constant 0 : i32
    %c0_i32_1 = arith.constant 0 : i32
    return %c0_i32, %c0_i32_0 : i32, i32
  }
}

</mosaic_0001>

<bundles_post_ra>
// kernel: tpu_custom_call.1
= control target key start
LH: loop header
LB: loop body
LE: loop exit
PB: predicated region body
PF: predicated region fallthrough
CT: control target
= control target key end

     0   :  { %14 = vsyncpa [#allocation10], 0  ;;  %s10762_s0 = inlined_call_operand.vmem [shape: bf16[512,64], index: 0, kind: input, shape index: {}]   ;;  %s10763_s1 = inlined_call_operand.vmem [shape: bf16[64,384], index: 1, kind: input, shape index: {}]   ;;  %s10764_s2 = inlined_call_operand.vmem [shape: f32[1,384], index: 2, kind: input, shape index: {}]   ;;  %s10765_s3 = inlined_call_operand.vmem [shape: bf16[8,128], index: 3, kind: input, shape index: {}]   ;;  %s10766_s4 = inlined_call_operand.vmem [shape: f32[1,128], index: 4, kind: input, shape index: {}]   ;;  %s10767_s5 = inlined_call_operand.hbm [shape: bf16[128,128], index: 5, kind: input, shape index: {}]   ;;  %s10768_s6 = inlined_call_operand.vmem [shape: f32[1,128], index: 6, kind: input, shape index: {}]   ;;  %s10769_s7 = inlined_call_operand.vmem [shape: f32[2,128,128], index: 7, kind: input, shape index: {}]   ;;  %s10770_s8 = inlined_call_operand.vmem [shape: f32[1,128], index: 8, kind: input, shape index: {}]   ;;  %s10771_s9 = inlined_call_operand.hbm [shape: f32[1,128], index: 9, kind: output, shape index: {}]  }
   0x1   :  { %15 = vsyncpa [#allocation11], 0  ;;  %s8044_s3 = smov 0   ;;  %s8046_s4 = smov 0  }
   0x2   :  { %s8048_s30 = smov 0  }
   0x3 LB: > { %s5916_s10 = sadd.s32 4294967295, %s7983_s30   ;;  %s33_s11 = sadd.s32 1, %s7979_s4  ;;  %s7983_s30 = sphi %s8048_s30, %s21_s30   ;;  %s7979_s4 = sphi %s8046_s4, %s11178_s4   ;;  %s7975_s3 = sphi %s8044_s3, %s11177_s3  }
   0x4   : > { %p35_p0 = scmp.ge.s32.totalorder %s33_s11, 2  ;;  %p5917_p1 = scmp.ge.s32.totalorder %s7983_s30, 1 }
   0x5   : > { %p257_p2 = scmp.lt.s32.totalorder %s7983_s30, 3  ;;  %p8071_p4 = scmp.eq.s32.totalorder %s5916_s10, 0 }
   0x6   : > { %s11180_s11 = smov (%p35_p0, %s33_s11), 0  ;;  %s7985_s14 = smov [#allocation9]  }
   0x7   : > { %p8065_p3 = pnand %p5917_p1, %p257_p2  ;;  %s281_s15 = sshll.u32 %s7985_s14, 4  ;;  %s282_s15 = int_to_ptr.vmem [resolvable:$true] %s281_s15 }
   0x8   : > { %s7914_s16 = scalar_lea.vmem %s282_s15, 1024  ;;  %p7922_p11 = scmp.lt.s32.totalorder %s282_s15, %s282_s15 }
   0x9   : > { %p7530_p5 = pneg %p8065_p3  ;;  %p7915_p8 = scmp.ne.s32.totalorder %s282_s15, %s7914_s16 }
   0xa   : > { %p7923_p12 = scmp.lt.s32.totalorder %s7914_s16, %s7914_s16 }
   0xb   : > { %p7531_p6 = pnand %p8071_p4, %p7530_p5 }
   0xc   : > { %p7924_p13 = por %p7923_p12, %p7922_p11 }
   0xd   : > { %p7905_p7 = pneg %p7531_p6 }
   0xf   : > { %p7917_p9 = pnand %p7915_p8, %p7905_p7 }
  0x11   : > { %p7918_p10 = pneg %p7917_p9 }
  0x13   : > { %p7925_p0 = pnand %p7924_p13, %p7918_p10 }
  0x15   : > { %7928 = shalt.err (!%p7925_p0)
}
  0x16   : > { %s7986_s17 = smov 64   ;;  %s7987_s18 = smov 4  }
  0x17   : > { %7533 = dma.hbm_to_vmem [thread:$0]  (!%p7531_p6), %s10767_s5, 1024, %s282_s15, [#allocation10], %s7986_s17, %s7986_s17, %s7987_s18  }
  0x18   : > { %319 = sbr.rel (%p8065_p3) target bundleno = 2072 (0x818), region = 56 }
  0x1d   : > { %7966 = dma.done.wait (%p8071_p4), [#allocation10], 1024  }
  0x1e   : > { %7968 = vsyncadd (%p8071_p4), [#allocation10], 4294966272  ;;  %v10772_v0 = vlaneseq  ;;  %p5923_p1 = scmp.ne.s32.totalorder %s7975_s3, 0 }
  0x20   : > { %v8089_v1 = vshrl.u32 %v10772_v0, 7 }
  0x22   : > { %10888 = vst [vmem:[#allocation15_spill] sm:$0xff] %v8089_v1  ;;  %v8092_v2 = vadd.s32 8, %v8089_v1  ;;  %v8095_v3 = vadd.s32 16, %v8089_v1  ;;  %v8098_v4 = vadd.s32 24, %v8089_v1  ;;  %v8101_v5 = vadd.s32 32, %v8089_v1 }
  0x23   : > { %v8104_v6 = vadd.s32 40, %v8089_v1  ;;  %v8107_v7 = vadd.s32 48, %v8089_v1  ;;  %v8110_v8 = vadd.s32 56, %v8089_v1  ;;  %v8113_v9 = vadd.s32 64, %v8089_v1 }
  0x24   : > { %10889 = vst [vmem:[#allocation16_spill] sm:$0xff] %v8092_v2  ;;  %10890 = vst [vmem:[#allocation17_spill] sm:$0xff] %v8095_v3  ;;  %v8116_v10 = vadd.s32 72, %v8089_v1  ;;  %v8119_v11 = vadd.s32 80, %v8089_v1  ;;  %v8122_v12 = vadd.s32 88, %v8089_v1  ;;  %v8125_v13 = vadd.s32 96, %v8089_v1 }
  0x25   : > { %10891 = vst [vmem:[#allocation18_spill] sm:$0xff] %v8098_v4  ;;  %10892 = vst [vmem:[#allocation19_spill] sm:$0xff] %v8101_v5  ;;  %v8128_v14 = vadd.s32 104, %v8089_v1  ;;  %v8131_v15 = vadd.s32 112, %v8089_v1  ;;  %v8134_v16 = vadd.s32 120, %v8089_v1  ;;  %v8137_v17 = vadd.s32 128, %v8089_v1 }
  0x26   : > { %10893 = vst [vmem:[#allocation20_spill] sm:$0xff] %v8104_v6  ;;  %10894 = vst [vmem:[#allocation21_spill] sm:$0xff] %v8107_v7  ;;  %v8140_v18 = vadd.s32 136, %v8089_v1  ;;  %v8143_v19 = vadd.s32 144, %v8089_v1  ;;  %v8146_v20 = vadd.s32 152, %v8089_v1  ;;  %v8149_v21 = vadd.s32 160, %v8089_v1 }
  0x27   : > { %10895 = vst [vmem:[#allocation22_spill] sm:$0xff] %v8110_v8  ;;  %10896 = vst [vmem:[#allocation23_spill] sm:$0xff] %v8113_v9  ;;  %v8152_v22 = vadd.s32 168, %v8089_v1  ;;  %v8155_v23 = vadd.s32 176, %v8089_v1  ;;  %v8158_v24 = vadd.s32 184, %v8089_v1  ;;  %v8161_v25 = vadd.s32 192, %v8089_v1 }
  0x28   : > { %10897 = vst [vmem:[#allocation24_spill] sm:$0xff] %v8116_v10  ;;  %10898 = vst [vmem:[#allocation25_spill] sm:$0xff] %v8119_v11  ;;  %v8164_v26 = vadd.s32 200, %v8089_v1  ;;  %v8167_v27 = vadd.s32 208, %v8089_v1  ;;  %v8170_v28 = vadd.s32 216, %v8089_v1  ;;  %v8173_v29 = vadd.s32 224, %v8089_v1 }
  0x29   : > { %10899 = vst [vmem:[#allocation26_spill] sm:$0xff] %v8122_v12  ;;  %10900 = vst [vmem:[#allocation27_spill] sm:$0xff] %v8125_v13  ;;  %v8176_v30 = vadd.s32 232, %v8089_v1  ;;  %v8179_v31 = vadd.s32 240, %v8089_v1  ;;  %v8182_v32 = vadd.s32 248, %v8089_v1  ;;  %v8185_v33 = vadd.s32 256, %v8089_v1 }
  0x2a   : > { %10901 = vst [vmem:[#allocation28_spill] sm:$0xff] %v8128_v14  ;;  %10902 = vst [vmem:[#allocation29_spill] sm:$0xff] %v8131_v15  ;;  %v8188_v34 = vadd.s32 264, %v8089_v1  ;;  %v8191_v35 = vadd.s32 272, %v8089_v1  ;;  %v8194_v36 = vadd.s32 280, %v8089_v1  ;;  %v8197_v37 = vadd.s32 288, %v8089_v1 }
  0x2b   : > { %10903 = vst [vmem:[#allocation30_spill] sm:$0xff] %v8134_v16  ;;  %10904 = vst [vmem:[#allocation31_spill] sm:$0xff] %v8137_v17  ;;  %v8200_v38 = vadd.s32 296, %v8089_v1  ;;  %v8203_v39 = vadd.s32 304, %v8089_v1  ;;  %v8206_v40 = vadd.s32 312, %v8089_v1  ;;  %v8209_v41 = vadd.s32 320, %v8089_v1 }
  0x2c   : > { %10905 = vst [vmem:[#allocation32_spill] sm:$0xff] %v8140_v18  ;;  %10906 = vst [vmem:[#allocation33_spill] sm:$0xff] %v8143_v19  ;;  %v8212_v42 = vadd.s32 328, %v8089_v1  ;;  %v8215_v43 = vadd.s32 336, %v8089_v1  ;;  %v8218_v44 = vadd.s32 344, %v8089_v1  ;;  %v8221_v45 = vadd.s32 352, %v8089_v1 }
  0x2d   : > { %10907 = vst [vmem:[#allocation34_spill] sm:$0xff] %v8146_v20  ;;  %10908 = vst [vmem:[#allocation35_spill] sm:$0xff] %v8149_v21  ;;  %v8224_v46 = vadd.s32 360, %v8089_v1  ;;  %v8227_v47 = vadd.s32 368, %v8089_v1  ;;  %v8230_v48 = vadd.s32 376, %v8089_v1  ;;  %v8233_v49 = vadd.s32 384, %v8089_v1 }
  0x2e   : > { %10909 = vst [vmem:[#allocation36_spill] sm:$0xff] %v8152_v22  ;;  %10910 = vst [vmem:[#allocation37_spill] sm:$0xff] %v8155_v23  ;;  %v8236_v50 = vadd.s32 392, %v8089_v1  ;;  %v8239_v51 = vadd.s32 400, %v8089_v1  ;;  %v8242_v52 = vadd.s32 408, %v8089_v1  ;;  %v8245_v53 = vadd.s32 416, %v8089_v1 }
  0x2f   : > { %10911 = vst [vmem:[#allocation38_spill] sm:$0xff] %v8158_v24  ;;  %10912 = vst [vmem:[#allocation39_spill] sm:$0xff] %v8161_v25  ;;  %v8248_v54 = vadd.s32 424, %v8089_v1  ;;  %v8251_v55 = vadd.s32 432, %v8089_v1  ;;  %v8254_v56 = vadd.s32 440, %v8089_v1  ;;  %v8257_v57 = vadd.s32 448, %v8089_v1 }
  0x30   : > { %10913 = vst [vmem:[#allocation40_spill] sm:$0xff] %v8164_v26  ;;  %10914 = vst [vmem:[#allocation41_spill] sm:$0xff] %v8167_v27  ;;  %v8260_v58 = vadd.s32 456, %v8089_v1  ;;  %v8263_v59 = vadd.s32 464, %v8089_v1  ;;  %v8266_v60 = vadd.s32 472, %v8089_v1  ;;  %v8269_v61 = vadd.s32 480, %v8089_v1 }
  0x31   : > { %10915 = vst [vmem:[#allocation42_spill] sm:$0xff] %v8170_v28  ;;  %10916 = vst [vmem:[#allocation43_spill] sm:$0xff] %v8173_v29  ;;  %v8272_v62 = vadd.s32 488, %v8089_v1  ;;  %v8275_v63 = vadd.s32 496, %v8089_v1  ;;  %v8278_v0 = vadd.s32 504, %v8089_v1  ;;  %vm10871_vm0 = vcmp.lt.s32.totalorder %v8200_v38, 300 }
  0x32   : > { %10917 = vst [vmem:[#allocation44_spill] sm:$0xff] %v8176_v30  ;;  %10918 = vst [vmem:[#allocation45_spill] sm:$0xff] %v8179_v31 }
  0x33   : > { %10919 = vst [vmem:[#allocation46_spill] sm:$0xff] %v8182_v32  ;;  %10920 = vst [vmem:[#allocation47_spill] sm:$0xff] %v8185_v33 }
  0x34   : > { %10921 = vst [vmem:[#allocation48_spill] sm:$0xff] %v8188_v34  ;;  %10922 = vst [vmem:[#allocation49_spill] sm:$0xff] %v8191_v35 }
  0x35   : > { %10923 = vst [vmem:[#allocation50_spill] sm:$0xff] %v8194_v36  ;;  %10924 = vst [vmem:[#allocation51_spill] sm:$0xff] %v8197_v37 }
  0x36   : > { %10925 = vst [vmem:[#allocation52_spill] sm:$0xff] %v8200_v38  ;;  %10926 = vst [vmem:[#allocation53_spill] sm:$0xff] %v8203_v39 }
  0x37   : > { %10927 = vst [vmem:[#allocation54_spill] sm:$0xff] %v8206_v40  ;;  %10928 = vst [vmem:[#allocation55_spill] sm:$0xff] %v8209_v41 }
  0x38   : > { %10929 = vst [vmem:[#allocation56_spill] sm:$0xff] %v8212_v42  ;;  %10930 = vst [vmem:[#allocation57_spill] sm:$0xff] %v8215_v43 }
  0x39   : > { %10931 = vst [vmem:[#allocation58_spill] sm:$0xff] %v8218_v44  ;;  %10932 = vst [vmem:[#allocation59_spill] sm:$0xff] %v8221_v45 }
  0x3a   : > { %10933 = vst [vmem:[#allocation60_spill] sm:$0xff] %v8224_v46  ;;  %10934 = vst [vmem:[#allocation61_spill] sm:$0xff] %v8227_v47 }
  0x3b   : > { %10935 = vst [vmem:[#allocation62_spill] sm:$0xff] %v8230_v48  ;;  %10936 = vst [vmem:[#allocation63_spill] sm:$0xff] %v8233_v49 }
  0x3c   : > { %10937 = vst [vmem:[#allocation64_spill] sm:$0xff] %v8236_v50  ;;  %10938 = vst [vmem:[#allocation65_spill] sm:$0xff] %v8239_v51 }
  0x3d   : > { %10939 = vst [vmem:[#allocation66_spill] sm:$0xff] %v8242_v52  ;;  %10940 = vst [vmem:[#allocation67_spill] sm:$0xff] %v8245_v53 }
  0x3e   : > { %10941 = vst [vmem:[#allocation68_spill] sm:$0xff] %v8248_v54  ;;  %10942 = vst [vmem:[#allocation69_spill] sm:$0xff] %v8251_v55 }
  0x3f   : > { %10943 = vst [vmem:[#allocation70_spill] sm:$0xff] %v8254_v56  ;;  %10944 = vst [vmem:[#allocation71_spill] sm:$0xff] %v8257_v57  ;;  %561 = sbr.rel (%p5923_p1) target bundleno = 1142 (0x476), region = 64 }
  0x40   : > { %10945 = vst [vmem:[#allocation72_spill] sm:$0xff] %v8260_v58  ;;  %10946 = vst [vmem:[#allocation73_spill] sm:$0xff] %v8263_v59 }
  0x41   : > { %10947 = vst [vmem:[#allocation74_spill] sm:$0xff] %v8266_v60  ;;  %10948 = vst [vmem:[#allocation75_spill] sm:$0xff] %v8269_v61 }
  0x42   : > { %10949 = vst [vmem:[#allocation76_spill] sm:$0xff] %v8272_v62  ;;  %10950 = vst [vmem:[#allocation77_spill] sm:$0xff] %v8275_v63 }
  0x43   : > { %10951 = vst [vmem:[#allocation78_spill] sm:$0xff] %v8278_v0 }
  0x44   : > { %v7572_v60 = vld [vmem:[%s10763_s1 + $0x4c] ss:$12 sps:$4 sm:$0xff]   ;;  %v7574_v61 = vld [vmem:[%s10763_s1 + $0x48] ss:$12 sps:$4 sm:$0xff]   ;;  %v10799_v62 = vmov 0   ;;  %v7584_v58 = vld [vmem:[%s10762_s0] sm:$0xff]  }
  0x45   : > { %1033 = vmatprep.mubr.bf16.mxu0 %v10799_v62  ;;  %1009 = vmatprep.subr.bf16.mxu0 %v7572_v60  ;;  %v7575_v0 = vld [vmem:[%s10763_s1 + $0x34] ss:$12 sps:$4 sm:$0xff]   ;;  %v7577_v63 = vld [vmem:[%s10763_s1 + $0x30] ss:$12 sps:$4 sm:$0xff]   ;;  %vm904_vm1 = vcmask 523264   ;;  %v7601_v54 = vld [vmem:[%s10762_s0 + $0x68] sm:$0xff]  }
  0x46   : > { %1010 = vmatpush1.bf16.msra.mxu0 %v7574_v61  ;;  %v7578_v59 = vld [vmem:[%s10763_s1 + $0x1c] ss:$12 sps:$4 sm:$0xff]   ;;  %v7580_v60 = vld [vmem:[%s10763_s1 + $0x18] ss:$12 sps:$4 sm:$0xff]   ;;  %7298 = vmatprep.mubr.msk.bf16.mxu1 %vm904_vm1, %v7584_v58  ;;  %v7602_v53 = vld [vmem:[%s10762_s0 + $0x70] sm:$0xff]   ;;  %v671_v42 = vsub.s32 1, %v8089_v1 }
  0x47   : > { %1011 = vmatprep.subr.bf16.mxu0 %v7575_v0  ;;  %v7581_v61 = vld [vmem:[%s10763_s1 + $0x4] ss:$12 sps:$4 sm:$0xff]   ;;  %v7583_v0 = vld [vmem:[%s10763_s1] ss:$12 sps:$4 sm:$0xff]   ;;  %v7599_v56 = vld [vmem:[%s10762_s0 + $0x58] sm:$0xff]   ;;  %v10953_v37 = vmov 0  }
  0x48   : > { %v7614_v57 = vld [vmem:[#allocation9 + $0x38] sm:$0xff]   ;;  %v7606_v51 = vld [vmem:[%s10762_s0 + $0x90] sm:$0xff]  }
  0x49   : > { %v7600_v55 = vld [vmem:[%s10762_s0 + $0x60] sm:$0xff]   ;;  %v8453_v50 = vld [vmem:[%s10762_s0 + $0xd0] sm:$0xff]  }
  0x4a   : > { %1012 = vmatpush1.bf16.msra.mxu0 %v7577_v63  ;;  %v7593_v63 = vld [vmem:[%s10763_s1 + $0x50] ss:$12 sps:$4 sm:$0xff]   ;;  %v7604_v52 = vld [vmem:[%s10762_s0 + $0x80] sm:$0xff]  }
  0x4b   : > { %1013 = vmatprep.subr.bf16.mxu0 %v7578_v59  ;;  %v7594_v59 = vld [vmem:[%s10763_s1 + $0x38] ss:$12 sps:$4 sm:$0xff]   ;;  %7290 = vmatprep.subr.bf16.mxu1 %v7593_v63  ;;  %v8484_v48 = vld [vmem:[%s10762_s0 + $0xf0] sm:$0xff]  }
  0x4c   : > { %7291 = vmatpush3.bf16.msra.mxu1 %v7593_v63  ;;  %v7587_v63 = vld [vmem:[%s10762_s0 + $0x18] sm:$0xff]   ;;  %v8468_v49 = vld [vmem:[%s10762_s0 + $0xe0] sm:$0xff]  }
  0x4d   : > { %7292 = vmatprep.subr.bf16.mxu1 %v7594_v59 }
  0x4e   : > { %1014 = vmatpush1.bf16.msra.mxu0 %v7580_v60  ;;  %v7596_v60 = vld [vmem:[%s10763_s1 + $0x20] ss:$12 sps:$4 sm:$0xff]  }
  0x4f   : > { %1015 = vmatprep.subr.bf16.mxu0 %v7581_v61  ;;  %v7585_v61 = vld [vmem:[%s10762_s0 + $0x8] sm:$0xff]  }
  0x50   : > { %7293 = vmatpush3.bf16.msra.mxu1 %v7594_v59  ;;  %v7588_v59 = vld [vmem:[%s10762_s0 + $0x20] sm:$0xff]  }
  0x51   : > { %7294 = vmatprep.subr.bf16.mxu1 %v7596_v60 }
  0x52   : > { %1016 = vmatpush1.bf16.msra.mxu0 %v7583_v0  ;;  %v7597_v0 = vld [vmem:[%s10763_s1 + $0x8] ss:$12 sps:$4 sm:$0xff]  }
  0x54   : > { %7295 = vmatpush3.bf16.msra.mxu1 %v7596_v60  ;;  %v7589_v60 = vld [vmem:[%s10762_s0 + $0x28] sm:$0xff]  }
  0x55   : > { %5968 = vmatmul.mubr.msk.bf16.vlgmr.msra.gmra.mxu0 %vm904_vm1, %v7584_v58  ;;  %7296 = vmatprep.subr.bf16.mxu1 %v7597_v0  ;;  %v7586_v58 = vld [vmem:[%s10762_s0 + $0x10] sm:$0xff]  }
  0x56   : > { %1043 = vmatprep.mubr.bf16.mxu0 %v10799_v62 }
  0x58   : > { %7297 = vmatpush3.bf16.msra.mxu1 %v7597_v0  ;;  %v7591_v0 = vld [vmem:[%s10762_s0 + $0x38] sm:$0xff]  }
  0x59   : > { %7362 = vmatprep.subr.bf16.mxu1 %v7614_v57 }
  0x5b   : > { %7299 = vmatmul.mubr.msk.bf16.vlgmr.msra.gmra.mxu1 %vm904_vm1, %v7585_v61 }
  0x5c   : > { %7302 = vmatprep.mubr.msk.bf16.mxu1 %vm904_vm1, %v7586_v58  ;;  %7363 = vmatpush3.bf16.msra.mxu1 %v7614_v57  ;;  %v7619_v57 = vld [vmem:[#allocation9 + $0x20] sm:$0xff]  }
  0x5d   : > { %5969 = vmatmul.mubr.msk.bf16.gmra.mxu0 %vm904_vm1, %v7585_v61  ;;  %v7590_v61 = vld [vmem:[%s10762_s0 + $0x30] sm:$0xff]  }
  0x5e   : > { %1053 = vmatprep.mubr.bf16.mxu0 %v10799_v62 }
  0x63   : > { %7303 = vmatmul.mubr.msk.bf16.gmra.mxu1 %vm904_vm1, %v7587_v63 }
  0x64   : > { %7306 = vmatprep.mubr.msk.bf16.mxu1 %vm904_vm1, %v7588_v59 }
  0x65   : > { %5970 = vmatmul.mubr.msk.bf16.gmra.mxu0 %vm904_vm1, %v7586_v58  ;;  %v7592_v58 = vld [vmem:[%s10762_s0 + $0x40] sm:$0xff]  }
  0x66   : > { %1063 = vmatprep.mubr.bf16.mxu0 %v10799_v62 }
  0x6b   : > { %7307 = vmatmul.mubr.msk.bf16.gmra.mxu1 %vm904_vm1, %v7589_v60 }
  0x6c   : > { %7310 = vmatprep.mubr.msk.bf16.mxu1 %vm904_vm1, %v7590_v61 }
  0x6d   : > { %5971 = vmatmul.mubr.msk.bf16.gmra.mxu0 %vm904_vm1, %v7587_v63  ;;  %v7595_v63 = vld [vmem:[%s10762_s0 + $0x48] sm:$0xff]  }
  0x6e   : > { %1073 = vmatprep.mubr.bf16.mxu0 %v10799_v62 }
  0x73   : > { %7311 = vmatmul.mubr.msk.bf16.gmra.mxu1 %vm904_vm1, %v7591_v0 }
  0x74   : > { %7314 = vmatprep.mubr.msk.bf16.mxu1 %vm904_vm1, %v7592_v58 }
  0x75   : > { %5972 = vmatmul.mubr.msk.bf16.gmra.mxu0 %vm904_vm1, %v7588_v59  ;;  %v7598_v59 = vld [vmem:[%s10762_s0 + $0x50] sm:$0xff]  }
  0x76   : > { %1083 = vmatprep.mubr.bf16.mxu0 %v10799_v62 }
  0x7b   : > { %7315 = vmatmul.mubr.msk.bf16.gmra.mxu1 %vm904_vm1, %v7595_v63 }
  0x7c   : > { %7318 = vmatprep.mubr.msk.bf16.mxu1 %vm904_vm1, %v7598_v59 }
  0x7d   : > { %5973 = vmatmul.mubr.msk.bf16.gmra.mxu0 %vm904_vm1, %v7589_v60  ;;  %v7615_v60 = vld [vmem:[#allocation9 + $0x30] sm:$0xff]  }
  0x7e   : > { %1093 = vmatprep.mubr.bf16.mxu0 %v10799_v62  ;;  %7364 = vmatprep.subr.bf16.mxu1 %v7615_v60 }
  0x7f   : > { %7365 = vmatpush3.bf16.msra.mxu1 %v7615_v60  ;;  %v7603_v60 = vld [vmem:[%s10762_s0 + $0x78] sm:$0xff]  }
  0x83   : > { %7319 = vmatmul.mubr.msk.bf16.gmra.mxu1 %vm904_vm1, %v7599_v56 }
  0x84   : > { %7322 = vmatprep.mubr.msk.bf16.mxu1 %vm904_vm1, %v7600_v55 }
  0x85   : > { %5974 = vmatmul.mubr.msk.bf16.gmra.mxu0 %vm904_vm1, %v7590_v61  ;;  %v7618_v61 = vld [vmem:[#allocation9 + $0x28] sm:$0xff]  }
  0x86   : > { %1103 = vmatprep.mubr.bf16.mxu0 %v10799_v62  ;;  %7366 = vmatprep.subr.bf16.mxu1 %v7618_v61 }
  0x87   : > { %7367 = vmatpush3.bf16.msra.mxu1 %v7618_v61  ;;  %v7623_v61 = vld [vmem:[#allocation9 + $0x10] sm:$0xff]  }
  0x88   : > { %7368 = vmatprep.subr.bf16.mxu1 %v7619_v57 }
  0x8b   : > { %7323 = vmatmul.mubr.msk.bf16.gmra.mxu1 %vm904_vm1, %v7601_v54 }
  0x8c   : > { %7326 = vmatprep.mubr.msk.bf16.mxu1 %vm904_vm1, %v7602_v53  ;;  %7369 = vmatpush3.bf16.msra.mxu1 %v7619_v57  ;;  %v7605_v57 = vld [vmem:[%s10762_s0 + $0x88] sm:$0xff]  }
  0x8d   : > { %5975 = vmatmul.mubr.msk.bf16.gmra.mxu0 %vm904_vm1, %v7591_v0  ;;  %v7622_v0 = vld [vmem:[#allocation9 + $0x18] sm:$0xff]  }
  0x8e   : > { %1113 = vmatprep.mubr.bf16.mxu0 %v10799_v62  ;;  %7370 = vmatprep.subr.bf16.mxu1 %v7622_v0 }
  0x90   : > { %7371 = vmatpush3.bf16.msra.mxu1 %v7622_v0  ;;  %v7627_v0 = vld [vmem:[#allocation9] sm:$0xff]  }
  0x91   : > { %7372 = vmatprep.subr.bf16.mxu1 %v7623_v61 }
  0x93   : > { %7327 = vmatmul.mubr.msk.bf16.gmra.mxu1 %vm904_vm1, %v7603_v60 }
  0x94   : > { %7330 = vmatprep.mubr.msk.bf16.mxu1 %vm904_vm1, %v7604_v52  ;;  %7373 = vmatpush3.bf16.msra.mxu1 %v7623_v61  ;;  %v7607_v61 = vld [vmem:[%s10762_s0 + $0x98] sm:$0xff]  }
  0x95   : > { %5976 = vmatmul.mubr.msk.bf16.gmra.mxu0 %vm904_vm1, %v7592_v58  ;;  %v7626_v58 = vld [vmem:[#allocation9 + $0x8] sm:$0xff]  }
  0x96   : > { %1123 = vmatprep.mubr.bf16.mxu0 %v10799_v62  ;;  %7374 = vmatprep.subr.bf16.mxu1 %v7626_v58 }
  0x98   : > { %7375 = vmatpush3.bf16.msra.mxu1 %v7626_v58  ;;  %v7610_v58 = vld [vmem:[%s10762_s0 + $0xb0] sm:$0xff]  }
  0x99   : > { %7376 = vmatprep.subr.bf16.mxu1 %v7627_v0 }
  0x9b   : > { %7331 = vmatmul.mubr.msk.bf16.gmra.mxu1 %vm904_vm1, %v7605_v57 }
  0x9c   : > { %7334 = vmatprep.mubr.msk.bf16.mxu1 %vm904_vm1, %v7606_v51  ;;  %7377 = vmatpush3.bf16.msra.mxu1 %v7627_v0  ;;  %v7612_v0 = vld [vmem:[%s10762_s0 + $0xc0] sm:$0xff]  }
  0x9d   : > { %5977 = vmatmul.mubr.msk.bf16.gmra.mxu0 %vm904_vm1, %v7595_v63  ;;  %v7608_v63 = vld [vmem:[%s10762_s0 + $0xa0] sm:$0xff]  }
  0x9e   : > { %1133 = vmatprep.mubr.bf16.mxu0 %v10799_v62 }
  0xa3   : > { %7335 = vmatmul.mubr.msk.bf16.gmra.mxu1 %vm904_vm1, %v7607_v61 }
  0xa4   : > { %7338 = vmatprep.mubr.msk.bf16.mxu1 %vm904_vm1, %v7608_v63 }
  0xa5   : > { %5978 = vmatmul.mubr.msk.bf16.gmra.mxu0 %vm904_vm1, %v7598_v59  ;;  %v7609_v59 = vld [vmem:[%s10762_s0 + $0xa8] sm:$0xff]  }
  0xa6   : > { %1143 = vmatprep.mubr.bf16.mxu0 %v10799_v62 }
  0xab   : > { %7339 = vmatmul.mubr.msk.bf16.gmra.mxu1 %vm904_vm1, %v7609_v59 }
  0xac   : > { %7342 = vmatprep.mubr.msk.bf16.mxu1 %vm904_vm1, %v7610_v58 }
  0xad   : > { %5979 = vmatmul.mubr.msk.bf16.gmra.mxu0 %vm904_vm1, %v7599_v56  ;;  %v7611_v56 = vld [vmem:[%s10762_s0 + $0xb8] sm:$0xff]  }
  0xae   : > { %1153 = vmatprep.mubr.bf16.mxu0 %v10799_v62 }
  0xb3   : > { %7343 = vmatmul.mubr.msk.bf16.gmra.mxu1 %vm904_vm1, %v7611_v56 }
  0xb4   : > { %7346 = vmatprep.mubr.msk.bf16.mxu1 %vm904_vm1, %v7612_v0 }
  0xb5   : > { %5980 = vmatmul.mubr.msk.bf16.gmra.mxu0 %vm904_vm1, %v7600_v55  ;;  %v7613_v55 = vld [vmem:[%s10762_s0 + $0xc8] sm:$0xff]  }
  0xb6   : > { %1163 = vmatprep.mubr.bf16.mxu0 %v10799_v62 }
  0xbb   : > { %7347 = vmatmul.mubr.msk.bf16.gmra.mxu1 %vm904_vm1, %v7613_v55 }
  0xbc   : > { %7350 = vmatprep.mubr.msk.bf16.mxu1 %vm904_vm1, %v8453_v50 }
  0xbd   : > { %5981 = vmatmul.mubr.msk.bf16.gmra.mxu0 %vm904_vm1, %v7601_v54  ;;  %v8463_v54 = vld [vmem:[%s10762_s0 + $0xd8] sm:$0xff]  }
  0xbe   : > { %1173 = vmatprep.mubr.bf16.mxu0 %v10799_v62 }
  0xc3   : > { %7351 = vmatmul.mubr.msk.bf16.gmra.mxu1 %vm904_vm1, %v8463_v54 }
  0xc4   : > { %7354 = vmatprep.mubr.msk.bf16.mxu1 %vm904_vm1, %v8468_v49 }
  0xc5   : > { %5982 = vmatmul.mubr.msk.bf16.gmra.mxu0 %vm904_vm1, %v7602_v53  ;;  %v8479_v53 = vld [vmem:[%s10762_s0 + $0xe8] sm:$0xff]  }
  0xc6   : > { %1183 = vmatprep.mubr.bf16.mxu0 %v10799_v62 }
  0xcb   : > { %7355 = vmatmul.mubr.msk.bf16.gmra.mxu1 %vm904_vm1, %v8479_v53 }
  0xcc   : > { %7358 = vmatprep.mubr.msk.bf16.mxu1 %vm904_vm1, %v8484_v48 }
  0xcd   : > { %5983 = vmatmul.mubr.msk.bf16.gmra.mxu0 %vm904_vm1, %v7603_v60  ;;  %v8495_v60 = vld [vmem:[%s10762_s0 + $0xf8] sm:$0xff]  }
  0xce   : > { %1193 = vmatprep.mubr.bf16.mxu0 %v10799_v62 }
  0xd3   : > { %7359 = vmatmul.mubr.msk.bf16.gmra.mxu1 %vm904_vm1, %v8495_v60 }
  0xd5   : > { %5984 = vmatmul.mubr.msk.bf16.gmra.mxu0 %vm904_vm1, %v7604_v52  ;;  %v663_v52 = vld [vmem:[%s10764_s2] sm:$0x7] }
  0xd6   : > { %1203 = vmatprep.mubr.bf16.mxu0 %v10799_v62 }
  0xdd   : > { %5985 = vmatmul.mubr.msk.bf16.gmra.mxu0 %vm904_vm1, %v7605_v57 }
  0xde   : > { %1213 = vmatprep.mubr.bf16.mxu0 %v10799_v62 }
  0xe5   : > { %5986 = vmatmul.mubr.msk.bf16.gmra.mxu0 %vm904_vm1, %v7606_v51  ;;  %v10795_v51 = vsub.s32 0, %v8089_v1 }
  0xe6   : > { %1223 = vmatprep.mubr.bf16.mxu0 %v10799_v62 }
  0xe7   : > { %v8519_v57 = vrot.slane %v663_v52, %v10795_v51 }
  0xe9   : > { %10952 = vst [vmem:[#allocation79_spill] sm:$0xff] %v8519_v57 }
  0xed   : > { %5987 = vmatmul.mubr.msk.bf16.gmra.mxu0 %vm904_vm1, %v7607_v61 }
  0xee   : > { %1233 = vmatprep.mubr.bf16.mxu0 %v10799_v62 }
  0xf5   : > { %5988 = vmatmul.mubr.msk.bf16.gmra.mxu0 %vm904_vm1, %v7608_v63 }
  0xf6   : > { %1243 = vmatprep.mubr.bf16.mxu0 %v10799_v62 }
  0xfd   : > { %5989 = vmatmul.mubr.msk.bf16.gmra.mxu0 %vm904_vm1, %v7609_v59 }
  0xfe   : > { %1253 = vmatprep.mubr.bf16.mxu0 %v10799_v62 }
 0x105   : > { %5990 = vmatmul.mubr.msk.bf16.gmra.mxu0 %vm904_vm1, %v7610_v58 }
 0x106   : > { %1263 = vmatprep.mubr.bf16.mxu0 %v10799_v62 }
 0x10d   : > { %5991 = vmatmul.mubr.msk.bf16.gmra.mxu0 %vm904_vm1, %v7611_v56 }
 0x10e   : > { %1273 = vmatprep.mubr.bf16.mxu0 %v10799_v62 }
 0x115   : > { %v1035_v63 = vpop.f32.mrf.mxu0  ;;  %5992 = vmatmul.mubr.msk.bf16.gmra.mxu0 %vm904_vm1, %v7612_v0  ;;  %v675_v0 = vsub.s32 2, %v8089_v1 }
 0x116   : > { %1283 = vmatprep.mubr.bf16.mxu0 %v10799_v62  ;;  %v1036_v59 = vadd.f32 %v1035_v63, %v8519_v57 }
 0x117   : > { %v1037_v61 = vpop.f32.mrf.mxu0 }
 0x118   : > { %v1643_v46 = vmax.f32 %v1036_v59, 0.0  ;;  %v8531_v59 = vrot.slane %v663_v52, %v675_v0 }
 0x119   : > { %v1039_v58 = vpop.f32.mrf.mxu0 }
 0x11a   : > { %v1040_v56 = vadd.f32 %v1039_v58, %v8519_v57 }
 0x11b   : > { %v1041_v47 = vpop.f32.mrf.mxu0 }
 0x11c   : > { %v1644_v45 = vmax.f32 %v1040_v56, 0.0  ;;  %v8533_v56 = vrot.slane %v663_v52, %v671_v42 }
 0x11d   : > { %v1045_v44 = vpop.f32.mrf.mxu0  ;;  %5993 = vmatmul.mubr.msk.bf16.gmra.mxu0 %vm904_vm1, %v7613_v55 }
 0x11e   : > { %v1707_v43 = vpack.c.bf16 %v1644_v45, %v1643_v46  ;;  %1293 = vmatprep.mubr.bf16.mxu0 %v10799_v62  ;;  %v1046_v41 = vadd.f32 %v1045_v44, %v8519_v57  ;;  %v7300_v46 = vpop.f32.mrf.mxu1 }
 0x11f   : > { %v1047_v51 = vpop.f32.mrf.mxu0  ;;  %v1397_v36 = vadd.f32 %v7300_v46, %v8531_v59 }
 0x120   : > { %7378 = vmatprep.mubr.bf16.mxu1 %v1707_v43  ;;  %v1645_v55 = vmax.f32 %v1046_v41, 0.0  ;;  %v1388_v44 = vpop.f32.mrf.mxu1 }
 0x121   : > { %v1049_v63 = vpop.f32.mrf.mxu0 }
 0x122   : > { %v1050_v58 = vadd.f32 %v1049_v63, %v8519_v57  ;;  %v8540_v63 = vadd.f32 %v1037_v61, %v8533_v56  ;;  %v7301_v52 = vpop.f32.mrf.mxu1 }
 0x123   : > { %v1051_v40 = vpop.f32.mrf.mxu0 }
 0x124   : > { %v1646_v45 = vmax.f32 %v1050_v58, 0.0  ;;  %v1400_v58 = vadd.f32 %v7301_v52, %v8531_v59  ;;  %v1391_v46 = vpop.f32.mrf.mxu1 }
 0x125   : > { %v1055_v62 = vpop.f32.mrf.mxu0  ;;  %5994 = vmatmul.mubr.msk.bf16.gmra.mxu0 %vm904_vm1, %v8453_v50  ;;  %v1389_v50 = vadd.f32 %v1388_v44, %v8531_v59 }
 0x126   : > { %v1708_v39 = vpack.c.bf16 %v1646_v45, %v1645_v55  ;;  %1303 = vmatprep.mubr.bf16.mxu0 %v10953_v37  ;;  %v1056_v42 = vadd.f32 %v1055_v62, %v8519_v57  ;;  %v6704_v35 = vpack.c.bf16 %v1400_v58, %v1397_v36  ;;  %v1392_v62 = vadd.f32 %v1391_v46, %v8531_v59  ;;  %v7304_v44 = vpop.f32.mrf.mxu1 }
 0x127   : > { %v1057_v43 = vpop.f32.mrf.mxu0 }
 0x128   : > { %v8544_v41 = vadd.f32 %v1057_v43, %v8533_v56  ;;  %7379 = vmatmul.mubr.bf16.vlgmr.msra.gmra.mxu1 %v1708_v39  ;;  %v8553_v43 = vadd.f32 %v1041_v47, %v8533_v56  ;;  %v1647_v39 = vmax.f32 %v1056_v42, 0.0  ;;  %6887 = vst [vmem:[#allocation8 + $0x8] sm:$0xff] %v6704_v35   ;;  %v1404_v47 = vpop.f32.mrf.mxu1  ;;  %v1413_v42 = vadd.f32 %v7304_v44, %v8531_v59 }
 0x129   : > { %v1059_v0 = vpop.f32.mrf.mxu0 }
 0x12a   : > { %v3001_v55 = vmax.f32 %v8540_v63, %v8544_v41  ;;  %v1060_v45 = vadd.f32 %v1059_v0, %v8519_v57  ;;  %v6699_v0 = vpack.c.bf16 %v1392_v62, %v1389_v50  ;;  %v1405_v50 = vadd.f32 %v1404_v47, %v8531_v59 }
 0x12b   : > { %v1061_v61 = vpop.f32.mrf.mxu0 }
 0x12c   : > { %v1648_v34 = vmax.f32 %v1060_v45, 0.0  ;;  %v8556_v33 = vadd.f32 %v1061_v61, %v8533_v56  ;;  %6700 = vst [vmem:[#allocation8] sm:$0xff] %v6699_v0   ;;  %v8565_v45 = vadd.f32 %v1047_v51, %v8533_v56 }
 0x12d   : > { %v1065_v52 = vpop.f32.mrf.mxu0  ;;  %5995 = vmatmul.mubr.msk.bf16.gmra.mxu0 %vm904_vm1, %v8463_v54 }
 0x12e   : > { %v1709_v32 = vpack.c.bf16 %v1648_v34, %v1647_v39  ;;  %1313 = vmatprep.mubr.bf16.mxu0 %v10953_v37  ;;  %v1066_v46 = vadd.f32 %v1065_v52, %v8519_v57  ;;  %v7305_v34 = vpop.f32.mrf.mxu1 }
 0x12f   : > { %v1067_v58 = vpop.f32.mrf.mxu0  ;;  %v1416_v61 = vadd.f32 %v7305_v34, %v8531_v59 }
 0x130   : > { %v8569_v54 = vadd.f32 %v1067_v58, %v8533_v56  ;;  %7382 = vmatprep.mubr.bf16.mxu1 %v1709_v32  ;;  %v1407_v44 = vpop.f32.mrf.mxu1  ;;  %v8578_v58 = vadd.f32 %v1051_v40, %v8533_v56  ;;  %v1649_v32 = vmax.f32 %v1066_v46, 0.0 }
 0x131   : > { %v1069_v35 = vpop.f32.mrf.mxu0  ;;  %v6714_v0 = vpack.c.bf16 %v1416_v61, %v1413_v42  ;;  %v1408_v52 = vadd.f32 %v1407_v44, %v8531_v59 }
 0x132   : > { %v3003_v62 = vmax.f32 %v8565_v45, %v8569_v54  ;;  %v1070_v39 = vadd.f32 %v1069_v35, %v8519_v57  ;;  %v7308_v47 = vpop.f32.mrf.mxu1 }
 0x133   : > { %v1071_v51 = vpop.f32.mrf.mxu0  ;;  %6889 = vst [vmem:[#allocation8 + $0x18] sm:$0xff] %v6714_v0   ;;  %v6709_v35 = vpack.c.bf16 %v1408_v52, %v1405_v50  ;;  %v1429_v46 = vadd.f32 %v7308_v47, %v8531_v59 }
 0x134   : > { %v1650_v36 = vmax.f32 %v1070_v39, 0.0  ;;  %v8581_v31 = vadd.f32 %v1071_v51, %v8533_v56  ;;  %v1420_v40 = vpop.f32.mrf.mxu1 }
 0x135   : > { %v1075_v34 = vpop.f32.mrf.mxu0  ;;  %5996 = vmatmul.mubr.msk.bf16.gmra.mxu0 %vm904_vm1, %v8468_v49  ;;  %6888 = vst [vmem:[#allocation8 + $0x10] sm:$0xff] %v6709_v35  }
 0x136   : > { %v1710_v30 = vpack.c.bf16 %v1650_v36, %v1649_v32  ;;  %1323 = vmatprep.mubr.bf16.mxu0 %v10953_v37  ;;  %v1076_v39 = vadd.f32 %v1075_v34, %v8519_v57  ;;  %v7309_v49 = vpop.f32.mrf.mxu1  ;;  %v1421_v36 = vadd.f32 %v1420_v40, %v8531_v59 }
 0x137   : > { %v1077_v61 = vpop.f32.mrf.mxu0  ;;  %v1432_v50 = vadd.f32 %v7309_v49, %v8531_v59 }
 0x138   : > { %v8591_v44 = vadd.f32 %v1077_v61, %v8533_v56  ;;  %7383 = vmatmul.mubr.bf16.gmra.mxu1 %v1710_v30  ;;  %v1423_v32 = vpop.f32.mrf.mxu1  ;;  %v1651_v61 = vmax.f32 %v1076_v39, 0.0 }
 0x139   : > { %v1079_v51 = vpop.f32.mrf.mxu0  ;;  %v6724_v47 = vpack.c.bf16 %v1432_v50, %v1429_v46  ;;  %v1424_v34 = vadd.f32 %v1423_v32, %v8531_v59 }
 0x13a   : > { %v8596_v0 = vmax.f32 %v3001_v55, %v8591_v44  ;;  %v1080_v52 = vadd.f32 %v1079_v51, %v8519_v57  ;;  %v7312_v30 = vpop.f32.mrf.mxu1 }
 0x13b   : > { %v8599_v35 = vpop.f32.mrf.mxu0  ;;  %6891 = vst [vmem:[#allocation8 + $0x28] sm:$0xff] %v6724_v47   ;;  %v6719_v40 = vpack.c.bf16 %v1424_v34, %v1421_v36  ;;  %v1445_v28 = vadd.f32 %v7312_v30, %v8531_v59 }
 0x13c   : > { %v1652_v42 = vmax.f32 %v1080_v52, 0.0  ;;  %v1436_v55 = vpop.f32.mrf.mxu1 }
 0x13d   : > { %v1085_v29 = vpop.f32.mrf.mxu0  ;;  %5997 = vmatmul.mubr.msk.bf16.gmra.mxu0 %vm904_vm1, %v8479_v53  ;;  %6890 = vst [vmem:[#allocation8 + $0x20] sm:$0xff] %v6719_v40   ;;  %v1437_v53 = vadd.f32 %v1436_v55, %v8531_v59 }
 0x13e   : > { %v1711_v49 = vpack.c.bf16 %v1652_v42, %v1651_v61  ;;  %1333 = vmatprep.mubr.bf16.mxu0 %v10953_v37  ;;  %v1086_v46 = vadd.f32 %v1085_v29, %v8519_v57  ;;  %v7313_v50 = vpop.f32.mrf.mxu1 }
 0x13f   : > { %v1087_v51 = vpop.f32.mrf.mxu0  ;;  %v1448_v36 = vadd.f32 %v7313_v50, %v8531_v59 }
 0x140   : > { %v8608_v39 = vadd.f32 %v1087_v51, %v8533_v56  ;;  %7386 = vmatprep.mubr.bf16.mxu1 %v1711_v49  ;;  %v1439_v47 = vpop.f32.mrf.mxu1  ;;  %v1653_v30 = vmax.f32 %v1086_v46, 0.0 }
 0x141   : > { %v1089_v52 = vpop.f32.mrf.mxu0  ;;  %v6734_v61 = vpack.c.bf16 %v1448_v36, %v1445_v28  ;;  %v1440_v29 = vadd.f32 %v1439_v47, %v8531_v59 }
 0x142   : > { %v8613_v42 = vmax.f32 %v3003_v62, %v8608_v39  ;;  %v1090_v32 = vadd.f32 %v1089_v52, %v8519_v57  ;;  %v7316_v49 = vpop.f32.mrf.mxu1 }
 0x143   : > { %v8616_v34 = vpop.f32.mrf.mxu0  ;;  %6893 = vst [vmem:[#allocation8 + $0x38] sm:$0xff] %v6734_v61   ;;  %v6729_v55 = vpack.c.bf16 %v1440_v29, %v1437_v53  ;;  %v1461_v27 = vadd.f32 %v7316_v49, %v8531_v59 }
 0x144   : > { %v1654_v40 = vmax.f32 %v1090_v32, 0.0  ;;  %v1452_v62 = vpop.f32.mrf.mxu1 }
 0x145   : > { %v1095_v51 = vpop.f32.mrf.mxu0  ;;  %5998 = vmatmul.mubr.msk.bf16.gmra.mxu0 %vm904_vm1, %v8484_v48  ;;  %6892 = vst [vmem:[#allocation8 + $0x30] sm:$0xff] %v6729_v55   ;;  %v1453_v48 = vadd.f32 %v1452_v62, %v8531_v59 }
 0x146   : > { %v1712_v50 = vpack.c.bf16 %v1654_v40, %v1653_v30  ;;  %1343 = vmatprep.mubr.bf16.mxu0 %v10953_v37  ;;  %v1096_v28 = vadd.f32 %v1095_v51, %v8519_v57  ;;  %v7317_v36 = vpop.f32.mrf.mxu1 }
 0x147   : > { %v1097_v52 = vpop.f32.mrf.mxu0  ;;  %v1464_v53 = vadd.f32 %v7317_v36, %v8531_v59 }
 0x148   : > { %v8625_v46 = vadd.f32 %v1097_v52, %v8533_v56  ;;  %7387 = vmatmul.mubr.bf16.gmra.mxu1 %v1712_v50  ;;  %v1455_v29 = vpop.f32.mrf.mxu1  ;;  %v1655_v51 = vmax.f32 %v1096_v28, 0.0 }
 0x149   : > { %v1099_v32 = vpop.f32.mrf.mxu0  ;;  %v6744_v40 = vpack.c.bf16 %v1464_v53, %v1461_v27  ;;  %v1456_v49 = vadd.f32 %v1455_v29, %v8531_v59 }
 0x14a   : > { %v3009_v47 = vmax.f32 %v8596_v0, %v8625_v46  ;;  %v1100_v61 = vadd.f32 %v1099_v32, %v8519_v57  ;;  %v7320_v50 = vpop.f32.mrf.mxu1 }
 0x14b   : > { %v8632_v30 = vpop.f32.mrf.mxu0  ;;  %6895 = vst [vmem:[#allocation8 + $0x48] sm:$0xff] %v6744_v40   ;;  %v6739_v62 = vpack.c.bf16 %v1456_v49, %v1453_v48  ;;  %v1477_v32 = vadd.f32 %v7320_v50, %v8531_v59 }
 0x14c   : > { %v1656_v55 = vmax.f32 %v1100_v61, 0.0  ;;  %v1468_v37 = vpop.f32.mrf.mxu1 }
 0x14d   : > { %v1105_v52 = vpop.f32.mrf.mxu0  ;;  %5999 = vmatmul.mubr.msk.bf16.gmra.mxu0 %vm904_vm1, %v8495_v60  ;;  %6894 = vst [vmem:[#allocation8 + $0x40] sm:$0xff] %v6739_v62   ;;  %v1469_v61 = vadd.f32 %v1468_v37, %v8531_v59 }
 0x14e   : > { %v1713_v36 = vpack.c.bf16 %v1656_v55, %v1655_v51  ;;  %v1106_v26 = vadd.f32 %v1105_v52, %v8519_v57  ;;  %v7321_v28 = vpop.f32.mrf.mxu1 }
 0x14f   : > { %v1107_v0 = vpop.f32.mrf.mxu0  ;;  %v1480_v60 = vadd.f32 %v7321_v28, %v8531_v59 }
 0x150   : > { %v8640_v27 = vadd.f32 %v1107_v0, %v8533_v56  ;;  %7390 = vmatprep.mubr.bf16.mxu1 %v1713_v36  ;;  %v1471_v40 = vpop.f32.mrf.mxu1  ;;  %v1657_v50 = vmax.f32 %v1106_v26, 0.0 }
 0x151   : > { %v1109_v53 = vpop.f32.mrf.mxu0  ;;  %v6754_v51 = vpack.c.bf16 %v1480_v60, %v1477_v32  ;;  %v1472_v55 = vadd.f32 %v1471_v40, %v8531_v59 }
 0x152   : > { %10954 = vst [vmem:[#allocation80_spill] sm:$0xff] %v8640_v27  ;;  %v3011_v48 = vmax.f32 %v8613_v42, %v8640_v27  ;;  %v1110_v29 = vadd.f32 %v1109_v53, %v8519_v57  ;;  %v7324_v62 = vpop.f32.mrf.mxu1 }
 0x153   : > { %v8647_v49 = vpop.f32.mrf.mxu0  ;;  %6897 = vst [vmem:[#allocation8 + $0x58] sm:$0xff] %v6754_v51   ;;  %v6749_v0 = vpack.c.bf16 %v1472_v55, %v1469_v61  ;;  %v1493_v42 = vadd.f32 %v7324_v62, %v8531_v59 }
 0x154   : > { %v1658_v52 = vmax.f32 %v1110_v29, 0.0  ;;  %v1484_v25 = vpop.f32.mrf.mxu1 }
 0x155   : > { %v1115_v36 = vpop.f32.mrf.mxu0  ;;  %6896 = vst [vmem:[#allocation8 + $0x50] sm:$0xff] %v6749_v0   ;;  %v1485_v26 = vadd.f32 %v1484_v25, %v8531_v59 }
 0x156   : > { %v1714_v37 = vpack.c.bf16 %v1658_v52, %v1657_v50  ;;  %v1116_v53 = vadd.f32 %v1115_v36, %v8519_v57  ;;  %v7325_v32 = vpop.f32.mrf.mxu1 }
 0x157   : > { %v1117_v28 = vpop.f32.mrf.mxu0  ;;  %v1496_v29 = vadd.f32 %v7325_v32, %v8531_v59 }
 0x158   : > { %v8653_v24 = vadd.f32 %v1117_v28, %v8533_v56  ;;  %7391 = vmatmul.mubr.bf16.gmra.mxu1 %v1714_v37  ;;  %v1487_v51 = vpop.f32.mrf.mxu1  ;;  %v1659_v62 = vmax.f32 %v1116_v53, 0.0 }
 0x159   : > { %v1119_v60 = vpop.f32.mrf.mxu0  ;;  %v6764_v50 = vpack.c.bf16 %v1496_v29, %v1493_v42  ;;  %v1488_v52 = vadd.f32 %v1487_v51, %v8531_v59 }
 0x15a   : > { %10955 = vst [vmem:[#allocation81_spill] sm:$0xff] %v8653_v24  ;;  %v8658_v61 = vmax.f32 %v3009_v47, %v8653_v24  ;;  %v1120_v40 = vadd.f32 %v1119_v60, %v8519_v57  ;;  %v7328_v0 = vpop.f32.mrf.mxu1 }
 0x15b   : > { %v8661_v55 = vpop.f32.mrf.mxu0  ;;  %6899 = vst [vmem:[#allocation8 + $0x68] sm:$0xff] %v6764_v50   ;;  %v6759_v28 = vpack.c.bf16 %v1488_v52, %v1485_v26  ;;  %v1509_v47 = vadd.f32 %v7328_v0, %v8531_v59 }
 0x15c   : > { %v1660_v36 = vmax.f32 %v1120_v40, 0.0  ;;  %v1500_v23 = vpop.f32.mrf.mxu1 }
 0x15d   : > { %v1125_v37 = vpop.f32.mrf.mxu0  ;;  %6898 = vst [vmem:[#allocation8 + $0x60] sm:$0xff] %v6759_v28   ;;  %v1501_v53 = vadd.f32 %v1500_v23, %v8531_v59 }
 0x15e   : > { %v1715_v25 = vpack.c.bf16 %v1660_v36, %v1659_v62  ;;  %v1126_v60 = vadd.f32 %v1125_v37, %v8519_v57  ;;  %v7329_v42 = vpop.f32.mrf.mxu1 }
 0x15f   : > { %v1127_v32 = vpop.f32.mrf.mxu0  ;;  %v1512_v40 = vadd.f32 %v7329_v42, %v8531_v59 }
 0x160   : > { %v8667_v22 = vadd.f32 %v1127_v32, %v8533_v56  ;;  %7394 = vmatprep.mubr.bf16.mxu1 %v1715_v25  ;;  %v1503_v50 = vpop.f32.mrf.mxu1  ;;  %v1661_v0 = vmax.f32 %v1126_v60, 0.0 }
 0x161   : > { %v1129_v29 = vpop.f32.mrf.mxu0  ;;  %v6774_v62 = vpack.c.bf16 %v1512_v40, %v1509_v47  ;;  %v1504_v36 = vadd.f32 %v1503_v50, %v8531_v59 }
 0x162   : > { %10956 = vst [vmem:[#allocation82_spill] sm:$0xff] %v8667_v22  ;;  %v8672_v26 = vmax.f32 %v3011_v48, %v8667_v22  ;;  %v1130_v51 = vadd.f32 %v1129_v29, %v8519_v57  ;;  %v8678_v28 = vpop.f32.mrf.mxu1 }
 0x163   : > { %v8675_v52 = vpop.f32.mrf.mxu0  ;;  %6901 = vst [vmem:[#allocation8 + $0x78] sm:$0xff] %v6774_v62   ;;  %v6769_v23 = vpack.c.bf16 %v1504_v36, %v1501_v53 }
 0x164   : > { %v1662_v37 = vmax.f32 %v1130_v51, 0.0  ;;  %v8680_v42 = vpop.f32.mrf.mxu1 }
 0x165   : > { %v1135_v25 = vpop.f32.mrf.mxu0  ;;  %6900 = vst [vmem:[#allocation8 + $0x70] sm:$0xff] %v6769_v23  }
 0x166   : > { %v1716_v32 = vpack.c.bf16 %v1662_v37, %v1661_v0  ;;  %v1136_v29 = vadd.f32 %v1135_v25, %v8519_v57  ;;  %v8686_v47 = vpop.f32.mrf.mxu1 }
 0x167   : > { %v1137_v48 = vpop.f32.mrf.mxu0 }
 0x168   : > { %v8684_v21 = vadd.f32 %v1137_v48, %v8533_v56  ;;  %7395 = vmatmul.mubr.bf16.gmra.mxu1 %v1716_v32  ;;  %v8691_v53 = vpop.f32.mrf.mxu1  ;;  %v1663_v62 = vmax.f32 %v1136_v29, 0.0 }
 0x169   : > { %v1139_v60 = vpop.f32.mrf.mxu0  ;;  %v1520_v27 = vadd.f32 %v8691_v53, %v8531_v59 }
 0x16a   : > { %10957 = vst [vmem:[#allocation83_spill] sm:$0xff] %v8684_v21  ;;  %v3017_v40 = vmax.f32 %v8658_v61, %v8684_v21  ;;  %v1140_v51 = vadd.f32 %v1139_v60, %v8519_v57  ;;  %v8693_v0 = vpop.f32.mrf.mxu1  ;;  %v8705_v60 = vadd.f32 %v8599_v35, %v8533_v56  ;;  %v10960_v35 = vmax.f32 %v8553_v43, %v8556_v33 }
 0x16b   : > { %v1141_v50 = vpop.f32.mrf.mxu0 }
 0x16c   : > { %v1664_v36 = vmax.f32 %v1140_v51, 0.0  ;;  %v8695_v23 = vpop.f32.mrf.mxu1  ;;  %v3006_v17 = vmax.f32 %v10960_v35, %v8705_v60 }
 0x16d   : > { %v1145_v37 = vpop.f32.mrf.mxu0 }
 0x16e   : > { %v1717_v25 = vpack.c.bf16 %v1664_v36, %v1663_v62  ;;  %v1146_v48 = vadd.f32 %v1145_v37, %v8519_v57  ;;  %v8701_v61 = vpop.f32.mrf.mxu1  ;;  %v8714_v37 = vadd.f32 %v8632_v30, %v8533_v56 }
 0x16f   : > { %v1147_v32 = vpop.f32.mrf.mxu0 }
 0x170   : > { %v8699_v20 = vadd.f32 %v1147_v32, %v8533_v56  ;;  %7398 = vmatprep.mubr.bf16.mxu1 %v1717_v25  ;;  %v8710_v36 = vpop.f32.mrf.mxu1  ;;  %10959 = vst [vmem:[#allocation85_spill] sm:$0xff] %v8714_v37  ;;  %v1665_v25 = vmax.f32 %v1146_v48, 0.0  ;;  %v3010_v30 = vmax.f32 %v3006_v17, %v8714_v37  ;;  %v8732_v48 = vadd.f32 %v1141_v50, %v8533_v56 }
 0x171   : > { %v1149_v29 = vpop.f32.mrf.mxu0 }
 0x172   : > { %10958 = vst [vmem:[#allocation84_spill] sm:$0xff] %v8699_v20  ;;  %v3019_v51 = vmax.f32 %v8672_v26, %v8699_v20  ;;  %v1150_v62 = vadd.f32 %v1149_v29, %v8519_v57  ;;  %v8718_v18 = vpop.f32.mrf.mxu1  ;;  %v8726_v26 = vadd.f32 %v8661_v55, %v8533_v56  ;;  %10962 = vst [vmem:[#allocation87_spill] sm:$0xff] %v8732_v48 }
 0x173   : > { %v8716_v32 = vpop.f32.mrf.mxu0 }
 0x174   : > { %v1666_v19 = vmax.f32 %v1150_v62, 0.0  ;;  %10961 = vst [vmem:[#allocation86_spill] sm:$0xff] %v8726_v26  ;;  %v8728_v15 = vpop.f32.mrf.mxu1  ;;  %v3014_v55 = vmax.f32 %v3010_v30, %v8726_v26  ;;  %v7989_v30 = vmov -3e+38  }
 0x175   : > { %v1155_v29 = vpop.f32.mrf.mxu0  ;;  %566 = vst [vmem:[#allocation2] sm:$0x1] %v7989_v30 }
 0x176   : > { %v1718_v16 = vpack.c.bf16 %v1666_v19, %v1665_v25  ;;  %v1156_v14 = vadd.f32 %v1155_v29, %v8519_v57  ;;  %v8738_v35 = vpop.f32.mrf.mxu1  ;;  %v3018_v50 = vmax.f32 %v3014_v55, %v8732_v48 }
 0x177   : > { %v1157_v62 = vpop.f32.mrf.mxu0 }
 0x178   : > { %v8736_v13 = vadd.f32 %v1157_v62, %v8533_v56  ;;  %7399 = vmatmul.mubr.bf16.gmra.mxu1 %v1718_v16  ;;  %v8745_v25 = vpop.f32.mrf.mxu1  ;;  %v1667_v29 = vmax.f32 %v1156_v14, 0.0 }
 0x179   : > { %v1159_v12 = vpop.f32.mrf.mxu0 }
 0x17a   : > { %10963 = vst [vmem:[#allocation88_spill] sm:$0xff] %v8736_v13  ;;  %v8742_v19 = vmax.f32 %v3017_v40, %v8736_v13  ;;  %v1160_v17 = vadd.f32 %v1159_v12, %v8519_v57  ;;  %v8751_v16 = vpop.f32.mrf.mxu1 }
 0x17b   : > { %v1161_v11 = vpop.f32.mrf.mxu0 }
 0x17c   : > { %v1668_v10 = vmax.f32 %v1160_v17, 0.0  ;;  %v8749_v62 = vadd.f32 %v1161_v11, %v8533_v56  ;;  %v8756_v12 = vpop.f32.mrf.mxu1 }
 0x17d   : > { %v1165_v9 = vpop.f32.mrf.mxu0 }
 0x17e   : > { %10964 = vst [vmem:[#allocation89_spill] sm:$0xff] %v8749_v62  ;;  %v1719_v8 = vpack.c.bf16 %v1668_v10, %v1667_v29  ;;  %v8754_v40 = vmax.f32 %v3018_v50, %v8749_v62  ;;  %v1166_v55 = vadd.f32 %v1165_v9, %v8519_v57  ;;  %v8762_v11 = vpop.f32.mrf.mxu1 }
 0x17f   : > { %v1167_v7 = vpop.f32.mrf.mxu0 }
 0x180   : > { %v8760_v14 = vadd.f32 %v1167_v7, %v8533_v56  ;;  %7402 = vmatprep.mubr.bf16.mxu1 %v1719_v8  ;;  %v8768_v29 = vpop.f32.mrf.mxu1  ;;  %v1669_v30 = vmax.f32 %v1166_v55, 0.0 }
 0x181   : > { %v1169_v17 = vpop.f32.mrf.mxu0 }
 0x182   : > { %10965 = vst [vmem:[#allocation90_spill] sm:$0xff] %v8760_v14  ;;  %v8765_v6 = vmax.f32 %v3019_v51, %v8760_v14  ;;  %v1170_v10 = vadd.f32 %v1169_v17, %v8519_v57  ;;  %v8770_v4 = vpop.f32.mrf.mxu1  ;;  %v8779_v17 = vadd.f32 %v8616_v34, %v8533_v56  ;;  %v10967_v34 = vmax.f32 %v8578_v58, %v8581_v31 }
 0x183   : > { %v1171_v50 = vpop.f32.mrf.mxu0 }
 0x184   : > { %v1670_v5 = vmax.f32 %v1170_v10, 0.0  ;;  %v8772_v7 = vpop.f32.mrf.mxu1  ;;  %v3008_v13 = vmax.f32 %v10967_v34, %v8779_v17 }
 0x185   : > { %v1175_v9 = vpop.f32.mrf.mxu0 }
 0x186   : > { %v1720_v3 = vpack.c.bf16 %v1670_v5, %v1669_v30  ;;  %v1176_v2 = vadd.f32 %v1175_v9, %v8519_v57  ;;  %v8775_v1 = vpop.f32.mrf.mxu1  ;;  %v8788_v5 = vadd.f32 %v8647_v49, %v8533_v56 }
 0x187   : > { %v1177_v8 = vpop.f32.mrf.mxu0 }
 0x188   : > { %7403 = vmatmul.mubr.bf16.gmra.mxu1 %v1720_v3  ;;  %v8782_v10 = vpop.f32.mrf.mxu1  ;;  %10966 = vst [vmem:[#allocation91_spill] sm:$0xff] %v8788_v5  ;;  %v1671_v30 = vmax.f32 %v1176_v2, 0.0  ;;  %v3012_v49 = vmax.f32 %v3008_v13, %v8788_v5  ;;  %v8805_v2 = vadd.f32 %v8716_v32, %v8533_v56  ;;  %v1525_v32 = vadd.f32 %v8678_v28, %v8531_v59 }
 0x189   : > { %v1179_v51 = vpop.f32.mrf.mxu0  ;;  %v1541_v28 = vadd.f32 %v8693_v0, %v8531_v59  ;;  %v1536_v0 = vadd.f32 %v8710_v36, %v8531_v59  ;;  %v1560_v36 = vadd.f32 %v8738_v35, %v8531_v59 }
 0x18a   : > { %v1180_v55 = vadd.f32 %v1179_v51, %v8519_v57  ;;  %v8790_v3 = vpop.f32.mrf.mxu1  ;;  %v8798_v51 = vadd.f32 %v8675_v52, %v8533_v56  ;;  %10969 = vst [vmem:[#allocation93_spill] sm:$0xff] %v8805_v2  ;;  %v8812_v52 = vadd.f32 %v1171_v50, %v8533_v56 }
 0x18b   : > { %v8784_v14 = vpop.f32.mrf.mxu0 }
 0x18c   : > { %v1672_v9 = vmax.f32 %v1180_v55, 0.0  ;;  %10968 = vst [vmem:[#allocation92_spill] sm:$0xff] %v8798_v51  ;;  %v8800_v48 = vpop.f32.mrf.mxu1  ;;  %v3016_v26 = vmax.f32 %v3012_v49, %v8798_v51  ;;  %10970 = vst [vmem:[#allocation94_spill] sm:$0xff] %v8812_v52 }
 0x18d   : > { %v1185_v62 = vpop.f32.mrf.mxu0 }
 0x18e   : > { %v1721_v20 = vpack.c.bf16 %v1672_v9, %v1671_v30  ;;  %v1186_v55 = vadd.f32 %v1185_v62, %v8519_v57  ;;  %v8808_v22 = vpop.f32.mrf.mxu1  ;;  %v1517_v62 = vadd.f32 %v8680_v42, %v8531_v59  ;;  %v1533_v42 = vadd.f32 %v8695_v23, %v8531_v59 }
 0x18f   : > { %v1187_v21 = vpop.f32.mrf.mxu0  ;;  %v1557_v23 = vadd.f32 %v8718_v18, %v8531_v59  ;;  %v1552_v18 = vadd.f32 %v8745_v25, %v8531_v59 }
 0x190   : > { %7406 = vmatprep.mubr.bf16.mxu1 %v1721_v20  ;;  %v8815_v9 = vpop.f32.mrf.mxu1  ;;  %v3020_v20 = vmax.f32 %v3016_v26, %v8805_v2  ;;  %v1673_v24 = vmax.f32 %v1186_v55, 0.0  ;;  %v8823_v5 = vadd.f32 %v1187_v21, %v8533_v56  ;;  %v8839_v21 = vadd.f32 %v1177_v8, %v8533_v56 }
 0x191   : > { %v1189_v34 = vpop.f32.mrf.mxu0  ;;  %v6779_v53 = vpack.c.bf16 %v1520_v27, %v1517_v62  ;;  %v6789_v27 = vpack.c.bf16 %v1536_v0, %v1533_v42  ;;  %v6804_v25 = vpack.c.bf16 %v1560_v36, %v1557_v23 }
 0x192   : > { %v1190_v30 = vadd.f32 %v1189_v34, %v8519_v57  ;;  %v8825_v50 = vpop.f32.mrf.mxu1  ;;  %v1528_v34 = vadd.f32 %v8686_v47, %v8531_v59  ;;  %v8836_v26 = vmax.f32 %v3020_v20, %v8812_v52  ;;  %v3027_v20 = vmax.f32 %v8765_v6, %v8823_v5 }
 0x193   : > { %v1191_v13 = vpop.f32.mrf.mxu0  ;;  %6902 = vst [vmem:[#allocation8 + $0x80] sm:$0xff] %v6779_v53   ;;  %v1573_v6 = vadd.f32 %v8751_v16, %v8531_v59  ;;  %6904 = vst [vmem:[#allocation8 + $0x90] sm:$0xff] %v6789_v27   ;;  %v1568_v16 = vadd.f32 %v8768_v29, %v8531_v59  ;;  %v1592_v53 = vadd.f32 %v8775_v1, %v8531_v59 }
 0x194   : > { %v1674_v49 = vmax.f32 %v1190_v30, 0.0  ;;  %v1544_v30 = vadd.f32 %v8701_v61, %v8531_v59  ;;  %v1612_v47 = vpop.f32.mrf.mxu1  ;;  %v6784_v37 = vpack.c.bf16 %v1528_v34, %v1525_v32  ;;  %v1549_v61 = vadd.f32 %v8728_v15, %v8531_v59  ;;  %6907 = vst [vmem:[#allocation8 + $0xa8] sm:$0xff] %v6804_v25  }
 0x195   : > { %v1195_v51 = vpop.f32.mrf.mxu0  ;;  %v1565_v15 = vadd.f32 %v8756_v12, %v8531_v59  ;;  %v1581_v12 = vadd.f32 %v8772_v7, %v8531_v59  ;;  %v1584_v29 = vadd.f32 %v8782_v10, %v8531_v59  ;;  %v1608_v10 = vadd.f32 %v8808_v22, %v8531_v59 }
 0x196   : > { %v1722_v55 = vpack.c.bf16 %v1674_v49, %v1673_v24  ;;  %v1196_v8 = vadd.f32 %v1195_v51, %v8519_v57  ;;  %v6794_v24 = vpack.c.bf16 %v1544_v30, %v1541_v28  ;;  %v7357_v49 = vpop.f32.mrf.mxu1  ;;  %6903 = vst [vmem:[#allocation8 + $0x88] sm:$0xff] %v6784_v37   ;;  %v8859_v51 = vadd.f32 %v1191_v13, %v8533_v56 }
 0x197   : > { %v1197_v2 = vpop.f32.mrf.mxu0  ;;  %v1576_v37 = vadd.f32 %v8762_v11, %v8531_v59  ;;  %v6799_v34 = vpack.c.bf16 %v1552_v18, %v1549_v61  ;;  %v1589_v13 = vadd.f32 %v8770_v4, %v8531_v59  ;;  %v6809_v30 = vpack.c.bf16 %v1568_v16, %v1565_v15 }
 0x198   : > { %7407 = vmatmul.mubr.bf16.gmra.mxu1 %v1722_v55  ;;  %6905 = vst [vmem:[#allocation8 + $0x98] sm:$0xff] %v6794_v24   ;;  %v1615_v62 = vpop.f32.mrf.mxu1  ;;  %v1605_v4 = vadd.f32 %v8790_v3, %v8531_v59  ;;  %v3028_v0 = vmax.f32 %v8836_v26, %v8859_v51  ;;  %v8883_v23 = vadd.f32 %v1197_v2, %v8533_v56 }
 0x199   : > { %v1199_v52 = vpop.f32.mrf.mxu0  ;;  %v6814_v42 = vpack.c.bf16 %v1576_v37, %v1573_v6  ;;  %6906 = vst [vmem:[#allocation8 + $0xa0] sm:$0xff] %v6799_v34   ;;  %6908 = vst [vmem:[#allocation8 + $0xb0] sm:$0xff] %v6809_v30   ;;  %v6824_v1 = vpack.c.bf16 %v1592_v53, %v1589_v13  ;;  %v6819_v27 = vpack.c.bf16 %v1584_v29, %v1581_v12 }
 0x19a   : > { %v1200_v32 = vadd.f32 %v1199_v52, %v8519_v57  ;;  %v1675_v52 = vmax.f32 %v1196_v8, 0.0  ;;  %v7360_v55 = vpop.f32.mrf.mxu1  ;;  %v1597_v8 = vadd.f32 %v8800_v48, %v8531_v59  ;;  %v1600_v3 = vadd.f32 %v8815_v9, %v8531_v59 }
 0x19b   : > { %v8866_v35 = vpop.f32.mrf.mxu0  ;;  %6909 = vst [vmem:[#allocation8 + $0xb8] sm:$0xff] %v6814_v42   ;;  %v1621_v48 = vadd.f32 %v8825_v50, %v8531_v59  ;;  %v1613_v36 = vadd.f32 %v1612_v47, %v8531_v59  ;;  %6911 = vst [vmem:[#allocation8 + $0xc8] sm:$0xff] %v6824_v1   ;;  %v1624_v15 = vadd.f32 %v7357_v49, %v8531_v59 }
 0x19c   : > { %v1676_v28 = vmax.f32 %v1200_v32, 0.0  ;;  %v1628_v24 = vpop.f32.mrf.mxu1  ;;  %6910 = vst [vmem:[#allocation8 + $0xc0] sm:$0xff] %v6819_v27   ;;  %v6834_v32 = vpack.c.bf16 %v1608_v10, %v1605_v4  ;;  %v6829_v22 = vpack.c.bf16 %v1600_v3, %v1597_v8  ;;  %v1616_v9 = vadd.f32 %v1615_v62, %v8531_v59 }
 0x19d   : > { %v1205_v11 = vpop.f32.mrf.mxu0  ;;  %v1637_v34 = vadd.f32 %v7360_v55, %v8531_v59  ;;  %v1629_v50 = vadd.f32 %v1628_v24, %v8531_v59  ;;  %v6844_v13 = vpack.c.bf16 %v1624_v15, %v1621_v48  ;;  %v3025_v53 = vmax.f32 %v8742_v19, %v8839_v21 }
 0x19e   : > { %v1723_v7 = vpack.c.bf16 %v1676_v28, %v1675_v52  ;;  %v1206_v26 = vadd.f32 %v1205_v11, %v8519_v57  ;;  %v7361_v18 = vpop.f32.mrf.mxu1  ;;  %6913 = vst [vmem:[#allocation8 + $0xd8] sm:$0xff] %v6834_v32   ;;  %6912 = vst [vmem:[#allocation8 + $0xd0] sm:$0xff] %v6829_v22   ;;  %v6839_v52 = vpack.c.bf16 %v1616_v9, %v1613_v36 }
 0x19f   : > { %v1207_v61 = vpop.f32.mrf.mxu0  ;;  %v1640_v28 = vadd.f32 %v7361_v18, %v8531_v59  ;;  %6915 = vst [vmem:[#allocation8 + $0xe8] sm:$0xff] %v6844_v13   ;;  %v3029_v24 = vmax.f32 %v3025_v53, %v8883_v23  ;;  %v8922_v19 = vadd.f32 %v8866_v35, %v8533_v56 }
 0x1a0   : > { %v8893_v2 = vadd.f32 %v1207_v61, %v8533_v56  ;;  %7410 = vmatprep.mubr.bf16.mxu1 %v1723_v7  ;;  %v1631_v16 = vpop.f32.mrf.mxu1  ;;  %v1677_v42 = vmax.f32 %v1206_v26, 0.0  ;;  %6914 = vst [vmem:[#allocation8 + $0xe0] sm:$0xff] %v6839_v52  }
 0x1a1   : > { %v1209_v6 = vpop.f32.mrf.mxu0  ;;  %v1632_v49 = vadd.f32 %v1631_v16, %v8531_v59  ;;  %v6854_v55 = vpack.c.bf16 %v1640_v28, %v1637_v34  ;;  %v8914_v59 = vadd.f32 %v8784_v14, %v8533_v56 }
 0x1a2   : > { %v3031_v37 = vmax.f32 %v3027_v20, %v8893_v2  ;;  %v1210_v25 = vadd.f32 %v1209_v6, %v8519_v57 }
 0x1a3   : > { %v1211_v47 = vpop.f32.mrf.mxu0  ;;  %v6849_v30 = vpack.c.bf16 %v1632_v49, %v1629_v50  ;;  %6917 = vst [vmem:[#allocation8 + $0xf8] sm:$0xff] %v6854_v55   ;;  %v3026_v36 = vmax.f32 %v8754_v40, %v8914_v59 }
 0x1a4   : > { %v3035_v62 = vmax.f32 %v3031_v37, -1e+30  ;;  %v1678_v12 = vmax.f32 %v1210_v25, 0.0  ;;  %v8907_v20 = vadd.f32 %v1211_v47, %v8533_v56 }
 0x1a5   : > { %v1215_v11 = vpop.f32.mrf.mxu0  ;;  %6916 = vst [vmem:[#allocation8 + $0xf0] sm:$0xff] %v6849_v30   ;;  %v3030_v25 = vmax.f32 %v3026_v36, %v8922_v19 }
 0x1a6   : > { %v3039_v29 = vmax.f32 %v3035_v62, -1e+30  ;;  %v1724_v4 = vpack.c.bf16 %v1678_v12, %v1677_v42  ;;  %v3032_v7 = vmax.f32 %v3028_v0, %v8907_v20  ;;  %v1216_v0 = vadd.f32 %v1215_v11, %v8519_v57 }
 0x1a7   : > { %v1217_v8 = vpop.f32.mrf.mxu0 }
 0x1a8   : > { %v3043_v61 = vmax.f32 %v3039_v29, -1e+30  ;;  %v3036_v1 = vmax.f32 %v3032_v7, -1e+30  ;;  %v8918_v27 = vadd.f32 %v1217_v8, %v8533_v56  ;;  %7411 = vmatmul.mubr.bf16.gmra.mxu1 %v1724_v4  ;;  %v1679_v35 = vmax.f32 %v1216_v0, 0.0 }
 0x1a9   : > { %v1219_v10 = vpop.f32.mrf.mxu0 }
 0x1aa   : > { %v3047_v14 = vmax.f32 %v3043_v61, -1e+30  ;;  %v3040_v3 = vmax.f32 %v3036_v1, -1e+30  ;;  %v3033_v26 = vmax.f32 %v3029_v24, %v8918_v27  ;;  %v1220_v48 = vadd.f32 %v1219_v10, %v8519_v57 }
 0x1ab   : > { %v1221_v18 = vpop.f32.mrf.mxu0 }
 0x1ac   : > { %v3051_v6 = vmax.f32 %v3047_v14, -1e+30  ;;  %v3044_v32 = vmax.f32 %v3040_v3, -1e+30  ;;  %v3037_v22 = vmax.f32 %v3033_v26, -1e+30  ;;  %v1222_v15 = vadd.f32 %v1221_v18, %v8533_v56 }
 0x1ad   : > { %v1680_v9 = vmax.f32 %v1220_v48, 0.0  ;;  %v1225_v37 = vpop.f32.mrf.mxu0 }
 0x1ae   : > { %v3048_v34 = vmax.f32 %v3044_v32, -1e+30  ;;  %v3041_v50 = vmax.f32 %v3037_v22, -1e+30  ;;  %v3055_v16 = vmax.f32 %v3051_v6, -1e+30  ;;  %v1226_v56 = vadd.f32 %v1225_v37, %v8519_v57 }
 0x1af   : > { %v1725_v47 = vpack.c.bf16 %v1680_v9, %v1679_v35  ;;  %v8933_v13 = vsel %vm10871_vm0, %v1222_v15, -1e+30  ;;  %v1227_v40 = vpop.f32.mrf.mxu0 }
 0x1b0   : > { %v3052_v52 = vmax.f32 %v3048_v34, -1e+30  ;;  %v3045_v28 = vmax.f32 %v3041_v50, -1e+30  ;;  %v3034_v49 = vmax.f32 %v3030_v25, %v8933_v13  ;;  %v3059_v55 = vmax.f32 %v3055_v16, -1e+30 }
 0x1b1   : > { %7414 = vmatprep.mubr.bf16.mxu1 %v1725_v47  ;;  %v1229_v42 = vpop.f32.mrf.mxu0  ;;  %v1681_v7 = vmax.f32 %v1226_v56, 0.0 }
 0x1b2   : > { %v3056_v62 = vmax.f32 %v3052_v52, -1e+30  ;;  %v3038_v12 = vmax.f32 %v3034_v49, -1e+30  ;;  %v1230_v11 = vadd.f32 %v1229_v42, %v8519_v57  ;;  %v3049_v29 = vmax.f32 %v3045_v28, -1e+30 }
 0x1b3   : > { %v1231_v30 = vpop.f32.mrf.mxu0 }
 0x1b4   : > { %v3060_v53 = vmax.f32 %v3056_v62, -1e+30  ;;  %v3042_v4 = vmax.f32 %v3038_v12, -1e+30  ;;  %v1682_v8 = vmax.f32 %v1230_v11, 0.0 }
 0x1b5   : > { %v1235_v24 = vpop.f32.mrf.mxu0  ;;  %v3053_v14 = vmax.f32 %v3049_v29, -1e+30 }
 0x1b6   : > { %v3062_v61 = vmax.f32 %v3059_v55, %v3060_v53  ;;  %v3046_v1 = vmax.f32 %v3042_v4, -1e+30  ;;  %v1726_v0 = vpack.c.bf16 %v1682_v8, %v1681_v7  ;;  %v1236_v26 = vadd.f32 %v1235_v24, %v8519_v57 }
 0x1b7   : > { %v1237_v10 = vpop.f32.mrf.mxu0  ;;  %v3057_v32 = vmax.f32 %v3053_v14, -1e+30  ;;  %v10975_v14 = vld [vmem:[#allocation85_spill] sm:$0xff] }
 0x1b8   : > { %v3050_v3 = vmax.f32 %v3046_v1, -1e+30  ;;  %7415 = vmatmul.mubr.bf16.gmra.mxu1 %v1726_v0  ;;  %v1683_v15 = vmax.f32 %v1236_v26, 0.0  ;;  %v10977_v26 = vld [vmem:[#allocation91_spill] sm:$0xff] }
 0x1b9   : > { %v1239_v48 = vpop.f32.mrf.mxu0  ;;  %v11008_v1 = vld [vmem:[#allocation27_spill] sm:$0xff] }
 0x1ba   : > { %v3054_v36 = vmax.f32 %v3050_v3, -1e+30  ;;  %v1240_v18 = vadd.f32 %v1239_v48, %v8519_v57  ;;  %v10976_v3 = vld [vmem:[#allocation80_spill] sm:$0xff] }
 0x1bb   : > { %v1241_v6 = vpop.f32.mrf.mxu0 }
 0x1bc   : > { %v3058_v22 = vmax.f32 %v3054_v36, -1e+30  ;;  %v1684_v35 = vmax.f32 %v1240_v18, 0.0  ;;  %v10979_v36 = vld [vmem:[#allocation81_spill] sm:$0xff]  ;;  %v10980_v18 = vld [vmem:[#allocation86_spill] sm:$0xff] }
 0x1bd   : > { %v1245_v9 = vpop.f32.mrf.mxu0  ;;  %v10981_v6 = vld [vmem:[#allocation82_spill] sm:$0xff] }
 0x1be   : > { %v3061_v37 = vmax.f32 %v3057_v32, %v3058_v22  ;;  %v1727_v25 = vpack.c.bf16 %v1684_v35, %v1683_v15  ;;  %v1246_v16 = vadd.f32 %v1245_v9, %v8519_v57  ;;  %v10982_v32 = vld [vmem:[#allocation92_spill] sm:$0xff]  ;;  %v10983_v22 = vld [vmem:[#allocation83_spill] sm:$0xff]  ;;  %v10986_v9 = vld [vmem:[#allocation93_spill] sm:$0xff] }
 0x1bf   : > { %v1247_v34 = vpop.f32.mrf.mxu0  ;;  %v10984_v15 = vld [vmem:[#allocation87_spill] sm:$0xff]  ;;  %v10985_v35 = vld [vmem:[#allocation84_spill] sm:$0xff] }
 0x1c0   : > { %v3063_v50 = vmax.f32 %v3061_v37, %v3062_v61  ;;  %7418 = vmatprep.mubr.bf16.mxu1 %v1727_v25  ;;  %v1685_v56 = vmax.f32 %v1246_v16, 0.0  ;;  %v10987_v25 = vld [vmem:[#allocation88_spill] sm:$0xff]  ;;  %v10988_v34 = vld [vmem:[#allocation89_spill] sm:$0xff]  ;;  %v10990_v16 = vld [vmem:[#allocation94_spill] sm:$0xff] }
 0x1c1   : > { %v1249_v47 = vpop.f32.mrf.mxu0 }
 0x1c2   : > { %v3064_v40 = vrot.slane %v3063_v50, 4  ;;  %v1250_v52 = vadd.f32 %v1249_v47, %v8519_v57 }
 0x1c3   : > { %v1251_v28 = vpop.f32.mrf.mxu0 }
 0x1c4   : > { %v3065_v49 = vmax.f32 %v3063_v50, %v3064_v40  ;;  %v1686_v42 = vmax.f32 %v1250_v52, 0.0  ;;  %v10989_v50 = vld [vmem:[#allocation90_spill] sm:$0xff]  ;;  %v10992_v40 = vld [vmem:[#allocation15_spill] sm:$0xff] }
 0x1c5   : > { %v1255_v62 = vpop.f32.mrf.mxu0 }
 0x1c6   : > { %v3066_v12 = vrot.slane %v3065_v49, 2  ;;  %v1728_v11 = vpack.c.bf16 %v1686_v42, %v1685_v56  ;;  %v8943_v53 = vadd.f32 %v1255_v62, %v8519_v57  ;;  %v10994_v42 = vld [vmem:[#allocation17_spill] sm:$0xff] }
 0x1c7   : > { %v1257_v55 = vpop.f32.mrf.mxu0 }
 0x1c8   : > { %v3067_v30 = vmax.f32 %v3065_v49, %v3066_v12  ;;  %7419 = vmatmul.mubr.bf16.gmra.mxu1 %v1728_v11  ;;  %10971 = vst [vmem:[#allocation95_spill] sm:$0xff] %v8943_v53  ;;  %v10993_v49 = vld [vmem:[#allocation16_spill] sm:$0xff]  ;;  %v10995_v12 = vld [vmem:[#allocation18_spill] sm:$0xff]  ;;  %v10996_v11 = vld [vmem:[#allocation19_spill] sm:$0xff] }
 0x1c9   : > { %v1259_v29 = vpop.f32.mrf.mxu0  ;;  %v11078_v53 = vld [vmem:[#allocation72_spill] sm:$0xff] }
 0x1ca   : > { %v3068_v4 = vrot.slane %v3067_v30, 1  ;;  %v8946_v7 = vadd.f32 %v1259_v29, %v8519_v57  ;;  %v11076_v57 = vld [vmem:[#allocation71_spill] sm:$0xff] }
 0x1cb   : > { %v1261_v8 = vpop.f32.mrf.mxu0 }
 0x1cc   : > { %10972 = vst [vmem:[#allocation96_spill] sm:$0xff] %v8946_v7  ;;  %v8948_v24 = vmax.f32 %v3067_v30, %v3068_v4 }
 0x1cd   : > { %v8952_v0 = vpop.f32.mrf.mxu0 }
 0x1ce   : > { %10973 = vst [vmem:[#allocation97_spill] sm:$0xff] %v8948_v24  ;;  %10974 = vst [vmem:[#allocation98_spill] sm:$0xff] %v8952_v0  ;;  %vm3072_vm2 = vcmp.eq.f32.partialorder %v8540_v63, %v8948_v24  ;;  %vm3073_vm3 = vcmp.eq.f32.partialorder %v8553_v43, %v8948_v24  ;;  %vm3074_vm4 = vcmp.eq.f32.partialorder %v8565_v45, %v8948_v24  ;;  %vm6169_vm14 = vcmp.eq.f32.partialorder %v8948_v24, -1e+30  ;;  %v10997_v43 = vld [vmem:[#allocation20_spill] sm:$0xff]  ;;  %v10998_v45 = vld [vmem:[#allocation21_spill] sm:$0xff] }
 0x1cf   : > { %vm3075_vm5 = vcmp.eq.f32.partialorder %v8578_v58, %v8948_v24  ;;  %vm3076_vm6 = vcmp.eq.f32.partialorder %v8544_v41, %v8948_v24  ;;  %vm3077_vm7 = vcmp.eq.f32.partialorder %v8556_v33, %v8948_v24  ;;  %vm3078_vm8 = vcmp.eq.f32.partialorder %v8569_v54, %v8948_v24  ;;  %v1267_v10 = vpop.f32.mrf.mxu0  ;;  %v10999_v58 = vld [vmem:[#allocation22_spill] sm:$0xff]  ;;  %v11000_v41 = vld [vmem:[#allocation23_spill] sm:$0xff] }
 0x1d0   : > { %vm3079_vm9 = vcmp.eq.f32.partialorder %v8581_v31, %v8948_v24  ;;  %vm3080_vm10 = vcmp.eq.f32.partialorder %v8591_v44, %v8948_v24  ;;  %vm3104_vm15 = vcmp.eq.f32.partialorder %v8883_v23, %v8948_v24  ;;  %vm3105_vm1 = vcmp.eq.f32.partialorder %v8922_v19, %v8948_v24  ;;  %v11002_v10 = vld [vmem:[#allocation24_spill] sm:$0xff]  ;;  %v11074_v0 = vld [vmem:[#allocation70_spill] sm:$0xff] }
 0x1d1   : > { %v8986_v48 = vpop.f32.mrf.mxu0  ;;  %vm3106_vm0 = vcmp.eq.f32.partialorder %v8893_v2, %v8948_v24  ;;  %vm3107_vm11 = vcmp.eq.f32.partialorder %v8907_v20, %v8948_v24  ;;  %vm3108_vm12 = vcmp.eq.f32.partialorder %v8918_v27, %v8948_v24  ;;  %vm3109_vm13 = vcmp.eq.f32.partialorder %v8933_v13, %v8948_v24  ;;  %v11054_v2 = vld [vmem:[#allocation53_spill] sm:$0xff]  ;;  %v11055_v20 = vld [vmem:[#allocation54_spill] sm:$0xff]  ;;  %v11058_v13 = vld [vmem:[#allocation56_spill] sm:$0xff] }
 0x1d2   : > { %10978 = vst [vmem:[#allocation85_spill] sm:$0xff] %v8986_v48  ;;  %v9039_v52 = vsel %vm3072_vm2, %v10992_v40, 512  ;;  %v9045_v56 = vsel %vm3073_vm3, %v10993_v49, 512  ;;  %v9051_v62 = vsel %vm3074_vm4, %v10994_v42, 512  ;;  %v9057_v63 = vsel %vm3075_vm5, %v10995_v12, 512  ;;  %v11072_v48 = vld [vmem:[#allocation69_spill] sm:$0xff] }
 0x1d3   : > { %v1271_v37 = vpop.f32.mrf.mxu0  ;;  %v9063_v55 = vsel %vm3076_vm6, %v10996_v11, 512  ;;  %v9069_v30 = vsel %vm3077_vm7, %v10997_v43, 512  ;;  %v9075_v29 = vsel %vm3078_vm8, %v10998_v45, 512  ;;  %v9081_v4 = vsel %vm3079_vm9, %v10999_v58, 512  ;;  %v11018_v43 = vld [vmem:[#allocation32_spill] sm:$0xff]  ;;  %v11020_v11 = vld [vmem:[#allocation33_spill] sm:$0xff] }
 0x1d4   : > { %v9087_v8 = vsel %vm3080_vm10, %v11000_v41, 512  ;;  %vm11003_vm2 = vcmp.eq.f32.partialorder %v8705_v60, %v8948_v24  ;;  %v11004_v37 = vld [vmem:[#allocation25_spill] sm:$0xff]  ;;  %vm11005_vm3 = vcmp.eq.f32.partialorder %v8608_v39, %v8948_v24  ;;  %vm11007_vm4 = vcmp.eq.f32.partialorder %v8779_v17, %v8948_v24  ;;  %v11010_v60 = vld [vmem:[#allocation28_spill] sm:$0xff]  ;;  %v11014_v17 = vld [vmem:[#allocation30_spill] sm:$0xff] }
 0x1d5   : > { %v9020_v47 = vpop.f32.mrf.mxu0  ;;  %v9095_v54 = vsel %vm11003_vm2, %v11002_v10, 512  ;;  %v9101_v31 = vsel %vm11005_vm3, %v11004_v37, 512  ;;  %vm11009_vm5 = vcmp.eq.f32.partialorder %v8625_v46, %v8948_v24  ;;  %vm11011_vm6 = vcmp.eq.f32.partialorder %v10975_v14, %v8948_v24  ;;  %v11012_v39 = vld [vmem:[#allocation29_spill] sm:$0xff]  ;;  %v11016_v46 = vld [vmem:[#allocation31_spill] sm:$0xff]  ;;  %v11022_v58 = vld [vmem:[#allocation34_spill] sm:$0xff] }
 0x1d6   : > { %10991 = vst [vmem:[#allocation80_spill] sm:$0xff] %v9020_v47  ;;  %v9113_v61 = vsel %vm11009_vm5, %v11008_v1, 512  ;;  %v9119_v49 = vsel %vm11011_vm6, %v11010_v60, 512  ;;  %vm11013_vm7 = vcmp.eq.f32.partialorder %v10976_v3, %v8948_v24  ;;  %vm11015_vm8 = vcmp.eq.f32.partialorder %v10977_v26, %v8948_v24  ;;  %v11037_v45 = vld [vmem:[#allocation41_spill] sm:$0xff]  ;;  %v11050_v37 = vld [vmem:[#allocation48_spill] sm:$0xff]  ;;  %v11060_v1 = vld [vmem:[#allocation58_spill] sm:$0xff] }
 0x1d7   : > { %v1277_v28 = vpop.f32.mrf.mxu0  ;;  %v9125_v40 = vsel %vm11013_vm7, %v11012_v39, 512  ;;  %v9131_v12 = vsel %vm11015_vm8, %v11014_v17, 512  ;;  %vm11017_vm9 = vcmp.eq.f32.partialorder %v10979_v36, %v8948_v24  ;;  %vm11019_vm10 = vcmp.eq.f32.partialorder %v10980_v18, %v8948_v24  ;;  %v11026_v18 = vld [vmem:[#allocation36_spill] sm:$0xff]  ;;  %v11059_v60 = vld [vmem:[#allocation57_spill] sm:$0xff]  ;;  %v11064_v39 = vld [vmem:[#allocation62_spill] sm:$0xff] }
 0x1d8   : > { %v11006_v28 = vld [vmem:[#allocation26_spill] sm:$0xff]  ;;  %v9137_v42 = vsel %vm11017_vm9, %v11016_v46, 512  ;;  %v9143_v3 = vsel %vm11019_vm10, %v11018_v43, 512  ;;  %vm11021_vm2 = vcmp.eq.f32.partialorder %v10981_v6, %v8948_v24  ;;  %vm11023_vm3 = vcmp.eq.f32.partialorder %v10982_v32, %v8948_v24  ;;  %v11024_v46 = vld [vmem:[#allocation35_spill] sm:$0xff]  ;;  %v11028_v6 = vld [vmem:[#allocation37_spill] sm:$0xff] }
 0x1d9   : > { %v9089_v33 = vpop.f32.mrf.mxu0  ;;  %v9107_v44 = vsel %vm11007_vm4, %v11006_v28, 512  ;;  %v9149_v26 = vsel %vm11021_vm2, %v11020_v11, 512  ;;  %v9155_v36 = vsel %vm11023_vm3, %v11022_v58, 512  ;;  %vm11025_vm4 = vcmp.eq.f32.partialorder %v10983_v22, %v8948_v24  ;;  %v11030_v32 = vld [vmem:[#allocation38_spill] sm:$0xff]  ;;  %v11032_v22 = vld [vmem:[#allocation39_spill] sm:$0xff]  ;;  %v11063_v17 = vld [vmem:[#allocation61_spill] sm:$0xff] }
 0x1da   : > { %11001 = vst [vmem:[#allocation91_spill] sm:$0xff] %v9089_v33  ;;  %vm11027_vm5 = vcmp.eq.f32.partialorder %v10984_v15, %v8948_v24  ;;  %vm11029_vm6 = vcmp.eq.f32.partialorder %v10985_v35, %v8948_v24  ;;  %vm11031_vm7 = vcmp.eq.f32.partialorder %v10986_v9, %v8948_v24  ;;  %vm11033_vm8 = vcmp.eq.f32.partialorder %v10987_v25, %v8948_v24  ;;  %v11068_v33 = vld [vmem:[#allocation66_spill] sm:$0xff]  ;;  %v11069_v47 = vld [vmem:[#allocation67_spill] sm:$0xff] }
 0x1db   : > { %v1281_v14 = vpop.f32.mrf.mxu0  ;;  %v9167_v43 = vsel %vm11027_vm5, %v11026_v18, 512  ;;  %v9173_v11 = vsel %vm11029_vm6, %v11028_v6, 512  ;;  %v9179_v58 = vsel %vm11031_vm7, %v11030_v32, 512  ;;  %v11035_v18 = vld [vmem:[#allocation40_spill] sm:$0xff]  ;;  %vm11036_vm9 = vcmp.eq.f32.partialorder %v10988_v34, %v8948_v24  ;;  %v11039_v32 = vld [vmem:[#allocation42_spill] sm:$0xff]  ;;  %v11041_v6 = vld [vmem:[#allocation43_spill] sm:$0xff] }
 0x1dc   : > { %v9161_v14 = vsel %vm11025_vm4, %v11024_v46, 512  ;;  %v9185_v46 = vsel %vm11033_vm8, %v11032_v22, 512  ;;  %v9193_v35 = vsel %vm11036_vm9, %v11035_v18, 512  ;;  %vm11038_vm10 = vcmp.eq.f32.partialorder %v10989_v50, %v8948_v24  ;;  %v11043_v34 = vld [vmem:[#allocation44_spill] sm:$0xff]  ;;  %v11045_v50 = vld [vmem:[#allocation45_spill] sm:$0xff] }
 0x1dd   : > { %v9187_v15 = vpop.f32.mrf.mxu0  ;;  %v9199_v9 = vsel %vm11038_vm10, %v11037_v45, 512  ;;  %vm11040_vm2 = vcmp.eq.f32.partialorder %v10990_v16, %v8948_v24  ;;  %vm11042_vm3 = vcmp.eq.f32.partialorder %v8839_v21, %v8948_v24  ;;  %vm11044_vm4 = vcmp.eq.f32.partialorder %v8914_v59, %v8948_v24  ;;  %v11047_v16 = vld [vmem:[#allocation46_spill] sm:$0xff]  ;;  %v11049_v21 = vld [vmem:[#allocation47_spill] sm:$0xff] }
 0x1de   : > { %11034 = vst [vmem:[#allocation81_spill] sm:$0xff] %v9187_v15  ;;  %v9205_v25 = vsel %vm11040_vm2, %v11039_v32, 512  ;;  %v9211_v10 = vsel %vm11042_vm3, %v11041_v6, 512  ;;  %v9217_v41 = vsel %vm11044_vm4, %v11043_v34, 512  ;;  %vm11046_vm5 = vcmp.eq.f32.partialorder %v8823_v5, %v8948_v24  ;;  %v11051_v32 = vld [vmem:[#allocation49_spill] sm:$0xff]  ;;  %v11052_v45 = vld [vmem:[#allocation50_spill] sm:$0xff] }
 0x1df   : > { %v9223_v18 = vsel %vm11046_vm5, %v11045_v50, 512  ;;  %vm11048_vm6 = vcmp.eq.f32.partialorder %v8859_v51, %v8948_v24  ;;  %v9235_v28 = vsel %vm3104_vm15, %v11049_v21, 512  ;;  %v1287_v59 = vpop.f32.mrf.mxu0  ;;  %v9241_v5 = vsel %vm3105_vm1, %v11050_v37, 512  ;;  %v11053_v21 = vld [vmem:[#allocation51_spill] sm:$0xff]  ;;  %v11062_v6 = vld [vmem:[#allocation60_spill] sm:$0xff]  ;;  %v11067_v15 = vld [vmem:[#allocation65_spill] sm:$0xff] }
 0x1e0   : > { %v9229_v22 = vsel %vm11048_vm6, %v11047_v16, 512  ;;  %v9247_v51 = vsel %vm3106_vm0, %v11051_v32, 512  ;;  %v9253_v23 = vsel %vm3107_vm11, %v11052_v45, 512  ;;  %v9259_v59 = vsel %vm3108_vm12, %v11053_v21, 512  ;;  %v11056_v32 = vld [vmem:[#allocation55_spill] sm:$0xff] }
 0x1e1   : > { %v9265_v19 = vsel %vm3109_vm13, %v8200_v38, 512  ;;  %v9270_v37 = vsel %vm6169_vm14, %v11054_v2, 512  ;;  %v9275_v45 = vsel %vm6169_vm14, %v11055_v20, 512  ;;  %v9280_v27 = vsel %vm6169_vm14, %v11056_v32, 512  ;;  %v9282_v21 = vpop.f32.mrf.mxu0  ;;  %v11061_v34 = vld [vmem:[#allocation59_spill] sm:$0xff] }
 0x1e2   : > { %11057 = vst [vmem:[#allocation86_spill] sm:$0xff] %v9282_v21  ;;  %v9287_v38 = vsel %vm6169_vm14, %v11058_v13, 512  ;;  %v9292_v2 = vsel %vm6169_vm14, %v11059_v60, 512  ;;  %v9297_v20 = vsel %vm6169_vm14, %v11060_v1, 512  ;;  %v9302_v32 = vsel %vm6169_vm14, %v11061_v34, 512  ;;  %v11065_v16 = vld [vmem:[#allocation63_spill] sm:$0xff] }
 0x1e3   : > { %v9307_v13 = vsel %vm6169_vm14, %v11062_v6, 512  ;;  %v9312_v60 = vsel %vm6169_vm14, %v11063_v17, 512  ;;  %v9317_v1 = vsel %vm6169_vm14, %v11064_v39, 512  ;;  %v9322_v34 = vsel %vm6169_vm14, %v11065_v16, 512  ;;  %v1291_v50 = vpop.f32.mrf.mxu0  ;;  %v11066_v21 = vld [vmem:[#allocation64_spill] sm:$0xff] }
 0x1e4   : > { %v9327_v6 = vsel %vm6169_vm14, %v11066_v21, 512  ;;  %v9332_v17 = vsel %vm6169_vm14, %v11067_v15, 512  ;;  %v9337_v39 = vsel %vm6169_vm14, %v11068_v33, 512  ;;  %v9342_v16 = vsel %vm6169_vm14, %v11069_v47, 512  ;;  %v11070_v50 = vld [vmem:[#allocation68_spill] sm:$0xff] }
 0x1e5   : > { %v9347_v21 = vsel %vm6169_vm14, %v11070_v50, 512  ;;  %v9352_v15 = vsel %vm6169_vm14, %v11072_v48, 512  ;;  %v9357_v33 = vsel %vm6169_vm14, %v11074_v0, 512  ;;  %v9362_v47 = vsel %vm6169_vm14, %v11076_v57, 512  ;;  %v9364_v7 = vpop.f32.mrf.mxu0 }
 0x1e6   : > { %11071 = vst [vmem:[#allocation82_spill] sm:$0xff] %v9347_v21  ;;  %11073 = vst [vmem:[#allocation92_spill] sm:$0xff] %v9352_v15  ;;  %v9369_v50 = vsel %vm6169_vm14, %v11078_v53, 512  ;;  %v11080_v21 = vld [vmem:[#allocation73_spill] sm:$0xff]  ;;  %v11082_v15 = vld [vmem:[#allocation74_spill] sm:$0xff]  ;;  %vm3200_vm0 = vcmp.lt.s32.totalorder %v9039_v52, %v9063_v55  ;;  %vm3202_vm11 = vcmp.lt.s32.totalorder %v9045_v56, %v9069_v30  ;;  %vm3204_vm12 = vcmp.lt.s32.totalorder %v9051_v62, %v9075_v29 }
 0x1e7   : > { %11075 = vst [vmem:[#allocation83_spill] sm:$0xff] %v9357_v33  ;;  %11077 = vst [vmem:[#allocation87_spill] sm:$0xff] %v9364_v7  ;;  %v9374_v48 = vsel %vm6169_vm14, %v11080_v21, 512  ;;  %v9379_v0 = vsel %vm6169_vm14, %v11082_v15, 512  ;;  %v11083_v33 = vld [vmem:[#allocation75_spill] sm:$0xff]  ;;  %v11085_v7 = vld [vmem:[#allocation76_spill] sm:$0xff]  ;;  %vm3206_vm13 = vcmp.lt.s32.totalorder %v9057_v63, %v9081_v4  ;;  %v3203_v24 = vsel %vm3202_vm11, %v9045_v56, %v9069_v30 }
 0x1e8   : > { %11079 = vst [vmem:[#allocation84_spill] sm:$0xff] %v9369_v50  ;;  %11081 = vst [vmem:[#allocation93_spill] sm:$0xff] %v9374_v48  ;;  %v9384_v57 = vsel %vm6169_vm14, %v11083_v33, 512  ;;  %v9389_v53 = vsel %vm6169_vm14, %v11085_v7, 512  ;;  %v11086_v50 = vld [vmem:[#allocation77_spill] sm:$0xff]  ;;  %v11087_v48 = vld [vmem:[#allocation78_spill] sm:$0xff]  ;;  %v1297_v33 = vpop.f32.mrf.mxu0  ;;  %v3205_v7 = vsel %vm3204_vm12, %v9051_v62, %v9075_v29  ;;  %vm3210_vm15 = vcmp.lt.s32.totalorder %v3203_v24, %v9095_v54 }
 0x1e9   : > { %11084 = vst [vmem:[#allocation88_spill] sm:$0xff] %v9384_v57  ;;  %v9394_v21 = vsel %vm6169_vm14, %v11086_v50, 512  ;;  %v9399_v15 = vsel %vm6169_vm14, %v11087_v48, 512  ;;  %v3201_v57 = vsel %vm3200_vm0, %v9039_v52, %v9063_v55  ;;  %v3207_v33 = vsel %vm3206_vm13, %v9057_v63, %v9081_v4 }
 0x1ea   : > { %vm3208_vm14 = vcmp.lt.s32.totalorder %v3201_v57, %v9087_v8  ;;  %v9418_v52 = vpop.f32.mrf.mxu0  ;;  %vm3212_vm1 = vcmp.lt.s32.totalorder %v3205_v7, %v9101_v31  ;;  %vm3214_vm7 = vcmp.lt.s32.totalorder %v3207_v33, %v9107_v44  ;;  %v3211_v56 = vsel %vm3210_vm15, %v3203_v24, %v9095_v54 }
 0x1eb   : > { %v3209_v55 = vsel %vm3208_vm14, %v3201_v57, %v9087_v8  ;;  %v3213_v30 = vsel %vm3212_vm1, %v3205_v7, %v9101_v31  ;;  %v3215_v62 = vsel %vm3214_vm7, %v3207_v33, %v9107_v44  ;;  %vm3218_vm9 = vcmp.lt.s32.totalorder %v3211_v56, %v9119_v49 }
 0x1ec   : > { %vm3216_vm8 = vcmp.lt.s32.totalorder %v3209_v55, %v9113_v61  ;;  %v1301_v63 = vpop.f32.mrf.mxu0  ;;  %vm3220_vm10 = vcmp.lt.s32.totalorder %v3213_v30, %v9125_v40  ;;  %vm3222_vm2 = vcmp.lt.s32.totalorder %v3215_v62, %v9131_v12  ;;  %v3219_v57 = vsel %vm3218_vm9, %v3211_v56, %v9119_v49 }
 0x1ed   : > { %v3217_v29 = vsel %vm3216_vm8, %v3209_v55, %v9113_v61  ;;  %v3221_v4 = vsel %vm3220_vm10, %v3213_v30, %v9125_v40  ;;  %v3223_v24 = vsel %vm3222_vm2, %v3215_v62, %v9131_v12  ;;  %vm3226_vm4 = vcmp.lt.s32.totalorder %v3219_v57, %v9143_v3 }
 0x1ee   : > { %vm3224_vm3 = vcmp.lt.s32.totalorder %v3217_v29, %v9137_v42  ;;  %v9436_v7 = vpop.f32.mrf.mxu0  ;;  %vm3228_vm5 = vcmp.lt.s32.totalorder %v3221_v4, %v9149_v26  ;;  %vm3230_vm6 = vcmp.lt.s32.totalorder %v3223_v24, %v9155_v36  ;;  %v3227_v61 = vsel %vm3226_vm4, %v3219_v57, %v9143_v3 }
 0x1ef   : > { %v3225_v8 = vsel %vm3224_vm3, %v3217_v29, %v9137_v42  ;;  %v3229_v49 = vsel %vm3228_vm5, %v3221_v4, %v9149_v26  ;;  %v3231_v40 = vsel %vm3230_vm6, %v3223_v24, %v9155_v36  ;;  %vm3234_vm11 = vcmp.lt.s32.totalorder %v3227_v61, %v9167_v43  ;;  %v9450_v42 = vpop.f32.mrf.mxu1 }
 0x1f0   : > { %vm3232_vm0 = vcmp.lt.s32.totalorder %v3225_v8, %v9161_v14  ;;  %v1307_v12 = vpop.f32.mrf.mxu0  ;;  %vm3236_vm12 = vcmp.lt.s32.totalorder %v3229_v49, %v9173_v11  ;;  %vm3238_vm13 = vcmp.lt.s32.totalorder %v3231_v40, %v9179_v58  ;;  %v3235_v31 = vsel %vm3234_vm11, %v3227_v61, %v9167_v43  ;;  %v11089_v61 = vld [vmem:[#allocation92_spill] sm:$0xff] }
 0x1f1   : > { %v3233_v54 = vsel %vm3232_vm0, %v3225_v8, %v9161_v14  ;;  %v3237_v44 = vsel %vm3236_vm12, %v3229_v49, %v9173_v11  ;;  %v3239_v3 = vsel %vm3238_vm13, %v3231_v40, %v9179_v58  ;;  %vm3242_vm15 = vcmp.lt.s32.totalorder %v3235_v31, %v9193_v35  ;;  %v11090_v49 = vld [vmem:[#allocation83_spill] sm:$0xff] }
 0x1f2   : > { %vm3240_vm14 = vcmp.lt.s32.totalorder %v3233_v54, %v9185_v46  ;;  %v9456_v26 = vpop.f32.mrf.mxu0  ;;  %vm3244_vm1 = vcmp.lt.s32.totalorder %v3237_v44, %v9199_v9  ;;  %vm3246_vm7 = vcmp.lt.s32.totalorder %v3239_v3, %v9205_v25  ;;  %v3243_v14 = vsel %vm3242_vm15, %v3235_v31, %v9193_v35 }
 0x1f3   : > { %v3241_v36 = vsel %vm3240_vm14, %v3233_v54, %v9185_v46  ;;  %v3245_v43 = vsel %vm3244_vm1, %v3237_v44, %v9199_v9  ;;  %v3247_v11 = vsel %vm3246_vm7, %v3239_v3, %v9205_v25  ;;  %vm3250_vm9 = vcmp.lt.s32.totalorder %v3243_v14, %v9217_v41  ;;  %v9470_v46 = vpop.f32.mrf.mxu1  ;;  %v11091_v54 = vld [vmem:[#allocation84_spill] sm:$0xff] }
 0x1f4   : > { %vm3248_vm8 = vcmp.lt.s32.totalorder %v3241_v36, %v9211_v10  ;;  %v1311_v58 = vpop.f32.mrf.mxu0  ;;  %vm3252_vm10 = vcmp.lt.s32.totalorder %v3245_v43, %v9223_v18  ;;  %vm3254_vm2 = vcmp.lt.s32.totalorder %v3247_v11, %v9229_v22  ;;  %v3251_v55 = vsel %vm3250_vm9, %v3243_v14, %v9217_v41  ;;  %v11093_v14 = vld [vmem:[#allocation88_spill] sm:$0xff] }
 0x1f5   : > { %v3249_v33 = vsel %vm3248_vm8, %v3241_v36, %v9211_v10  ;;  %v3253_v35 = vsel %vm3252_vm10, %v3245_v43, %v9223_v18  ;;  %v3255_v9 = vsel %vm3254_vm2, %v3247_v11, %v9229_v22  ;;  %vm3258_vm4 = vcmp.lt.s32.totalorder %v3251_v55, %v9241_v5 }
 0x1f6   : > { %vm3256_vm3 = vcmp.lt.s32.totalorder %v3249_v33, %v9235_v28  ;;  %v9476_v25 = vpop.f32.mrf.mxu0  ;;  %vm3260_vm5 = vcmp.lt.s32.totalorder %v3253_v35, %v9247_v51  ;;  %vm3262_vm6 = vcmp.lt.s32.totalorder %v3255_v9, %v9253_v23  ;;  %v3259_v56 = vsel %vm3258_vm4, %v3251_v55, %v9241_v5  ;;  %v11094_v55 = vld [vmem:[#allocation95_spill] sm:$0xff] }
 0x1f7   : > { %v3257_v10 = vsel %vm3256_vm3, %v3249_v33, %v9235_v28  ;;  %v3261_v41 = vsel %vm3260_vm5, %v3253_v35, %v9247_v51  ;;  %v3263_v18 = vsel %vm3262_vm6, %v3255_v9, %v9253_v23  ;;  %vm3266_vm11 = vcmp.lt.s32.totalorder %v3259_v56, %v9265_v19  ;;  %v9490_v28 = vpop.f32.mrf.mxu1 }
 0x1f8   : > { %vm3264_vm0 = vcmp.lt.s32.totalorder %v3257_v10, %v9259_v59  ;;  %v1317_v22 = vpop.f32.mrf.mxu0  ;;  %vm3268_vm12 = vcmp.lt.s32.totalorder %v3261_v41, %v9270_v37  ;;  %vm3270_vm13 = vcmp.lt.s32.totalorder %v3263_v18, %v9275_v45  ;;  %v3267_v62 = vsel %vm3266_vm11, %v3259_v56, %v9265_v19 }
 0x1f9   : > { %v3265_v30 = vsel %vm3264_vm0, %v3257_v10, %v9259_v59  ;;  %v3269_v5 = vsel %vm3268_vm12, %v3261_v41, %v9270_v37  ;;  %v3271_v51 = vsel %vm3270_vm13, %v3263_v18, %v9275_v45  ;;  %vm3274_vm15 = vcmp.lt.s32.totalorder %v3267_v62, %v9287_v38  ;;  %v11098_v41 = vld [vmem:[#allocation79_spill] sm:$0xff]  ;;  %v11099_v18 = vld [vmem:[#allocation98_spill] sm:$0xff] }
 0x1fa   : > { %vm3272_vm14 = vcmp.lt.s32.totalorder %v3265_v30, %v9280_v27  ;;  %v9496_v23 = vpop.f32.mrf.mxu0  ;;  %vm3276_vm1 = vcmp.lt.s32.totalorder %v3269_v5, %v9292_v2  ;;  %vm3278_vm7 = vcmp.lt.s32.totalorder %v3271_v51, %v9297_v20  ;;  %v3275_v63 = vsel %vm3274_vm15, %v3267_v62, %v9287_v38 }
 0x1fb   : > { %v3273_v59 = vsel %vm3272_vm14, %v3265_v30, %v9280_v27  ;;  %v3277_v19 = vsel %vm3276_vm1, %v3269_v5, %v9292_v2  ;;  %v3279_v37 = vsel %vm3278_vm7, %v3271_v51, %v9297_v20  ;;  %vm3282_vm9 = vcmp.lt.s32.totalorder %v3275_v63, %v9307_v13  ;;  %v9510_v27 = vpop.f32.mrf.mxu1  ;;  %v11100_v30 = vld [vmem:[#allocation85_spill] sm:$0xff] }
 0x1fc   : > { %vm3280_vm8 = vcmp.lt.s32.totalorder %v3273_v59, %v9302_v32  ;;  %v1321_v45 = vpop.f32.mrf.mxu0  ;;  %vm3284_vm10 = vcmp.lt.s32.totalorder %v3277_v19, %v9312_v60  ;;  %vm3286_vm2 = vcmp.lt.s32.totalorder %v3279_v37, %v9317_v1  ;;  %v3283_v57 = vsel %vm3282_vm9, %v3275_v63, %v9307_v13 }
 0x1fd   : > { %v3281_v29 = vsel %vm3280_vm8, %v3273_v59, %v9302_v32  ;;  %v3285_v38 = vsel %vm3284_vm10, %v3277_v19, %v9312_v60  ;;  %v3287_v2 = vsel %vm3286_vm2, %v3279_v37, %v9317_v1  ;;  %vm3290_vm4 = vcmp.lt.s32.totalorder %v3283_v57, %v9327_v6  ;;  %v9522_v4 = vpop.f32.mrf.mxu1  ;;  %v11102_v59 = vld [vmem:[#allocation91_spill] sm:$0xff] }
 0x1fe   : > { %vm3288_vm3 = vcmp.lt.s32.totalorder %v3281_v29, %v9322_v34  ;;  %v9516_v20 = vpop.f32.mrf.mxu0  ;;  %vm3292_vm5 = vcmp.lt.s32.totalorder %v3285_v38, %v9332_v17  ;;  %vm3294_vm6 = vcmp.lt.s32.totalorder %v3287_v2, %v9337_v39  ;;  %v3291_v13 = vsel %vm3290_vm4, %v3283_v57, %v9327_v6 }
 0x1ff   : > { %v3289_v32 = vsel %vm3288_vm3, %v3281_v29, %v9322_v34  ;;  %v3293_v60 = vsel %vm3292_vm5, %v3285_v38, %v9332_v17  ;;  %v3295_v1 = vsel %vm3294_vm6, %v3287_v2, %v9337_v39  ;;  %v11088_v34 = vld [vmem:[#allocation82_spill] sm:$0xff]  ;;  %v9542_v31 = vpop.f32.mrf.mxu1  ;;  %v11095_v35 = vmax.f32 %v11094_v55, 0.0  ;;  %v11103_v29 = vld [vmem:[#allocation81_spill] sm:$0xff] }
 0x200   : > { %vm3296_vm0 = vcmp.lt.s32.totalorder %v3289_v32, %v9342_v16  ;;  %v1327_v24 = vpop.f32.mrf.mxu0  ;;  %vm3298_vm11 = vcmp.lt.s32.totalorder %v3291_v13, %v11088_v34  ;;  %vm3300_vm12 = vcmp.lt.s32.totalorder %v3293_v60, %v11089_v61  ;;  %vm3302_vm13 = vcmp.lt.s32.totalorder %v3295_v1, %v11090_v49  ;;  %v9576_v38 = vld [vmem:[%s10768_s6] ss:$0 sm:$0xff] }
 0x201   : > { %v3297_v8 = vsel %vm3296_vm0, %v3289_v32, %v9342_v16  ;;  %v3299_v40 = vsel %vm3298_vm11, %v3291_v13, %v11088_v34  ;;  %v3301_v12 = vsel %vm3300_vm12, %v3293_v60, %v11089_v61  ;;  %v3303_v6 = vsel %vm3302_vm13, %v3295_v1, %v11090_v49  ;;  %v11092_v16 = vld [vmem:[#allocation93_spill] sm:$0xff]  ;;  %v11104_v60 = vld [vmem:[#allocation86_spill] sm:$0xff]  ;;  %v11105_v61 = vld [vmem:[#allocation87_spill] sm:$0xff] }
 0x202   : > { %vm3304_vm14 = vcmp.lt.s32.totalorder %v3297_v8, %v9362_v47  ;;  %v9536_v39 = vpop.f32.mrf.mxu0  ;;  %vm3306_vm15 = vcmp.lt.s32.totalorder %v3299_v40, %v11091_v54  ;;  %vm3308_vm1 = vcmp.lt.s32.totalorder %v3301_v12, %v11092_v16  ;;  %vm3310_vm7 = vcmp.lt.s32.totalorder %v3303_v6, %v9379_v0 }
 0x203   : > { %v3305_v17 = vsel %vm3304_vm14, %v3297_v8, %v9362_v47  ;;  %v3307_v44 = vsel %vm3306_vm15, %v3299_v40, %v11091_v54  ;;  %v3309_v3 = vsel %vm3308_vm1, %v3301_v12, %v11092_v16  ;;  %v3311_v36 = vsel %vm3310_vm7, %v3303_v6, %v9379_v0  ;;  %v11096_v0 = vld [vmem:[#allocation96_spill] sm:$0xff] }
 0x204   : > { %vm3312_vm8 = vcmp.lt.s32.totalorder %v3305_v17, %v11093_v14  ;;  %v1331_v43 = vpop.f32.mrf.mxu0  ;;  %vm3314_vm9 = vcmp.lt.s32.totalorder %v3307_v44, %v9389_v53  ;;  %vm3316_vm10 = vcmp.lt.s32.totalorder %v3309_v3, %v9394_v21  ;;  %vm3318_vm2 = vcmp.lt.s32.totalorder %v3311_v36, %v9399_v15 }
 0x205   : > { %v3313_v11 = vsel %vm3312_vm8, %v3305_v17, %v11093_v14  ;;  %v3315_v47 = vsel %vm3314_vm9, %v3307_v44, %v9389_v53  ;;  %v3317_v58 = vsel %vm3316_vm10, %v3309_v3, %v9394_v21  ;;  %v3319_v33 = vsel %vm3318_vm2, %v3311_v36, %v9399_v15  ;;  %v9565_v53 = vpop.f32.mrf.mxu1  ;;  %v11101_v15 = vld [vmem:[#allocation80_spill] sm:$0xff] }
 0x206   : > { %v11097_v9 = vmax.f32 %v11096_v0, 0.0  ;;  %v9559_v56 = vpop.f32.mrf.mxu0  ;;  %vm3320_vm3 = vcmp.lt.s32.totalorder %v3313_v11, %v3315_v47  ;;  %vm3322_vm4 = vcmp.lt.s32.totalorder %v3317_v58, %v3319_v33  ;;  %v1266_v22 = vadd.f32 %v11099_v18, %v11098_v41 }
 0x207   : > { %v1270_v62 = vadd.f32 %v11100_v30, %v11098_v41  ;;  %v3321_v21 = vsel %vm3320_vm3, %v3313_v11, %v3315_v47  ;;  %v3323_v5 = vsel %vm3322_vm4, %v3317_v58, %v3319_v33  ;;  %v1276_v51 = vadd.f32 %v11101_v15, %v11098_v41  ;;  %v9584_v40 = vpop.f32.mrf.mxu1 }
 0x208   : > { %v1729_v10 = vpack.c.bf16 %v11097_v9, %v11095_v35  ;;  %v1280_v63 = vadd.f32 %v11102_v59, %v11098_v41  ;;  %v1337_v19 = vpop.f32.mrf.mxu0  ;;  %vm3324_vm5 = vcmp.lt.s32.totalorder %v3321_v21, %v3323_v5  ;;  %v1689_v37 = vmax.f32 %v1266_v22, 0.0 }
 0x209   : > { %v1690_v45 = vmax.f32 %v1270_v62, 0.0  ;;  %v1286_v57 = vadd.f32 %v11103_v29, %v11098_v41  ;;  %v3325_v2 = vsel %vm3324_vm5, %v3321_v21, %v3323_v5  ;;  %v1691_v32 = vmax.f32 %v1276_v51, 0.0  ;;  %v9592_v36 = vpop.f32.mrf.mxu1  ;;  %v11107_v19 = vld [vmem:[#allocation46_spill] sm:$0xff]  ;;  %v11113_v29 = vld [vmem:[#allocation44_spill] sm:$0xff] }
 0x20a   : > { %7422 = vmatprep.mubr.bf16.mxu1 %v1729_v10  ;;  %v1692_v13 = vmax.f32 %v1280_v63, 0.0  ;;  %v1290_v1 = vadd.f32 %v11104_v60, %v11098_v41  ;;  %v9580_v24 = vpop.f32.mrf.mxu0  ;;  %v3326_v8 = vrot.slane %v3325_v2, 4  ;;  %v1296_v49 = vadd.f32 %v11105_v61, %v11098_v41  ;;  %v11106_v63 = vld [vmem:[#allocation45_spill] sm:$0xff]  ;;  %v11116_v60 = vld [vmem:[#allocation27_spill] sm:$0xff] }
 0x20b   : > { %v1730_v34 = vpack.c.bf16 %v1690_v45, %v1689_v37  ;;  %v1853_v17 = vadd.f32 %v9450_v42, %v9576_v38  ;;  %v1300_v54 = vadd.f32 %v9418_v52, %v11098_v41  ;;  %v1693_v44 = vmax.f32 %v1286_v57, 0.0  ;;  %v11111_v45 = vld [vmem:[#allocation62_spill] sm:$0xff]  ;;  %v11118_v61 = vld [vmem:[#allocation59_spill] sm:$0xff] }
 0x20c   : > { %v1731_v12 = vpack.c.bf16 %v1692_v13, %v1691_v32  ;;  %v1694_v6 = vmax.f32 %v1290_v1, 0.0  ;;  %v1341_v16 = vpop.f32.mrf.mxu0  ;;  %vm3327_vm6 = vcmp.lt.s32.totalorder %v3325_v2, %v3326_v8  ;;  %v1845_v3 = vadd.f32 %v9576_v38, %v9470_v46  ;;  %v11114_v13 = vld [vmem:[#allocation75_spill] sm:$0xff]  ;;  %v11117_v1 = vld [vmem:[#allocation28_spill] sm:$0xff] }
 0x20d   : > { %7423 = vmatmul.mubr.bf16.gmra.mxu1 %v1730_v34  ;;  %v3328_v14 = vsel %vm3327_vm6, %v3325_v2, %v3326_v8  ;;  %v1696_v43 = vmax.f32 %v1300_v54, 0.0  ;;  %v1695_v42 = vmax.f32 %v1296_v49, 0.0  ;;  %v1856_v52 = vadd.f32 %v9490_v28, %v9576_v38  ;;  %v9608_v28 = vpop.f32.mrf.mxu1  ;;  %v11119_v49 = vld [vmem:[#allocation60_spill] sm:$0xff] }
 0x20e   : > { %7426 = vmatprep.mubr.bf16.mxu1 %v1731_v12  ;;  %v9594_v11 = vpop.f32.mrf.mxu0  ;;  %v3329_v47 = vrot.slane %v3328_v14, 2  ;;  %v1732_v58 = vpack.c.bf16 %v1694_v6, %v1693_v44  ;;  %7628 = vtanh.f32 %v1853_v17  ;;  %v1306_v33 = vadd.f32 %v9436_v7, %v11098_v41  ;;  %v11120_v12 = vld [vmem:[#allocation41_spill] sm:$0xff]  ;;  %v11121_v6 = vld [vmem:[#allocation42_spill] sm:$0xff] }
 0x20f   : > { %v1848_v46 = vadd.f32 %v9576_v38, %v9510_v27  ;;  %v1310_v55 = vadd.f32 %v9456_v26, %v11098_v41  ;;  %7630 = vtanh.f32 %v1845_v3  ;;  %v1316_v0 = vadd.f32 %v9476_v25, %v11098_v41  ;;  %v9616_v21 = vpop.f32.mrf.mxu1  ;;  %v11122_v17 = vld [vmem:[#allocation73_spill] sm:$0xff]  ;;  %v11123_v44 = vld [vmem:[#allocation74_spill] sm:$0xff] }
 0x210   : > { %v1347_v35 = vpop.f32.mrf.mxu0  ;;  %vm3330_vm0 = vcmp.lt.s32.totalorder %v3328_v14, %v3329_v47  ;;  %v1869_v9 = vadd.f32 %v9522_v4, %v9576_v38  ;;  %v1733_v18 = vpack.c.bf16 %v1696_v43, %v1695_v42  ;;  %v1320_v27 = vadd.f32 %v9496_v23, %v11098_v41  ;;  %v11126_v42 = vld [vmem:[#allocation57_spill] sm:$0xff] }
 0x211   : > { %v3331_v10 = vsel %vm3330_vm0, %v3328_v14, %v3329_v47  ;;  %v1698_v7 = vmax.f32 %v1310_v55, 0.0  ;;  %7632 = vtanh.f32 %v1856_v52  ;;  %v1697_v30 = vmax.f32 %v1306_v33, 0.0  ;;  %v9649_v57 = vpop.f32.mrf.mxu1  ;;  %v11124_v47 = vld [vmem:[#allocation25_spill] sm:$0xff]  ;;  %v11127_v52 = vld [vmem:[#allocation58_spill] sm:$0xff] }
 0x212   : > { %v9612_v22 = vpop.f32.mrf.mxu0  ;;  %v3332_v26 = vrot.slane %v3331_v10, 1  ;;  %7634 = vtanh.f32 %v1848_v46  ;;  %v1699_v25 = vmax.f32 %v1316_v0, 0.0  ;;  %v1861_v4 = vadd.f32 %v9576_v38, %v9542_v31  ;;  %v11108_v31 = vld [vmem:[#allocation29_spill] sm:$0xff]  ;;  %v11128_v0 = vld [vmem:[#allocation39_spill] sm:$0xff] }
 0x213   : > { %7636 = vtanh.f32 %v1869_v9  ;;  %v1734_v23 = vpack.c.bf16 %v1698_v7, %v1697_v30  ;;  %v1700_v15 = vmax.f32 %v1320_v27, 0.0  ;;  %v1872_v51 = vadd.f32 %v9565_v53, %v9576_v38  ;;  %v11109_v53 = vld [vmem:[#allocation30_spill] sm:$0xff]  ;;  %v11129_v9 = vld [vmem:[#allocation40_spill] sm:$0xff]  ;;  %v11130_v27 = vld [vmem:[#allocation71_spill] sm:$0xff] }
 0x214   : > { %v1351_v62 = vpop.f32.mrf.mxu0  ;;  %vm3333_vm11 = vcmp.lt.s32.totalorder %v3331_v10, %v3332_v26  ;;  %v9624_v59 = vadd.f32 %v9516_v20, %v11098_v41  ;;  %v11110_v20 = vld [vmem:[#allocation61_spill] sm:$0xff]  ;;  %v7990_v37 = vmov 1.0|1.0   ;;  %v1864_v32 = vadd.f32 %v9576_v38, %v9584_v40  ;;  %v11133_v30 = vld [vmem:[#allocation24_spill] sm:$0xff] }
 0x215   : > { %7427 = vmatmul.mubr.bf16.gmra.mxu1 %v1732_v58  ;;  %v9618_v5 = vsel %vm3333_vm11, %v3331_v10, %v3332_v26  ;;  %v1735_v2 = vpack.c.bf16 %v1700_v15, %v1699_v25  ;;  %7638 = vtanh.f32 %v1861_v4  ;;  %v1336_v8 = vadd.f32 %v9559_v56, %v11098_v41  ;;  %v11125_v58 = vld [vmem:[#allocation26_spill] sm:$0xff]  ;;  %v11131_v26 = vld [vmem:[#allocation72_spill] sm:$0xff]  ;;  %v11134_v4 = vld [vmem:[#allocation55_spill] sm:$0xff] }
 0x216   : > { %7430 = vmatprep.mubr.bf16.mxu1 %v1733_v18  ;;  %vm3365_vm12 = vcmp.eq.s32.totalorder %v11106_v63, %v9618_v5  ;;  %vm3366_vm13 = vcmp.eq.s32.totalorder %v11107_v19, %v9618_v5  ;;  %vm3397_vm14 = vcmp.eq.s32.totalorder %v11086_v50, %v9618_v5  ;;  %vm3398_vm1 = vcmp.eq.s32.totalorder %v11087_v48, %v9618_v5  ;;  %v11112_v48 = vld [vmem:[#allocation43_spill] sm:$0xff]  ;;  %v11137_v15 = vld [vmem:[#allocation38_spill] sm:$0xff] }
 0x217   : > { %vm6275_vm15 = vmpackc.low %vm3366_vm13, %vm3365_vm12  ;;  %vm3349_vm7 = vcmp.eq.s32.totalorder %v11108_v31, %v9618_v5  ;;  %vm3350_vm8 = vcmp.eq.s32.totalorder %v11109_v53, %v9618_v5  ;;  %vm3381_vm9 = vcmp.eq.s32.totalorder %v11110_v20, %v9618_v5  ;;  %vm3382_vm2 = vcmp.eq.s32.totalorder %v11111_v45, %v9618_v5  ;;  %v11139_v63 = vld [vmem:[#allocation70_spill] sm:$0xff]  ;;  %v11142_v45 = vld [vmem:[#allocation53_spill] sm:$0xff] }
 0x218   : > { %6994 = vmatprep.subr.msk.bf16.mxu0 %vm6275_vm15, %v7990_v37  ;;  %vm6307_vm10 = vmpackc.low %vm3398_vm1, %vm3397_vm14  ;;  %v1330_v50 = vadd.f32 %v9536_v39, %v11098_v41  ;;  %vm3363_vm3 = vcmp.eq.s32.totalorder %v11112_v48, %v9618_v5  ;;  %vm3364_vm4 = vcmp.eq.s32.totalorder %v11113_v29, %v9618_v5  ;;  %vm3395_vm6 = vcmp.eq.s32.totalorder %v11114_v13, %v9618_v5  ;;  %v11115_v39 = vld [vmem:[#allocation76_spill] sm:$0xff]  ;;  %v9668_v34 = vpop.f32.mrf.mxu1  ;;  %v11141_v19 = vld [vmem:[#allocation22_spill] sm:$0xff] }
 0x219   : > { %7058 = vmatprep.subr.msk.bf16.mxu1 %vm6307_vm10, %v7990_v37  ;;  %vm6259_vm5 = vmpackc.low %vm3350_vm8, %vm3349_vm7  ;;  %vm3396_vm0 = vcmp.eq.s32.totalorder %v11115_v39, %v9618_v5  ;;  %vm3347_vm12 = vcmp.eq.s32.totalorder %v11116_v60, %v9618_v5  ;;  %vm3348_vm13 = vcmp.eq.s32.totalorder %v11117_v1, %v9618_v5  ;;  %7640 = vtanh.f32 %v1872_v51  ;;  %v11144_v48 = vld [vmem:[#allocation35_spill] sm:$0xff]  ;;  %v11145_v29 = vld [vmem:[#allocation36_spill] sm:$0xff] }
 0x21a   : > { %6995 = vmatpush3.bf16.msk.msra.mxu0 %vm6259_vm5, %v7990_v37  ;;  %vm6291_vm11 = vmpackc.low %vm3382_vm2, %vm3381_vm9  ;;  %vm3379_vm15 = vcmp.eq.s32.totalorder %v11118_v61, %v9618_v5  ;;  %vm3380_vm1 = vcmp.eq.s32.totalorder %v11119_v49, %v9618_v5  ;;  %v1702_v56 = vmax.f32 %v1330_v50, 0.0  ;;  %vm3361_vm8 = vcmp.eq.s32.totalorder %v11120_v12, %v9618_v5  ;;  %v11143_v50 = vld [vmem:[#allocation54_spill] sm:$0xff]  ;;  %v11147_v13 = vld [vmem:[#allocation68_spill] sm:$0xff] }
 0x21b   : > { %7059 = vmatpush3.bf16.msk.msra.mxu1 %vm6291_vm11, %v7990_v37  ;;  %vm6277_vm14 = vmpackc.low %vm3364_vm4, %vm3363_vm3  ;;  %v9681_v40 = vpop.eup %7628  ;;  %vm3362_vm9 = vcmp.eq.s32.totalorder %v11121_v6, %v9618_v5  ;;  %vm3393_vm10 = vcmp.eq.s32.totalorder %v11122_v17, %v9618_v5  ;;  %v1701_v16 = vmax.f32 %v9624_v59, 0.0  ;;  %vm3394_vm3 = vcmp.eq.s32.totalorder %v11123_v44, %v9618_v5  ;;  %v11138_v59 = vld [vmem:[#allocation69_spill] sm:$0xff]  ;;  %v11148_v1 = vld [vmem:[#allocation19_spill] sm:$0xff] }
 0x21c   : > { %6996 = vmatprep.subr.msk.bf16.mxu0 %vm6277_vm14, %v7990_v37  ;;  %vm6309_vm7 = vmpackc.low %vm3396_vm0, %vm3395_vm6  ;;  %v9696_v54 = vpop.eup %7630  ;;  %v1885_v3 = vadd.f32 %v9592_v36, %v9576_v38  ;;  %v1340_v14 = vadd.f32 %v9580_v24, %v11098_v41  ;;  %7642 = vtanh.f32 %v1864_v32  ;;  %v1703_v43 = vmax.f32 %v1336_v8, 0.0  ;;  %v9723_v36 = vpop.f32.mrf.mxu1  ;;  %v11146_v32 = vld [vmem:[#allocation67_spill] sm:$0xff]  ;;  %v11149_v8 = vld [vmem:[#allocation20_spill] sm:$0xff] }
 0x21d   : > { %7431 = vmatmul.mubr.bf16.gmra.mxu1 %v1734_v23  ;;  %7060 = vmatprep.subr.msk.bf16.mxu1 %vm6309_vm7, %v7990_v37  ;;  %vm6261_vm2 = vmpackc.low %vm3348_vm13, %vm3347_vm12  ;;  %vm3345_vm5 = vcmp.eq.s32.totalorder %v11124_v47, %v9618_v5  ;;  %vm3346_vm6 = vcmp.eq.s32.totalorder %v11125_v58, %v9618_v5  ;;  %vm3377_vm11 = vcmp.eq.s32.totalorder %v11126_v42, %v9618_v5  ;;  %v11150_v61 = vld [vmem:[#allocation51_spill] sm:$0xff]  ;;  %v11152_v49 = vld [vmem:[#allocation33_spill] sm:$0xff] }
 0x21e   : > { %7434 = vmatprep.mubr.bf16.mxu1 %v1735_v2  ;;  %6997 = vmatpush3.bf16.msk.msra.mxu0 %vm6261_vm2, %v7990_v37  ;;  %vm6293_vm4 = vmpackc.low %vm3380_vm1, %vm3379_vm15  ;;  %v9725_v24 = vpop.eup %7632  ;;  %vm3378_vm12 = vcmp.eq.s32.totalorder %v11127_v52, %v9618_v5  ;;  %v1704_v33 = vmax.f32 %v1340_v14, 0.0  ;;  %v1888_v46 = vadd.f32 %v9616_v21, %v9576_v38  ;;  %v1736_v35 = vpack.c.bf16 %v1702_v56, %v1701_v16  ;;  %v7393_v25 = vpop.f32.mrf.mxu1  ;;  %v11135_v21 = vld [vmem:[#allocation56_spill] sm:$0xff]  ;;  %v11153_v56 = vld [vmem:[#allocation34_spill] sm:$0xff] }
 0x21f   : > { %7061 = vmatpush3.bf16.msk.msra.mxu1 %vm6293_vm4, %v7990_v37  ;;  %vm6279_vm0 = vmpackc.low %vm3362_vm9, %vm3361_vm8  ;;  %v9740_v55 = vpop.eup %7634  ;;  %vm3359_vm14 = vcmp.eq.s32.totalorder %v11128_v0, %v9618_v5  ;;  %vm3360_vm15 = vcmp.eq.s32.totalorder %v11129_v9, %v9618_v5  ;;  %v1877_v10 = vadd.f32 %v9576_v38, %v9608_v28  ;;  %7644 = vtanh.f32 %v1885_v3  ;;  %v11132_v28 = vld [vmem:[#allocation23_spill] sm:$0xff]  ;;  %v11154_v12 = vld [vmem:[#allocation65_spill] sm:$0xff] }
 0x220   : > { %6998 = vmatprep.subr.msk.bf16.mxu0 %vm6279_vm0, %v7990_v37  ;;  %vm6311_vm13 = vmpackc.low %vm3394_vm3, %vm3393_vm10  ;;  %v9755_v18 = vpop.eup %7636  ;;  %v1737_v7 = vpack.c.bf16 %v1704_v33, %v1703_v43  ;;  %vm3391_vm7 = vcmp.eq.s32.totalorder %v11130_v27, %v9618_v5  ;;  %vm3392_vm8 = vcmp.eq.s32.totalorder %v11131_v26, %v9618_v5  ;;  %7646 = vtanh.f32 %v1888_v46  ;;  %v1895_v53 = vpop.f32.mrf.mxu1  ;;  %v11155_v6 = vld [vmem:[#allocation66_spill] sm:$0xff]  ;;  %v11156_v44 = vld [vmem:[#allocation17_spill] sm:$0xff] }
 0x221   : > { %7062 = vmatprep.subr.msk.bf16.mxu1 %vm6311_vm13, %v7990_v37  ;;  %vm6263_vm1 = vmpackc.low %vm3346_vm6, %vm3345_vm5  ;;  %vm3343_vm10 = vcmp.eq.s32.totalorder %v11132_v28, %v9618_v5  ;;  %vm3344_vm2 = vcmp.eq.s32.totalorder %v11133_v30, %v9618_v5  ;;  %v1346_v62 = vadd.f32 %v9594_v11, %v11098_v41  ;;  %vm3375_vm4 = vcmp.eq.s32.totalorder %v11134_v4, %v9618_v5  ;;  %v11136_v11 = vld [vmem:[#allocation37_spill] sm:$0xff]  ;;  %v11157_v3 = vld [vmem:[#allocation18_spill] sm:$0xff] }
 0x222   : > { %6999 = vmatpush3.bf16.msk.msra.mxu0 %vm6263_vm1, %v7990_v37  ;;  %vm6295_vm9 = vmpackc.low %vm3378_vm12, %vm3377_vm11  ;;  %vm3376_vm5 = vcmp.eq.s32.totalorder %v11135_v21, %v9618_v5  ;;  %v1880_v23 = vadd.f32 %v9576_v38, %v9649_v57  ;;  %7648 = vtanh.f32 %v1877_v10  ;;  %vm3357_vm0 = vcmp.eq.s32.totalorder %v11136_v11, %v9618_v5  ;;  %v9829_v20 = vpop.eup %7638  ;;  %v11158_v47 = vld [vmem:[#allocation49_spill] sm:$0xff]  ;;  %v11159_v58 = vld [vmem:[#allocation50_spill] sm:$0xff] }
 0x223   : > { %7063 = vmatpush3.bf16.msk.msra.mxu1 %vm6295_vm9, %v7990_v37  ;;  %vm6281_vm3 = vmpackc.low %vm3360_vm15, %vm3359_vm14  ;;  %vm3358_vm11 = vcmp.eq.s32.totalorder %v11137_v15, %v9618_v5  ;;  %v1350_v51 = vadd.f32 %v9612_v22, %v11098_v41  ;;  %vm3389_vm13 = vcmp.eq.s32.totalorder %v11138_v59, %v9618_v5  ;;  %vm3390_vm14 = vcmp.eq.s32.totalorder %v11139_v63, %v9618_v5  ;;  %v11140_v22 = vld [vmem:[#allocation21_spill] sm:$0xff]  ;;  %v11165_v4 = vld [vmem:[#allocation64_spill] sm:$0xff] }
 0x224   : > { %7000 = vmatprep.subr.msk.bf16.mxu0 %vm6281_vm3, %v7990_v37  ;;  %vm6313_vm6 = vmpackc.low %vm3392_vm8, %vm3391_vm7  ;;  %7650 = vtanh.f32 %v1880_v23  ;;  %v1705_v41 = vmax.f32 %v1346_v62, 0.0  ;;  %vm3341_vm1 = vcmp.eq.s32.totalorder %v11140_v22, %v9618_v5  ;;  %vm3342_vm7 = vcmp.eq.s32.totalorder %v11141_v19, %v9618_v5  ;;  %v9983_v21 = vld [vmem:[#allocation2] sm:$0x1]  ;;  %v11166_v11 = vld [vmem:[#allocation15_spill] sm:$0xff] }
 0x225   : > { %7435 = vmatmul.mubr.bf16.gmra.mxu1 %v1736_v35  ;;  %7064 = vmatprep.subr.msk.bf16.mxu1 %vm6313_vm6, %v7990_v37  ;;  %vm6265_vm12 = vmpackc.low %vm3344_vm2, %vm3343_vm10  ;;  %v1706_v31 = vmax.f32 %v1350_v51, 0.0  ;;  %vm3373_vm9 = vcmp.eq.s32.totalorder %v11142_v45, %v9618_v5  ;;  %vm3374_vm10 = vcmp.eq.s32.totalorder %v11143_v50, %v9618_v5  ;;  %vm3355_vm2 = vcmp.eq.s32.totalorder %v11144_v48, %v9618_v5  ;;  %v3871_v35 = vld [vmem:[#allocation2] sm:$0x1]  ;;  %v11167_v15 = vld [vmem:[#allocation16_spill] sm:$0xff] }
 0x226   : > { %7438 = vmatprep.mubr.bf16.mxu1 %v1737_v7  ;;  %7001 = vmatpush3.bf16.msk.msra.mxu0 %vm6265_vm12, %v7990_v37  ;;  %vm6297_vm15 = vmpackc.low %vm3376_vm5, %vm3375_vm4  ;;  %vm3356_vm3 = vcmp.eq.s32.totalorder %v11145_v29, %v9618_v5  ;;  %v7641_v57 = vpop.eup %7640  ;;  %vm3387_vm5 = vcmp.eq.s32.totalorder %v11146_v32, %v9618_v5  ;;  %vm3388_vm6 = vcmp.eq.s32.totalorder %v11147_v13, %v9618_v5  ;;  %v11168_v51 = vld [vmem:[#allocation47_spill] sm:$0xff]  ;;  %v11169_v59 = vld [vmem:[#allocation48_spill] sm:$0xff] }
 0x227   : > { %7065 = vmatpush3.bf16.msk.msra.mxu1 %vm6297_vm15, %v7990_v37  ;;  %vm6283_vm8 = vmpackc.low %vm3358_vm11, %vm3357_vm0  ;;  %v1738_v2 = vpack.c.bf16 %v1706_v31, %v1705_v41  ;;  %v1901_v39 = vadd.f32 %v9668_v34, %v9576_v38  ;;  %vm3339_vm11 = vcmp.eq.s32.totalorder %v11148_v1, %v9618_v5  ;;  %vm3340_vm12 = vcmp.eq.s32.totalorder %v11149_v8, %v9618_v5  ;;  %v11151_v34 = vld [vmem:[#allocation52_spill] sm:$0xff] }
 0x228   : > { %7002 = vmatprep.subr.msk.bf16.mxu0 %vm6283_vm8, %v7990_v37  ;;  %vm6315_vm4 = vmpackc.low %vm3390_vm14, %vm3389_vm13  ;;  %v7396_v60 = vpop.f32.mrf.mxu1  ;;  %vm3371_vm13 = vcmp.eq.s32.totalorder %v11150_v61, %v9618_v5  ;;  %vm3372_vm14 = vcmp.eq.s32.totalorder %v11151_v34, %v9618_v5  ;;  %vm3385_vm8 = vcmp.eq.s32.totalorder %v11154_v12, %v9618_v5  ;;  %v1893_v14 = vadd.f32 %v9576_v38, %v9723_v36  ;;  %v11160_v36 = vld [vmem:[#allocation31_spill] sm:$0xff] }
 0x229   : > { %7066 = vmatprep.subr.msk.bf16.mxu1 %vm6315_vm4, %v7990_v37  ;;  %vm6267_vm0 = vmpackc.low %vm3342_vm7, %vm3341_vm1  ;;  %vm3353_vm1 = vcmp.eq.s32.totalorder %v11152_v49, %v9618_v5  ;;  %vm3354_vm7 = vcmp.eq.s32.totalorder %v11153_v56, %v9618_v5  ;;  %vm3386_vm4 = vcmp.eq.s32.totalorder %v11155_v6, %v9618_v5  ;;  %v7643_v16 = vpop.eup %7642  ;;  %v1904_v43 = vadd.f32 %v7393_v25, %v9576_v38  ;;  %v11164_v25 = vld [vmem:[#allocation63_spill] sm:$0xff] }
 0x22a   : > { %7003 = vmatpush3.bf16.msk.msra.mxu0 %vm6267_vm0, %v7990_v37  ;;  %vm6299_vm15 = vmpackc.low %vm3374_vm10, %vm3373_vm9  ;;  %v1908_v17 = vpop.f32.mrf.mxu1  ;;  %vm3337_vm10 = vcmp.eq.s32.totalorder %v11156_v44, %v9618_v5  ;;  %7652 = vtanh.f32 %v1901_v39  ;;  %vm3351_vm0 = vcmp.eq.s32.totalorder %v11160_v36, %v9618_v5  ;;  %v1896_v52 = vadd.f32 %v9576_v38, %v1895_v53 }
 0x22b   : > { %7067 = vmatpush3.bf16.msk.msra.mxu1 %vm6299_vm15, %v7990_v37  ;;  %vm6285_vm9 = vmpackc.low %vm3356_vm3, %vm3355_vm2  ;;  %vm3369_vm3 = vcmp.eq.s32.totalorder %v11158_v47, %v9618_v5  ;;  %vm3370_vm15 = vcmp.eq.s32.totalorder %v11159_v58, %v9618_v5  ;;  %7654 = vtanh.f32 %v1893_v14  ;;  %v1917_v33 = vadd.f32 %v7396_v60, %v9576_v38 }
 0x22c   : > { %7004 = vmatprep.subr.msk.bf16.mxu0 %vm6285_vm9, %v7990_v37  ;;  %vm6317_vm2 = vmpackc.low %vm3388_vm6, %vm3387_vm5  ;;  %v7397_v42 = vpop.f32.mrf.mxu1  ;;  %v1909_v46 = vadd.f32 %v9576_v38, %v1908_v17  ;;  %v7645_v0 = vpop.eup %7644  ;;  %7656 = vtanh.f32 %v1904_v43  ;;  %v9936_v7 = vpack.c.bf16 %v9740_v55, %v9696_v54  ;;  %v9940_v27 = vpack.c.bf16 %v9725_v24, %v9681_v40  ;;  %v11161_v40 = vld [vmem:[#allocation32_spill] sm:$0xff] }
 0x22d   : > { %7439 = vmatmul.mubr.bf16.gmra.mxu1 %v1738_v2  ;;  %7068 = vmatprep.subr.msk.bf16.mxu1 %vm6317_vm2, %v7990_v37  ;;  %vm6269_vm5 = vmpackc.low %vm3340_vm12, %vm3339_vm11  ;;  %v1920_v9 = vadd.f32 %v7397_v42, %v9576_v38  ;;  %v7647_v26 = vpop.eup %7646  ;;  %7658 = vtanh.f32 %v1896_v52  ;;  %v9951_v54 = vpack.c.bf16 %v7643_v16, %v9829_v20  ;;  %v9954_v55 = vpack.c.bf16 %v7641_v57, %v9755_v18  ;;  %v11162_v18 = vld [vmem:[#allocation97_spill] sm:$0xff] }
 0x22e   : > { %7005 = vmatpush3.bf16.msk.msra.mxu0 %vm6269_vm5, %v7990_v37  ;;  %vm6301_vm6 = vmpackc.low %vm3372_vm14, %vm3371_vm13  ;;  %v1911_v10 = vpop.f32.mrf.mxu1  ;;  %vm3352_vm13 = vcmp.eq.s32.totalorder %v11161_v40, %v9618_v5  ;;  %7660 = vtanh.f32 %v1917_v33  ;;  %6540 = vst [vmem:[#allocation7] sm:$0xff] %v9936_v7   ;;  %v9967_v24 = vpack.c.bf16 %v7647_v26, %v7645_v0  ;;  %v3872_v30 = vmax.f32 %v3871_v35, %v11162_v18 }
 0x22f   : > { %7069 = vmatpush3.bf16.msk.msra.mxu1 %vm6301_vm6, %v7990_v37  ;;  %vm6287_vm11 = vmpackc.low %vm3354_vm7, %vm3353_vm1  ;;  %v1912_v28 = vadd.f32 %v9576_v38, %v1911_v10  ;;  %6856 = vst [vmem:[#allocation7 + $0x8] sm:$0xff] %v9940_v27   ;;  %v7649_v62 = vpop.eup %7648  ;;  %vm11163_vm14 = vcmp.eq.s32.totalorder %v11157_v3, %v9618_v5  ;;  %vm3383_vm7 = vcmp.eq.s32.totalorder %v11164_v25, %v9618_v5  ;;  %7662 = vtanh.f32 %v1909_v46 }
 0x230   : > { %7006 = vmatprep.subr.msk.bf16.mxu0 %vm6287_vm11, %v7990_v37  ;;  %vm6319_vm12 = vmpackc.low %vm3386_vm4, %vm3385_vm8  ;;  %vm3384_vm8 = vcmp.eq.s32.totalorder %v11165_v4, %v9618_v5  ;;  %6857 = vst [vmem:[#allocation7 + $0x10] sm:$0xff] %v9951_v54   ;;  %vm3335_vm9 = vcmp.eq.s32.totalorder %v11166_v11, %v9618_v5  ;;  %7664 = vtanh.f32 %v1920_v9  ;;  %vm3071_vm11 = vcmp.gt.f32.partialorder %v11162_v18, %v9983_v21 }
 0x231   : > { %7070 = vmatprep.subr.msk.bf16.mxu1 %vm6319_vm12, %v7990_v37  ;;  %vm6271_vm1 = vmpackc.low %vm11163_vm14, %vm3337_vm10  ;;  %6858 = vst [vmem:[#allocation7 + $0x18] sm:$0xff] %v9954_v55   ;;  %v7651_v23 = vpop.eup %7650  ;;  %vm3336_vm10 = vcmp.eq.s32.totalorder %v11167_v15, %v9618_v5  ;;  %7666 = vtanh.f32 %v1912_v28 }
 0x232   : > { %7007 = vmatpush3.bf16.msk.msra.mxu0 %vm6271_vm1, %v7990_v37  ;;  %vm6303_vm4 = vmpackc.low %vm3370_vm15, %vm3369_vm3  ;;  %6860 = vst [vmem:[#allocation7 + $0x28] sm:$0xff] %v9967_v24   ;;  %vm3367_vm3 = vcmp.eq.s32.totalorder %v11168_v51, %v9618_v5  ;;  %vm3368_vm15 = vcmp.eq.s32.totalorder %v11169_v59, %v9618_v5  ;;  %v10008_v63 = vpack.c.bf16 %v7651_v23, %v7649_v62 }
 0x233   : > { %3873 = vst [vmem:[#allocation2] sm:$0x1] %v3872_v30  ;;  %7071 = vmatpush3.bf16.msk.msra.mxu1 %vm6303_vm4, %v7990_v37  ;;  %vm6289_vm2 = vmpackc.low %vm3352_vm13, %vm3351_vm0 }
 0x234   : > { %7008 = vmatprep.subr.msk.bf16.mxu0 %vm6289_vm2, %v7990_v37  ;;  %vm6321_vm5 = vmpackc.low %vm3384_vm8, %vm3383_vm7  ;;  %6859 = vst [vmem:[#allocation7 + $0x20] sm:$0xff] %v10008_v63  }
 0x235   : > { %7072 = vmatprep.subr.msk.bf16.mxu1 %vm6321_vm5, %v7990_v37  ;;  %vm6273_vm0 = vmpackc.low %vm3336_vm10, %vm3335_vm9 }
 0x236   : > { %7009 = vmatpush3.bf16.msk.msra.mxu0 %vm6273_vm0, %v7990_v37  ;;  %vm6305_vm6 = vmpackc.low %vm3368_vm15, %vm3367_vm3 }
 0x237   : > { %7073 = vmatpush3.bf16.msk.msra.mxu1 %vm6305_vm6, %v7990_v37  ;;  %v7653_v22 = vpop.eup %7652 }
 0x238   : > { %v7400_v41 = vpop.f32.mrf.mxu1  ;;  %v7655_v19 = vpop.eup %7654 }
 0x239   : > { %v1933_v31 = vadd.f32 %v7400_v41, %v9576_v38  ;;  %v7657_v20 = vpop.eup %7656 }
 0x23a   : > { %v1924_v53 = vpop.f32.mrf.mxu1  ;;  %v7659_v45 = vpop.eup %7658  ;;  %v10023_v48 = vpack.c.bf16 %v7657_v20, %v7653_v22 }
 0x23b   : > { %v1925_v5 = vadd.f32 %v9576_v38, %v1924_v53  ;;  %v7661_v29 = vpop.eup %7660  ;;  %v10026_v2 = vpack.c.bf16 %v7659_v45, %v7655_v19  ;;  %7668 = vtanh.f32 %v1933_v31 }
 0x23c   : > { %v7401_v50 = vpop.f32.mrf.mxu1  ;;  %v7663_v32 = vpop.eup %7662  ;;  %6862 = vst [vmem:[#allocation7 + $0x38] sm:$0xff] %v10023_v48  }
 0x23d   : > { %v1936_v57 = vadd.f32 %v7401_v50, %v9576_v38  ;;  %v7665_v13 = vpop.eup %7664  ;;  %6861 = vst [vmem:[#allocation7 + $0x30] sm:$0xff] %v10026_v2  }
 0x23e   : > { %v1927_v37 = vpop.f32.mrf.mxu1  ;;  %v7667_v60 = vpop.eup %7666  ;;  %v2172_v1 = vpack.c.bf16 %v7665_v13, %v7661_v29 }
 0x23f   : > { %7670 = vtanh.f32 %v1936_v57  ;;  %v1928_v39 = vadd.f32 %v9576_v38, %v1927_v37  ;;  %v2171_v8 = vpack.c.bf16 %v7667_v60, %v7663_v32 }
 0x240   : > { %7672 = vtanh.f32 %v1925_v5  ;;  %6864 = vst [vmem:[#allocation7 + $0x48] sm:$0xff] %v2172_v1  }
 0x241   : > { %7674 = vtanh.f32 %v1928_v39  ;;  %3575 = vxpose.xlu0.c.b16.start [1/8] %v2171_v8, 128  ;;  %6863 = vst [vmem:[#allocation7 + $0x40] sm:$0xff] %v2171_v8  }
 0x245   : > { %3576 = vxpose.xlu0.c.b16.cont [2/8] %v2172_v1, 128 }
 0x248   : > { %v7404_v61 = vpop.f32.mrf.mxu1  ;;  %v7669_v56 = vpop.eup %7668 }
 0x249   : > { %v1949_v34 = vadd.f32 %v7404_v61, %v9576_v38 }
 0x24a   : > { %v1940_v49 = vpop.f32.mrf.mxu1 }
 0x24b   : > { %v1941_v6 = vadd.f32 %v9576_v38, %v1940_v49  ;;  %7676 = vtanh.f32 %v1949_v34 }
 0x24c   : > { %v7671_v12 = vpop.eup %7670  ;;  %v7405_v17 = vpop.f32.mrf.mxu1 }
 0x24d   : > { %v7673_v16 = vpop.eup %7672  ;;  %v1952_v44 = vadd.f32 %v7405_v17, %v9576_v38  ;;  %v2174_v3 = vpack.c.bf16 %v7671_v12, %v7669_v56 }
 0x24e   : > { %v7675_v14 = vpop.eup %7674  ;;  %v1943_v43 = vpop.f32.mrf.mxu1 }
 0x24f   : > { %7678 = vtanh.f32 %v1952_v44  ;;  %v1944_v47 = vadd.f32 %v9576_v38, %v1943_v43  ;;  %v2173_v58 = vpack.c.bf16 %v7675_v14, %v7673_v16  ;;  %6866 = vst [vmem:[#allocation7 + $0x58] sm:$0xff] %v2174_v3  }
 0x250   : > { %7680 = vtanh.f32 %v1941_v6 }
 0x251   : > { %7682 = vtanh.f32 %v1944_v47  ;;  %6865 = vst [vmem:[#allocation7 + $0x50] sm:$0xff] %v2173_v58   ;;  %3577 = vxpose.xlu0.c.b16.cont [3/8] %v2173_v58, 128 }
 0x255   : > { %3578 = vxpose.xlu0.c.b16.cont [4/8] %v2174_v3, 128 }
 0x258   : > { %v7408_v36 = vpop.f32.mrf.mxu1  ;;  %v7677_v33 = vpop.eup %7676 }
 0x259   : > { %v1965_v42 = vadd.f32 %v7408_v36, %v9576_v38 }
 0x25a   : > { %v1956_v52 = vpop.f32.mrf.mxu1 }
 0x25b   : > { %v1957_v35 = vadd.f32 %v9576_v38, %v1956_v52  ;;  %7684 = vtanh.f32 %v1965_v42 }
 0x25c   : > { %v7679_v46 = vpop.eup %7678  ;;  %v7409_v0 = vpop.f32.mrf.mxu1 }
 0x25d   : > { %v7681_v9 = vpop.eup %7680  ;;  %v1968_v10 = vadd.f32 %v7409_v0, %v9576_v38  ;;  %v2176_v26 = vpack.c.bf16 %v7679_v46, %v7677_v33 }
 0x25e   : > { %v7683_v28 = vpop.eup %7682  ;;  %v1959_v40 = vpop.f32.mrf.mxu1 }
 0x25f   : > { %7686 = vtanh.f32 %v1968_v10  ;;  %v1960_v30 = vadd.f32 %v9576_v38, %v1959_v40  ;;  %v2175_v62 = vpack.c.bf16 %v7683_v28, %v7681_v9  ;;  %6868 = vst [vmem:[#allocation7 + $0x68] sm:$0xff] %v2176_v26  }
 0x260   : > { %7688 = vtanh.f32 %v1957_v35 }
 0x261   : > { %7690 = vtanh.f32 %v1960_v30  ;;  %6867 = vst [vmem:[#allocation7 + $0x60] sm:$0xff] %v2175_v62   ;;  %3579 = vxpose.xlu0.c.b16.cont [5/8] %v2175_v62, 128 }
 0x265   : > { %3580 = vxpose.xlu0.c.b16.cont [6/8] %v2176_v26, 128 }
 0x268   : > { %v7412_v25 = vpop.f32.mrf.mxu1  ;;  %v7685_v15 = vpop.eup %7684 }
 0x269   : > { %v1981_v4 = vadd.f32 %v7412_v25, %v9576_v38 }
 0x26a   : > { %v1972_v23 = vpop.f32.mrf.mxu1 }
 0x26b   : > { %v1973_v59 = vadd.f32 %v9576_v38, %v1972_v23  ;;  %7692 = vtanh.f32 %v1981_v4 }
 0x26c   : > { %v7687_v51 = vpop.eup %7686  ;;  %v7413_v41 = vpop.f32.mrf.mxu1 }
 0x26d   : > { %v7689_v22 = vpop.eup %7688  ;;  %v1984_v19 = vadd.f32 %v7413_v41, %v9576_v38  ;;  %v2178_v31 = vpack.c.bf16 %v7687_v51, %v7685_v15 }
 0x26e   : > { %v7691_v53 = vpop.eup %7690  ;;  %v1975_v20 = vpop.f32.mrf.mxu1 }
 0x26f   : > { %7694 = vtanh.f32 %v1984_v19  ;;  %v1976_v45 = vadd.f32 %v9576_v38, %v1975_v20  ;;  %v2177_v5 = vpack.c.bf16 %v7691_v53, %v7689_v22  ;;  %6870 = vst [vmem:[#allocation7 + $0x78] sm:$0xff] %v2178_v31  }
 0x270   : > { %7696 = vtanh.f32 %v1973_v59 }
 0x271   : > { %7698 = vtanh.f32 %v1976_v45  ;;  %6869 = vst [vmem:[#allocation7 + $0x70] sm:$0xff] %v2177_v5   ;;  %3581 = vxpose.xlu0.c.b16.cont [7/8] %v2177_v5, 128 }
 0x275   : > { %3582 = vxpose.xlu0.c.b16.end [8/8] %v2178_v31, 128 }
 0x278   : > { %v7416_v50 = vpop.f32.mrf.mxu1  ;;  %v7693_v29 = vpop.eup %7692 }
 0x279   : > { %3559 = vxpose.xlu0.c.b16.start [1/8] %v9936_v7, 128  ;;  %v1997_v57 = vadd.f32 %v7416_v50, %v9576_v38 }
 0x27a   : > { %v1988_v32 = vpop.f32.mrf.mxu1 }
 0x27b   : > { %v1989_v39 = vadd.f32 %v9576_v38, %v1988_v32  ;;  %7700 = vtanh.f32 %v1997_v57 }
 0x27c   : > { %v7695_v37 = vpop.eup %7694  ;;  %v7417_v60 = vpop.f32.mrf.mxu1 }
 0x27d   : > { %v7697_v13 = vpop.eup %7696  ;;  %3560 = vxpose.xlu0.c.b16.cont [2/8] %v9940_v27, 128  ;;  %v10047_v1 = vpack.c.bf16 %v7695_v37, %v7693_v29  ;;  %v2000_v61 = vadd.f32 %v7417_v60, %v9576_v38 }
 0x27e   : > { %v7699_v8 = vpop.eup %7698  ;;  %v1991_v34 = vpop.f32.mrf.mxu1 }
 0x27f   : > { %v10050_v49 = vpack.c.bf16 %v7699_v8, %v7697_v13  ;;  %6872 = vst [vmem:[#allocation7 + $0x88] sm:$0xff] %v10047_v1   ;;  %7702 = vtanh.f32 %v2000_v61  ;;  %v1992_v7 = vadd.f32 %v9576_v38, %v1991_v34 }
 0x280   : > { %7704 = vtanh.f32 %v1989_v39 }
 0x281   : > { %3561 = vxpose.xlu0.c.b16.cont [3/8] %v9951_v54, 128  ;;  %6871 = vst [vmem:[#allocation7 + $0x80] sm:$0xff] %v10050_v49   ;;  %7706 = vtanh.f32 %v1992_v7 }
 0x285   : > { %3562 = vxpose.xlu0.c.b16.cont [4/8] %v9954_v55, 128 }
 0x288   : > { %v7420_v27 = vpop.f32.mrf.mxu1  ;;  %v7701_v6 = vpop.eup %7700 }
 0x289   : > { %3563 = vxpose.xlu0.c.b16.cont [5/8] %v10008_v63, 128  ;;  %v2013_v56 = vadd.f32 %v7420_v27, %v9576_v38 }
 0x28a   : > { %v2004_v12 = vpop.f32.mrf.mxu1 }
 0x28b   : > { %v2005_v17 = vadd.f32 %v9576_v38, %v2004_v12  ;;  %7708 = vtanh.f32 %v2013_v56 }
 0x28c   : > { %v7421_v16 = vpop.f32.mrf.mxu1  ;;  %v7703_v44 = vpop.eup %7702 }
 0x28d   : > { %v2016_v3 = vadd.f32 %v7421_v16, %v9576_v38  ;;  %3564 = vxpose.xlu0.c.b16.cont [6/8] %v9967_v24, 128  ;;  %v7705_v54 = vpop.eup %7704  ;;  %v10062_v43 = vpack.c.bf16 %v7703_v44, %v7701_v6 }
 0x28e   : > { %v2007_v14 = vpop.f32.mrf.mxu1  ;;  %v7707_v55 = vpop.eup %7706 }
 0x28f   : > { %7710 = vtanh.f32 %v2016_v3  ;;  %v2008_v63 = vadd.f32 %v9576_v38, %v2007_v14  ;;  %v10065_v47 = vpack.c.bf16 %v7707_v55, %v7705_v54  ;;  %6874 = vst [vmem:[#allocation7 + $0x98] sm:$0xff] %v10062_v43  }
 0x290   : > { %7712 = vtanh.f32 %v2005_v17 }
 0x291   : > { %7714 = vtanh.f32 %v2008_v63  ;;  %3565 = vxpose.xlu0.c.b16.cont [7/8] %v10026_v2, 128  ;;  %6873 = vst [vmem:[#allocation7 + $0x90] sm:$0xff] %v10065_v47  }
 0x295   : > { %3566 = vxpose.xlu0.c.b16.end [8/8] %v10023_v48, 128 }
 0x298   : > { %v7709_v24 = vpop.eup %7708 }
 0x29c   : > { %v7711_v58 = vpop.eup %7710 }
 0x29d   : > { %v7713_v36 = vpop.eup %7712  ;;  %v10071_v42 = vpack.c.bf16 %v7711_v58, %v7709_v24 }
 0x29e   : > { %v7715_v52 = vpop.eup %7714 }
 0x29f   : > { %v10073_v33 = vpack.c.bf16 %v7715_v52, %v7713_v36  ;;  %6876 = vst [vmem:[#allocation7 + $0xa8] sm:$0xff] %v10071_v42  }
 0x2a1   : > { %6875 = vst [vmem:[#allocation7 + $0xa0] sm:$0xff] %v10073_v33  }
 0x2bb   : > { %v3583_v46 = vpop.trf.xlu0 }
 0x2bc   : > { %3655 = vmatprep.mubr.bf16.mxu0 %v3583_v46 }
 0x2bf   : > { %v3584_v35 = vpop.trf.xlu0 }
 0x2c3   : > { %v3585_v2 = vpop.trf.xlu0 }
 0x2c7   : > { %v10077_v0 = vpop.trf.xlu0 }
 0x2cb   : > { %v10079_v9 = vpop.trf.xlu0 }
 0x2cd   : > { %v7424_v48 = vpop.f32.mrf.mxu1 }
 0x2ce   : > { %v2029_v10 = vadd.f32 %v7424_v48, %v9576_v38 }
 0x2cf   : > { %v2020_v26 = vpop.f32.mrf.mxu1  ;;  %v10082_v28 = vpop.trf.xlu0 }
 0x2d0   : > { %v2021_v40 = vadd.f32 %v9576_v38, %v2020_v26  ;;  %7716 = vtanh.f32 %v2029_v10 }
 0x2d1   : > { %v7425_v30 = vpop.f32.mrf.mxu1 }
 0x2d2   : > { %v2032_v62 = vadd.f32 %v7425_v30, %v9576_v38 }
 0x2d3   : > { %v2023_v25 = vpop.f32.mrf.mxu1  ;;  %v10087_v23 = vpop.trf.xlu0 }
 0x2d4   : > { %7718 = vtanh.f32 %v2032_v62  ;;  %v2024_v4 = vadd.f32 %v9576_v38, %v2023_v25 }
 0x2d5   : > { %7720 = vtanh.f32 %v2021_v40  ;;  %v7428_v15 = vpop.f32.mrf.mxu1  ;;  %v7756_v40 = vld [vmem:[%s10768_s6] ss:$0 sm:$0xff] }
 0x2d6   : > { %7722 = vtanh.f32 %v2024_v4  ;;  %v2045_v51 = vadd.f32 %v7428_v15, %v9576_v38 }
 0x2d7   : > { %v2036_v59 = vpop.f32.mrf.mxu1  ;;  %v10090_v41 = vpop.trf.xlu0 }
 0x2d8   : > { %v2037_v22 = vadd.f32 %v9576_v38, %v2036_v59  ;;  %7724 = vtanh.f32 %v2045_v51 }
 0x2d9   : > { %v7429_v19 = vpop.f32.mrf.mxu1 }
 0x2da   : > { %v2048_v31 = vadd.f32 %v7429_v19, %v9576_v38 }
 0x2db   : > { %v2039_v53 = vpop.f32.mrf.mxu1  ;;  %v3567_v45 = vpop.trf.xlu0 }
 0x2dc   : > { %7726 = vtanh.f32 %v2048_v31  ;;  %v2040_v20 = vadd.f32 %v9576_v38, %v2039_v53  ;;  %3656 = vmatmul.mubr.bf16.vlgmr.msra.gmra.mxu0 %v3567_v45 }
 0x2dd   : > { %7728 = vtanh.f32 %v2037_v22  ;;  %v7432_v5 = vpop.f32.mrf.mxu1  ;;  %3663 = vmatprep.mubr.bf16.mxu0 %v3584_v35  ;;  %v7717_v57 = vpop.eup %7716 }
 0x2de   : > { %7730 = vtanh.f32 %v2040_v20  ;;  %v2061_v50 = vadd.f32 %v7432_v5, %v9576_v38 }
 0x2df   : > { %v2052_v29 = vpop.f32.mrf.mxu1  ;;  %v3568_v61 = vpop.trf.xlu0 }
 0x2e0   : > { %v2053_v37 = vadd.f32 %v9576_v38, %v2052_v29  ;;  %7732 = vtanh.f32 %v2061_v50 }
 0x2e1   : > { %v7719_v32 = vpop.eup %7718  ;;  %v7433_v13 = vpop.f32.mrf.mxu1 }
 0x2e2   : > { %v7721_v39 = vpop.eup %7720  ;;  %v2064_v60 = vadd.f32 %v7433_v13, %v9576_v38  ;;  %v10098_v8 = vpack.c.bf16 %v7719_v32, %v7717_v57 }
 0x2e3   : > { %v7723_v34 = vpop.eup %7722  ;;  %v2055_v7 = vpop.f32.mrf.mxu1 }
 0x2e4   : > { %7734 = vtanh.f32 %v2064_v60  ;;  %v2056_v27 = vadd.f32 %v9576_v38, %v2055_v7  ;;  %v10101_v56 = vpack.c.bf16 %v7723_v34, %v7721_v39  ;;  %6878 = vst [vmem:[#allocation7 + $0xb8] sm:$0xff] %v10098_v8   ;;  %3664 = vmatmul.mubr.bf16.gmra.mxu0 %v3568_v61  ;;  %v3569_v24 = vpop.trf.xlu0 }
 0x2e5   : > { %7736 = vtanh.f32 %v2053_v37  ;;  %v7436_v12 = vpop.f32.mrf.mxu1  ;;  %3671 = vmatprep.mubr.bf16.mxu0 %v3585_v2  ;;  %v7725_v16 = vpop.eup %7724 }
 0x2e6   : > { %7738 = vtanh.f32 %v2056_v27  ;;  %6877 = vst [vmem:[#allocation7 + $0xb0] sm:$0xff] %v10101_v56   ;;  %v2077_v6 = vadd.f32 %v7436_v12, %v9576_v38 }
 0x2e7   : > { %v2068_v17 = vpop.f32.mrf.mxu1 }
 0x2e8   : > { %v2069_v3 = vadd.f32 %v9576_v38, %v2068_v17  ;;  %7740 = vtanh.f32 %v2077_v6  ;;  %v3570_v51 = vpop.trf.xlu0 }
 0x2e9   : > { %v7727_v44 = vpop.eup %7726  ;;  %v7437_v54 = vpop.f32.mrf.mxu1 }
 0x2ea   : > { %v7729_v14 = vpop.eup %7728  ;;  %v2188_v55 = vpack.c.bf16 %v7727_v44, %v7725_v16  ;;  %v2080_v63 = vadd.f32 %v7437_v54, %v9576_v38 }
 0x2eb   : > { %v7731_v58 = vpop.eup %7730  ;;  %v2071_v36 = vpop.f32.mrf.mxu1 }
 0x2ec   : > { %v2187_v52 = vpack.c.bf16 %v7731_v58, %v7729_v14  ;;  %6880 = vst [vmem:[#allocation7 + $0xc8] sm:$0xff] %v2188_v55   ;;  %7742 = vtanh.f32 %v2080_v63  ;;  %v2072_v46 = vadd.f32 %v9576_v38, %v2071_v36  ;;  %3672 = vmatmul.mubr.bf16.gmra.mxu0 %v3569_v24  ;;  %v3571_v45 = vpop.trf.xlu0 }
 0x2ed   : > { %7744 = vtanh.f32 %v2069_v3  ;;  %v7440_v35 = vpop.f32.mrf.mxu1  ;;  %3679 = vmatprep.mubr.bf16.mxu0 %v10077_v0  ;;  %v7733_v10 = vpop.eup %7732 }
 0x2ee   : > { %3607 = vxpose.xlu1.c.b16.start [1/8] %v2187_v52, 128  ;;  %6879 = vst [vmem:[#allocation7 + $0xc0] sm:$0xff] %v2187_v52   ;;  %7746 = vtanh.f32 %v2072_v46  ;;  %v2093_v2 = vadd.f32 %v7440_v35, %v9576_v38 }
 0x2ef   : > { %v2084_v48 = vpop.f32.mrf.mxu1 }
 0x2f0   : > { %v2085_v30 = vadd.f32 %v7756_v40, %v2084_v48  ;;  %7748 = vtanh.f32 %v2093_v2 }
 0x2f1   : > { %v7735_v26 = vpop.eup %7734  ;;  %v7441_v62 = vpop.f32.mrf.mxu1 }
 0x2f2   : > { %v7737_v25 = vpop.eup %7736  ;;  %3608 = vxpose.xlu1.c.b16.cont [2/8] %v2188_v55, 128  ;;  %v2190_v4 = vpack.c.bf16 %v7735_v26, %v7733_v10  ;;  %v2096_v15 = vadd.f32 %v7756_v40, %v7441_v62  ;;  %v11170_v10 = vmov 0  }
 0x2f3   : > { %v7739_v59 = vpop.eup %7738  ;;  %v2087_v22 = vpop.f32.mrf.mxu1  ;;  %v3833_v26 = vsel %vm3071_vm11, 1, %v11170_v10 }
 0x2f4   : > { %v2189_v0 = vpack.c.bf16 %v7739_v59, %v7737_v25  ;;  %6882 = vst [vmem:[#allocation7 + $0xd8] sm:$0xff] %v2190_v4   ;;  %7750 = vtanh.f32 %v2096_v15  ;;  %v2088_v38 = vadd.f32 %v7756_v40, %v2087_v22  ;;  %3680 = vmatmul.mubr.bf16.gmra.mxu0 %v3570_v51  ;;  %v11171_v25 = vsub.s32 0, %v11166_v11 }
 0x2f5   : > { %7752 = vtanh.f32 %v2085_v30  ;;  %3687 = vmatprep.mubr.bf16.mxu0 %v10079_v9  ;;  %v7741_v19 = vpop.eup %7740  ;;  %v3572_v9 = vpop.trf.xlu0 }
 0x2f6   : > { %6881 = vst [vmem:[#allocation7 + $0xd0] sm:$0xff] %v2189_v0   ;;  %3609 = vxpose.xlu1.c.b16.cont [3/8] %v2189_v0, 128  ;;  %7754 = vtanh.f32 %v2088_v38 }
 0x2f9   : > { %v7743_v31 = vpop.eup %7742  ;;  %v3573_v60 = vpop.trf.xlu0 }
 0x2fa   : > { %v7745_v53 = vpop.eup %7744  ;;  %3610 = vxpose.xlu1.c.b16.cont [4/8] %v2190_v4, 128  ;;  %v2192_v20 = vpack.c.bf16 %v7743_v31, %v7741_v19  ;;  %v10135_v4 = vrot.slane %v3833_v26, %v11171_v25 }
 0x2fb   : > { %v7747_v5 = vpop.eup %7746 }
 0x2fc   : > { %v2191_v50 = vpack.c.bf16 %v7747_v5, %v7745_v53  ;;  %6884 = vst [vmem:[#allocation7 + $0xe8] sm:$0xff] %v2192_v20   ;;  %3688 = vmatmul.mubr.bf16.gmra.mxu0 %v3571_v45  ;;  %vm3838_vm12 = vcmp.eq.s32.totalorder %v10135_v4, 1 }
 0x2fd   : > { %3695 = vmatprep.mubr.bf16.mxu0 %v10082_v28  ;;  %v7749_v29 = vpop.eup %7748  ;;  %v3574_v28 = vpop.trf.xlu0 }
 0x2fe   : > { %6883 = vst [vmem:[#allocation7 + $0xe0] sm:$0xff] %v2191_v50   ;;  %3611 = vxpose.xlu1.c.b16.cont [5/8] %v2191_v50, 128 }
 0x301   : > { %v7751_v57 = vpop.eup %7750 }
 0x302   : > { %v7753_v32 = vpop.eup %7752  ;;  %3612 = vxpose.xlu1.c.b16.cont [6/8] %v2192_v20, 128  ;;  %v2194_v37 = vpack.c.bf16 %v7751_v57, %v7749_v29 }
 0x303   : > { %v7755_v13 = vpop.eup %7754 }
 0x304   : > { %v2193_v39 = vpack.c.bf16 %v7755_v13, %v7753_v32  ;;  %6886 = vst [vmem:[#allocation7 + $0xf8] sm:$0xff] %v2194_v37   ;;  %3696 = vmatmul.mubr.bf16.gmra.mxu0 %v3572_v9 }
 0x305   : > { %3703 = vmatprep.mubr.bf16.mxu0 %v10087_v23 }
 0x306   : > { %6885 = vst [vmem:[#allocation7 + $0xf0] sm:$0xff] %v2193_v39   ;;  %3613 = vxpose.xlu1.c.b16.cont [7/8] %v2193_v39, 128 }
 0x30a   : > { %3614 = vxpose.xlu1.c.b16.end [8/8] %v2194_v37, 128 }
 0x30c   : > { %3704 = vmatmul.mubr.bf16.gmra.mxu0 %v3573_v60 }
 0x30d   : > { %3711 = vmatprep.mubr.bf16.mxu0 %v10090_v41 }
 0x30e   : > { %3591 = vxpose.xlu1.c.b16.start [1/8] %v10050_v49, 128 }
 0x312   : > { %3592 = vxpose.xlu1.c.b16.cont [2/8] %v10047_v1, 128 }
 0x314   : > { %3712 = vmatmul.mubr.bf16.gmra.mxu0 %v3574_v28 }
 0x316   : > { %3593 = vxpose.xlu1.c.b16.cont [3/8] %v10065_v47, 128 }
 0x31a   : > { %3594 = vxpose.xlu1.c.b16.cont [4/8] %v10062_v43, 128 }
 0x31e   : > { %3595 = vxpose.xlu1.c.b16.cont [5/8] %v10073_v33, 128 }
 0x322   : > { %3596 = vxpose.xlu1.c.b16.cont [6/8] %v10071_v42, 128 }
 0x326   : > { %3597 = vxpose.xlu1.c.b16.cont [7/8] %v10101_v56, 128 }
 0x32a   : > { %3598 = vxpose.xlu1.c.b16.end [8/8] %v10098_v8, 128 }
 0x350   : > { %v3615_v23 = vpop.trf.xlu1 }
 0x351   : > { %3752 = vmatprep.mubr.bf16.mxu1 %v3615_v23 }
 0x354   : > { %v3616_v49 = vpop.trf.xlu1 }
 0x358   : > { %v3617_v41 = vpop.trf.xlu1 }
 0x35c   : > { %v3618_v61 = vpop.trf.xlu1 }
 0x360   : > { %v3619_v1 = vpop.trf.xlu1 }
 0x364   : > { %v3620_v34 = vpop.trf.xlu1 }
 0x368   : > { %v3621_v47 = vpop.trf.xlu1 }
 0x36c   : > { %v3622_v7 = vpop.trf.xlu1 }
 0x370   : > { %v3599_v43 = vpop.trf.xlu1 }
 0x371   : > { %3753 = vmatmul.mubr.bf16.vlgmr.msra.gmra.mxu1 %v3599_v43 }
 0x372   : > { %3760 = vmatprep.mubr.bf16.mxu1 %v3616_v49 }
 0x374   : > { %v3600_v33 = vpop.trf.xlu1 }
 0x378   : > { %v3601_v42 = vpop.trf.xlu1 }
 0x379   : > { %3761 = vmatmul.mubr.bf16.gmra.mxu1 %v3600_v33 }
 0x37a   : > { %3768 = vmatprep.mubr.bf16.mxu1 %v3617_v41 }
 0x37c   : > { %v3602_v27 = vpop.trf.xlu1 }
 0x380   : > { %v3603_v8 = vpop.trf.xlu1 }
 0x381   : > { %3769 = vmatmul.mubr.bf16.gmra.mxu1 %v3601_v42 }
 0x382   : > { %3776 = vmatprep.mubr.bf16.mxu1 %v3618_v61 }
 0x384   : > { %v3604_v56 = vpop.trf.xlu1 }
 0x388   : > { %v3605_v12 = vpop.trf.xlu1 }
 0x389   : > { %3777 = vmatmul.mubr.bf16.gmra.mxu1 %v3602_v27 }
 0x38a   : > { %3784 = vmatprep.mubr.bf16.mxu1 %v3619_v1 }
 0x38c   : > { %v3606_v6 = vpop.trf.xlu1 }
 0x391   : > { %3785 = vmatmul.mubr.bf16.gmra.mxu1 %v3603_v8 }
 0x392   : > { %3792 = vmatprep.mubr.bf16.mxu1 %v3620_v34 }
 0x399   : > { %3793 = vmatmul.mubr.bf16.gmra.mxu1 %v3604_v56 }
 0x39a   : > { %3800 = vmatprep.mubr.bf16.mxu1 %v3621_v47 }
 0x39c   : > { %v7010_v17 = vpop.f32.mrf.mxu0 }
 0x39e   : > { %v7011_v16 = vpop.f32.mrf.mxu0 }
 0x39f   : > { %v7012_v15 = vadd.f32 %v7011_v16, %v7010_v17 }
 0x3a0   : > { %v7013_v44 = vpop.f32.mrf.mxu0 }
 0x3a1   : > { %3801 = vmatmul.mubr.bf16.gmra.mxu1 %v3605_v12 }
 0x3a2   : > { %3808 = vmatprep.mubr.bf16.mxu1 %v3622_v7  ;;  %v7014_v3 = vpop.f32.mrf.mxu0 }
 0x3a3   : > { %v7015_v18 = vadd.f32 %v7014_v3, %v7013_v44 }
 0x3a4   : > { %v7016_v54 = vpop.f32.mrf.mxu0 }
 0x3a6   : > { %v7017_v14 = vpop.f32.mrf.mxu0 }
 0x3a7   : > { %v7018_v45 = vadd.f32 %v7017_v14, %v7016_v54 }
 0x3a8   : > { %v7019_v55 = vpop.f32.mrf.mxu0 }
 0x3a9   : > { %3809 = vmatmul.mubr.bf16.gmra.mxu1 %v3606_v6 }
 0x3aa   : > { %v7020_v63 = vpop.f32.mrf.mxu0 }
 0x3ab   : > { %v7021_v9 = vadd.f32 %v7020_v63, %v7019_v55 }
 0x3ac   : > { %v7022_v24 = vpop.f32.mrf.mxu0 }
 0x3ae   : > { %v7023_v58 = vpop.f32.mrf.mxu0 }
 0x3af   : > { %v7024_v41 = vadd.f32 %v7023_v58, %v7022_v24 }
 0x3b0   : > { %v7025_v36 = vpop.f32.mrf.mxu0 }
 0x3b2   : > { %v7026_v52 = vpop.f32.mrf.mxu0 }
 0x3b3   : > { %v7027_v33 = vadd.f32 %v7026_v52, %v7025_v36 }
 0x3b4   : > { %v7028_v46 = vpop.f32.mrf.mxu0 }
 0x3b6   : > { %v7029_v35 = vpop.f32.mrf.mxu0 }
 0x3b7   : > { %v7030_v17 = vadd.f32 %v7029_v35, %v7028_v46 }
 0x3b8   : > { %v10126_v2 = vpop.f32.mrf.mxu0 }
 0x3ba   : > { %v7032_v48 = vpop.f32.mrf.mxu0 }
 0x3bb   : > { %v7033_v63 = vadd.f32 %v7032_v48, %v10126_v2 }
 0x3bc   : > { %v10131_v30 = vpop.f32.mrf.mxu0 }
 0x3be   : > { %v7035_v22 = vpop.f32.mrf.mxu0 }
 0x3bf   : > { %v7036_v35 = vadd.f32 %v7035_v22, %v10131_v30 }
 0x3c0   : > { %v7037_v53 = vpop.f32.mrf.mxu0 }
 0x3c2   : > { %v7038_v57 = vpop.f32.mrf.mxu0 }
 0x3c3   : > { %v7039_v48 = vadd.f32 %v7038_v57, %v7037_v53 }
 0x3c4   : > { %v7040_v28 = vpop.f32.mrf.mxu0 }
 0x3c6   : > { %v7041_v47 = vpop.f32.mrf.mxu0 }
 0x3c7   : > { %v7042_v30 = vadd.f32 %v7041_v47, %v7040_v28 }
 0x3c8   : > { %v7043_v56 = vpop.f32.mrf.mxu0 }
 0x3ca   : > { %v7044_v54 = vpop.f32.mrf.mxu0 }
 0x3cb   : > { %v7045_v53 = vadd.f32 %v7044_v54, %v7043_v56 }
 0x3cc   : > { %v7046_v52 = vpop.f32.mrf.mxu0 }
 0x3ce   : > { %v7047_v25 = vpop.f32.mrf.mxu0 }
 0x431   : > { %v7074_v40 = vpop.f32.mrf.mxu1 }
 0x433   : > { %v7075_v62 = vpop.f32.mrf.mxu1 }
 0x434   : > { %v7076_v51 = vadd.f32 %v7075_v62, %v7074_v40 }
 0x435   : > { %v7077_v59 = vpop.f32.mrf.mxu1 }
 0x436   : > { %v3755_v0 = vadd.f32 %v7076_v51, %v7012_v15 }
 0x437   : > { %v7078_v38 = vpop.f32.mrf.mxu1 }
 0x438   : > { %v3839_v21 = vsel %vm3838_vm12, %v3755_v0, 0.0  ;;  %v7079_v19 = vadd.f32 %v7078_v38, %v7077_v59  ;;  %v7049_v38 = vpop.f32.mrf.mxu0 }
 0x439   : > { %3855 = vst [vmem:[#allocation3 + $0x30] sm:$0xff] %v3839_v21  ;;  %v7080_v31 = vpop.f32.mrf.mxu1 }
 0x43a   : > { %v3758_v20 = vadd.f32 %v7079_v19, %v7015_v18 }
 0x43b   : > { %v7081_v11 = vpop.f32.mrf.mxu1 }
 0x43c   : > { %v3840_v5 = vsel %vm3838_vm12, %v3758_v20, 0.0  ;;  %v7082_v50 = vadd.f32 %v7081_v11, %v7080_v31  ;;  %v7050_v20 = vpop.f32.mrf.mxu0 }
 0x43d   : > { %3856 = vst [vmem:[#allocation3] sm:$0xff] %v3840_v5  ;;  %v7083_v29 = vpop.f32.mrf.mxu1 }
 0x43e   : > { %v3763_v32 = vadd.f32 %v7082_v50, %v7018_v45  ;;  %v7052_v57 = vpop.f32.mrf.mxu0 }
 0x43f   : > { %v7084_v37 = vpop.f32.mrf.mxu1 }
 0x440   : > { %v3841_v13 = vsel %vm3838_vm12, %v3763_v32, 0.0  ;;  %v7085_v39 = vadd.f32 %v7084_v37, %v7083_v29 }
 0x441   : > { %3857 = vst [vmem:[#allocation3 + $0x58] sm:$0xff] %v3841_v13  ;;  %v7086_v60 = vpop.f32.mrf.mxu1 }
 0x442   : > { %v3766_v23 = vadd.f32 %v7085_v39, %v7021_v9  ;;  %v7048_v9 = vadd.f32 %v7047_v25, %v7046_v52 }
 0x443   : > { %v7087_v49 = vpop.f32.mrf.mxu1 }
 0x444   : > { %v3842_v61 = vsel %vm3838_vm12, %v3766_v23, 0.0  ;;  %v7088_v1 = vadd.f32 %v7087_v49, %v7086_v60  ;;  %v7053_v60 = vpop.f32.mrf.mxu0 }
 0x445   : > { %3858 = vst [vmem:[#allocation3 + $0x18] sm:$0xff] %v3842_v61  ;;  %v7089_v34 = vpop.f32.mrf.mxu1 }
 0x446   : > { %v3771_v7 = vadd.f32 %v7088_v1, %v7024_v41  ;;  %v7051_v41 = vadd.f32 %v7050_v20, %v7049_v38 }
 0x447   : > { %v7090_v43 = vpop.f32.mrf.mxu1 }
 0x448   : > { %v3843_v42 = vsel %vm3838_vm12, %v3771_v7, 0.0  ;;  %v7091_v27 = vadd.f32 %v7090_v43, %v7089_v34  ;;  %v7055_v34 = vpop.f32.mrf.mxu0 }
 0x449   : > { %3859 = vst [vmem:[#allocation3 + $0x50] sm:$0xff] %v3843_v42  ;;  %v7092_v8 = vpop.f32.mrf.mxu1 }
 0x44a   : > { %v3774_v12 = vadd.f32 %v7091_v27, %v7027_v33  ;;  %v7054_v33 = vadd.f32 %v7053_v60, %v7052_v57 }
 0x44b   : > { %v7093_v6 = vpop.f32.mrf.mxu1 }
 0x44c   : > { %v3844_v16 = vsel %vm3838_vm12, %v3774_v12, 0.0  ;;  %v7094_v44 = vadd.f32 %v7093_v6, %v7092_v8  ;;  %v7056_v8 = vpop.f32.mrf.mxu0 }
 0x44d   : > { %3860 = vst [vmem:[#allocation3 + $0x68] sm:$0xff] %v3844_v16  ;;  %v7095_v3 = vpop.f32.mrf.mxu1 }
 0x44e   : > { %v3779_v14 = vadd.f32 %v7094_v44, %v7030_v17  ;;  %v7057_v17 = vadd.f32 %v7056_v8, %v7055_v34 }
 0x44f   : > { %v7096_v55 = vpop.f32.mrf.mxu1 }
 0x450   : > { %v3845_v24 = vsel %vm3838_vm12, %v3779_v14, 0.0  ;;  %v7097_v58 = vadd.f32 %v7096_v55, %v7095_v3 }
 0x451   : > { %3861 = vst [vmem:[#allocation3 + $0x8] sm:$0xff] %v3845_v24  ;;  %v7098_v36 = vpop.f32.mrf.mxu1 }
 0x452   : > { %v3782_v10 = vadd.f32 %v7097_v58, %v7033_v63 }
 0x453   : > { %v7099_v46 = vpop.f32.mrf.mxu1 }
 0x454   : > { %v3846_v26 = vsel %vm3838_vm12, %v3782_v10, 0.0  ;;  %v7100_v40 = vadd.f32 %v7099_v46, %v7098_v36 }
 0x455   : > { %3862 = vst [vmem:[#allocation3 + $0x48] sm:$0xff] %v3846_v26  ;;  %v7101_v62 = vpop.f32.mrf.mxu1 }
 0x456   : > { %v3787_v15 = vadd.f32 %v7100_v40, %v7036_v35 }
 0x457   : > { %v7102_v2 = vpop.f32.mrf.mxu1 }
 0x458   : > { %v3847_v51 = vsel %vm3838_vm12, %v3787_v15, 0.0  ;;  %v7103_v59 = vadd.f32 %v7102_v2, %v7101_v62 }
 0x459   : > { %3863 = vst [vmem:[#allocation3 + $0x40] sm:$0xff] %v3847_v51  ;;  %v7104_v0 = vpop.f32.mrf.mxu1 }
 0x45a   : > { %v3790_v18 = vadd.f32 %v7103_v59, %v7039_v48 }
 0x45b   : > { %v7105_v21 = vpop.f32.mrf.mxu1 }
 0x45c   : > { %v3848_v22 = vsel %vm3838_vm12, %v3790_v18, 0.0  ;;  %v7106_v19 = vadd.f32 %v7105_v21, %v7104_v0 }
 0x45d   : > { %3864 = vst [vmem:[#allocation3 + $0x20] sm:$0xff] %v3848_v22  ;;  %v7107_v31 = vpop.f32.mrf.mxu1 }
 0x45e   : > { %v3795_v11 = vadd.f32 %v7106_v19, %v7042_v30 }
 0x45f   : > { %v7108_v45 = vpop.f32.mrf.mxu1 }
 0x460   : > { %v3849_v5 = vsel %vm3838_vm12, %v3795_v11, 0.0  ;;  %v7109_v50 = vadd.f32 %v7108_v45, %v7107_v31 }
 0x461   : > { %3865 = vst [vmem:[#allocation3 + $0x10] sm:$0xff] %v3849_v5  ;;  %v7110_v29 = vpop.f32.mrf.mxu1 }
 0x462   : > { %v3798_v32 = vadd.f32 %v7109_v50, %v7045_v53 }
 0x463   : > { %v7111_v37 = vpop.f32.mrf.mxu1 }
 0x464   : > { %v3850_v13 = vsel %vm3838_vm12, %v3798_v32, 0.0  ;;  %v7112_v39 = vadd.f32 %v7111_v37, %v7110_v29 }
 0x465   : > { %3866 = vst [vmem:[#allocation3 + $0x38] sm:$0xff] %v3850_v13  ;;  %v7113_v28 = vpop.f32.mrf.mxu1 }
 0x466   : > { %v3803_v23 = vadd.f32 %v7112_v39, %v7048_v9 }
 0x467   : > { %v7114_v49 = vpop.f32.mrf.mxu1 }
 0x468   : > { %v3851_v61 = vsel %vm3838_vm12, %v3803_v23, 0.0  ;;  %v7115_v1 = vadd.f32 %v7114_v49, %v7113_v28 }
 0x469   : > { %3867 = vst [vmem:[#allocation3 + $0x60] sm:$0xff] %v3851_v61  ;;  %v7116_v47 = vpop.f32.mrf.mxu1 }
 0x46a   : > { %v3806_v7 = vadd.f32 %v7115_v1, %v7051_v41 }
 0x46b   : > { %v7117_v43 = vpop.f32.mrf.mxu1 }
 0x46c   : > { %v3852_v42 = vsel %vm3838_vm12, %v3806_v7, 0.0  ;;  %v7118_v27 = vadd.f32 %v7117_v43, %v7116_v47 }
 0x46d   : > { %3868 = vst [vmem:[#allocation3 + $0x70] sm:$0xff] %v3852_v42  ;;  %v7119_v56 = vpop.f32.mrf.mxu1 }
 0x46e   : > { %v3811_v12 = vadd.f32 %v7118_v27, %v7054_v33 }
 0x46f   : > { %v7120_v6 = vpop.f32.mrf.mxu1 }
 0x470   : > { %v3853_v16 = vsel %vm3838_vm12, %v3811_v12, 0.0  ;;  %v7121_v44 = vadd.f32 %v7120_v6, %v7119_v56 }
 0x471   : > { %3869 = vst [vmem:[#allocation3 + $0x78] sm:$0xff] %v3853_v16 }
 0x472   : > { %v3814_v3 = vadd.f32 %v7121_v44, %v7057_v17 }
 0x474   : > { %v3854_v54 = vsel %vm3838_vm12, %v3814_v3, 0.0 }
 0x475   : > { %3870 = vst [vmem:[#allocation3 + $0x28] sm:$0xff] %v3854_v54 }
 0x476 PF: > { %p6323_p2 = scmp.ne.s32.totalorder %s7975_s3, 1 }
 0x478   : > { %3877 = sbr.rel (%p6323_p2) target bundleno = 2057 (0x809), region = 72 }
 0x47d   : > { %v3914_v14 = vld [vmem:[#allocation3 + $0x78] sm:$0xff]  ;;  %v3915_v55 = vld [vmem:[#allocation3 + $0x28] sm:$0xff]  ;;  %v3912_v63 = vld [vmem:[#allocation3 + $0x60] sm:$0xff] }
 0x47e   : > { %v3930_v24 = vmul.f32 0.088388346, %v3914_v14  ;;  %v3931_v58 = vmul.f32 0.088388346, %v3915_v55  ;;  %v3913_v36 = vld [vmem:[#allocation3 + $0x70] sm:$0xff]  ;;  %v3911_v35 = vld [vmem:[#allocation3 + $0x38] sm:$0xff] }
 0x47f   : > { %v3910_v52 = vld [vmem:[#allocation3 + $0x10] sm:$0xff]  ;;  %v3928_v10 = vmul.f32 0.088388346, %v3912_v63  ;;  %v3929_v46 = vmul.f32 0.088388346, %v3913_v36  ;;  %v3908_v26 = vld [vmem:[#allocation3 + $0x40] sm:$0xff] }
 0x480   : > { %3946 = vst [vmem:[#allocation3 + $0x78] sm:$0xff] %v3930_v24  ;;  %3947 = vst [vmem:[#allocation3 + $0x28] sm:$0xff] %v3931_v58  ;;  %v4105_v4 = vpack.c.bf16 %v3931_v58, %v3930_v24  ;;  %v3926_v40 = vmul.f32 0.088388346, %v3910_v52  ;;  %v3927_v62 = vmul.f32 0.088388346, %v3911_v35 }
 0x481   : > { %v3909_v25 = vld [vmem:[#allocation3 + $0x20] sm:$0xff]  ;;  %v3906_v15 = vld [vmem:[#allocation3 + $0x8] sm:$0xff]  ;;  %3944 = vst [vmem:[#allocation3 + $0x60] sm:$0xff] %v3928_v10  ;;  %3945 = vst [vmem:[#allocation3 + $0x70] sm:$0xff] %v3929_v46  ;;  %v4104_v2 = vpack.c.bf16 %v3929_v46, %v3928_v10  ;;  %v3924_v48 = vmul.f32 0.088388346, %v3908_v26 }
 0x482   : > { %v3925_v51 = vmul.f32 0.088388346, %v3909_v25  ;;  %v3907_v59 = vld [vmem:[#allocation3 + $0x48] sm:$0xff]  ;;  %v3904_v0 = vld [vmem:[#allocation3 + $0x50] sm:$0xff]  ;;  %7442 = vmatprep.subr.bf16.mxu0 %v4105_v4  ;;  %3942 = vst [vmem:[#allocation3 + $0x10] sm:$0xff] %v3926_v40  ;;  %3943 = vst [vmem:[#allocation3 + $0x38] sm:$0xff] %v3927_v62  ;;  %v4103_v11 = vpack.c.bf16 %v3927_v62, %v3926_v40 }
 0x483   : > { %v3922_v38 = vmul.f32 0.088388346, %v3906_v15  ;;  %v3923_v18 = vmul.f32 0.088388346, %v3907_v59  ;;  %v3905_v21 = vld [vmem:[#allocation3 + $0x68] sm:$0xff]  ;;  %v3902_v30 = vld [vmem:[#allocation3 + $0x58] sm:$0xff]  ;;  %7443 = vmatpush3.bf16.msra.mxu0 %v4105_v4 }
 0x484   : > { %3940 = vst [vmem:[#allocation3 + $0x40] sm:$0xff] %v3924_v48  ;;  %3941 = vst [vmem:[#allocation3 + $0x20] sm:$0xff] %v3925_v51  ;;  %v3920_v22 = vmul.f32 0.088388346, %v3904_v0  ;;  %v3921_v19 = vmul.f32 0.088388346, %v3905_v21  ;;  %7444 = vmatprep.subr.bf16.mxu0 %v4104_v2  ;;  %v4102_v32 = vpack.c.bf16 %v3925_v51, %v3924_v48 }
 0x485   : > { %v3903_v31 = vld [vmem:[#allocation3 + $0x18] sm:$0xff]  ;;  %v3900_v20 = vld [vmem:[#allocation3 + $0x30] sm:$0xff]  ;;  %3938 = vst [vmem:[#allocation3 + $0x8] sm:$0xff] %v3922_v38  ;;  %3939 = vst [vmem:[#allocation3 + $0x48] sm:$0xff] %v3923_v18  ;;  %v3918_v45 = vmul.f32 0.088388346, %v3902_v30  ;;  %v4101_v37 = vpack.c.bf16 %v3923_v18, %v3922_v38 }
 0x486   : > { %v3919_v53 = vmul.f32 0.088388346, %v3903_v31  ;;  %v3901_v5 = vld [vmem:[#allocation3] sm:$0xff]  ;;  %3936 = vst [vmem:[#allocation3 + $0x50] sm:$0xff] %v3920_v22  ;;  %3937 = vst [vmem:[#allocation3 + $0x68] sm:$0xff] %v3921_v19  ;;  %v4100_v9 = vpack.c.bf16 %v3921_v19, %v3920_v22  ;;  %v7758_v60 = vld [vmem:[#allocation7 + $0x8] sm:$0xff]  }
 0x487   : > { %v7757_v50 = vld [vmem:[#allocation7] sm:$0xff]   ;;  %v3916_v29 = vmul.f32 0.088388346, %v3900_v20  ;;  %v3917_v57 = vmul.f32 0.088388346, %v3901_v5  ;;  %3934 = vst [vmem:[#allocation3 + $0x58] sm:$0xff] %v3918_v45  ;;  %7445 = vmatpush3.bf16.msra.mxu0 %v4104_v2 }
 0x488   : > { %3935 = vst [vmem:[#allocation3 + $0x18] sm:$0xff] %v3919_v53  ;;  %7458 = vmatprep.mubr.bf16.mxu0 %v7757_v50  ;;  %7446 = vmatprep.subr.bf16.mxu0 %v4103_v11  ;;  %v4099_v13 = vpack.c.bf16 %v3919_v53, %v3918_v45  ;;  %v7759_v28 = vld [vmem:[#allocation7 + $0x10] sm:$0xff]   ;;  %v7760_v23 = vld [vmem:[#allocation7 + $0x18] sm:$0xff]   ;;  %v7761_v49 = vld [vmem:[#allocation7 + $0x20] sm:$0xff]   ;;  %v7991_v24 = vmov -3e+38  }
 0x489   : > { %3932 = vst [vmem:[#allocation3 + $0x30] sm:$0xff] %v3916_v29  ;;  %3933 = vst [vmem:[#allocation3] sm:$0xff] %v3917_v57  ;;  %v4098_v39 = vpack.c.bf16 %v3917_v57, %v3916_v29  ;;  %v7762_v41 = vld [vmem:[#allocation7 + $0x28] sm:$0xff]   ;;  %v7763_v61 = vld [vmem:[#allocation7 + $0x30] sm:$0xff]   ;;  %v7992_v58 = vmov 0.0  }
 0x48a   : > { %v7764_v1 = vld [vmem:[#allocation7 + $0x38] sm:$0xff]   ;;  %v7765_v34 = vld [vmem:[#allocation7 + $0x40] sm:$0xff]   ;;  %v7766_v47 = vld [vmem:[#allocation7 + $0x48] sm:$0xff]   ;;  %3882 = vst [vmem:[#allocation4] sm:$0x1] %v7991_v24 }
 0x48b   : > { %7447 = vmatpush3.bf16.msra.mxu0 %v4103_v11  ;;  %v7767_v7 = vld [vmem:[#allocation7 + $0x50] sm:$0xff]   ;;  %v7768_v43 = vld [vmem:[#allocation7 + $0x58] sm:$0xff]   ;;  %v7769_v33 = vld [vmem:[#allocation7 + $0x60] sm:$0xff]   ;;  %3883 = vst [vmem:[#allocation5] sm:$0x1] %v7992_v58 }
 0x48c   : > { %7448 = vmatprep.subr.bf16.mxu0 %v4102_v32  ;;  %v7770_v42 = vld [vmem:[#allocation7 + $0x68] sm:$0xff]   ;;  %v7771_v27 = vld [vmem:[#allocation7 + $0x70] sm:$0xff]   ;;  %v7772_v8 = vld [vmem:[#allocation7 + $0x78] sm:$0xff]  }
 0x48d   : > { %v7773_v56 = vld [vmem:[#allocation7 + $0x80] sm:$0xff]   ;;  %v7774_v12 = vld [vmem:[#allocation7 + $0x88] sm:$0xff]   ;;  %v7775_v6 = vld [vmem:[#allocation7 + $0x90] sm:$0xff]  }
 0x48e   : > { %v7776_v17 = vld [vmem:[#allocation7 + $0x98] sm:$0xff]   ;;  %v7777_v16 = vld [vmem:[#allocation8 + $0x40] sm:$0xff]   ;;  %v7779_v3 = vld [vmem:[#allocation8 + $0x48] sm:$0xff]  }
 0x48f   : > { %7449 = vmatpush3.bf16.msra.mxu0 %v4102_v32  ;;  %v7778_v44 = vld [vmem:[#allocation8] sm:$0xff]   ;;  %5402 = vxpose.xlu0.c.b16.start [1/8] %v7777_v16, 128  ;;  %v7780_v54 = vld [vmem:[#allocation8 + $0x8] sm:$0xff]   ;;  %v7781_v14 = vld [vmem:[#allocation8 + $0x50] sm:$0xff]  }
 0x490   : > { %7450 = vmatprep.subr.bf16.mxu0 %v4101_v37  ;;  %5386 = vxpose.xlu1.c.b16.start [1/8] %v7778_v44, 128  ;;  %v7782_v55 = vld [vmem:[#allocation8 + $0x10] sm:$0xff]   ;;  %v7783_v63 = vld [vmem:[#allocation8 + $0x58] sm:$0xff]   ;;  %v7785_v52 = vld [vmem:[#allocation8 + $0x60] sm:$0xff]  }
 0x491   : > { %v7784_v36 = vld [vmem:[#allocation8 + $0x18] sm:$0xff]   ;;  %v7786_v46 = vld [vmem:[#allocation8 + $0x20] sm:$0xff]   ;;  %v7787_v26 = vld [vmem:[#allocation8 + $0x68] sm:$0xff]  }
 0x492   : > { %v7788_v40 = vld [vmem:[#allocation8 + $0x28] sm:$0xff]   ;;  %v7789_v25 = vld [vmem:[#allocation8 + $0x70] sm:$0xff]   ;;  %v7791_v51 = vld [vmem:[#allocation8 + $0x78] sm:$0xff]  }
 0x493   : > { %7451 = vmatpush3.bf16.msra.mxu0 %v4101_v37  ;;  %5403 = vxpose.xlu0.c.b16.cont [2/8] %v7779_v3, 128  ;;  %v7790_v2 = vld [vmem:[#allocation8 + $0x30] sm:$0xff]   ;;  %v7792_v0 = vld [vmem:[#allocation8 + $0x38] sm:$0xff]  }
 0x494   : > { %7452 = vmatprep.subr.bf16.mxu0 %v4100_v9  ;;  %5387 = vxpose.xlu1.c.b16.cont [2/8] %v7780_v54, 128  ;;  %v7800_v44 = vld [vmem:[#allocation8 + $0x98] sm:$0xff]  }
 0x497   : > { %7453 = vmatpush3.bf16.msra.mxu0 %v4100_v9  ;;  %5404 = vxpose.xlu0.c.b16.cont [3/8] %v7781_v14, 128  ;;  %v7793_v9 = vld [vmem:[#allocation8 + $0xc0] sm:$0xff]  }
 0x498   : > { %7454 = vmatprep.subr.bf16.mxu0 %v4099_v13  ;;  %5388 = vxpose.xlu1.c.b16.cont [3/8] %v7782_v55, 128 }
 0x49b   : > { %7455 = vmatpush3.bf16.msra.mxu0 %v4099_v13  ;;  %5405 = vxpose.xlu0.c.b16.cont [4/8] %v7783_v63, 128 }
 0x49c   : > { %7456 = vmatprep.subr.bf16.mxu0 %v4098_v39  ;;  %5389 = vxpose.xlu1.c.b16.cont [4/8] %v7784_v36, 128  ;;  %v7801_v36 = vld [vmem:[#allocation8 + $0xe0] sm:$0xff]  }
 0x49f   : > { %7457 = vmatpush3.bf16.msra.mxu0 %v4098_v39  ;;  %5406 = vxpose.xlu0.c.b16.cont [5/8] %v7785_v52, 128  ;;  %v7794_v39 = vld [vmem:[#allocation8 + $0x80] sm:$0xff]  }
 0x4a0   : > { %5390 = vxpose.xlu1.c.b16.cont [5/8] %v7786_v46, 128  ;;  %v7802_v46 = vld [vmem:[#allocation8 + $0xa0] sm:$0xff]  }
 0x4a2   : > { %7459 = vmatmul.mubr.bf16.vlgmr.msra.gmra.mxu0 %v7758_v60 }
 0x4a3   : > { %7462 = vmatprep.mubr.bf16.mxu0 %v7759_v28  ;;  %5407 = vxpose.xlu0.c.b16.cont [6/8] %v7787_v26, 128 }
 0x4a4   : > { %5391 = vxpose.xlu1.c.b16.cont [6/8] %v7788_v40, 128 }
 0x4a7   : > { %5408 = vxpose.xlu0.c.b16.cont [7/8] %v7789_v25, 128 }
 0x4a8   : > { %5392 = vxpose.xlu1.c.b16.cont [7/8] %v7790_v2, 128 }
 0x4aa   : > { %7463 = vmatmul.mubr.bf16.gmra.mxu0 %v7760_v23  ;;  %v7795_v23 = vld [vmem:[#allocation8 + $0xc8] sm:$0xff]  }
 0x4ab   : > { %7466 = vmatprep.mubr.bf16.mxu0 %v7761_v49  ;;  %5409 = vxpose.xlu0.c.b16.end [8/8] %v7791_v51, 128 }
 0x4ac   : > { %5393 = vxpose.xlu1.c.b16.end [8/8] %v7792_v0, 128 }
 0x4af   : > { %5434 = vxpose.xlu0.c.b16.start [1/8] %v7793_v9, 128 }
 0x4b0   : > { %5418 = vxpose.xlu1.c.b16.start [1/8] %v7794_v39, 128 }
 0x4b2   : > { %7467 = vmatmul.mubr.bf16.gmra.mxu0 %v7762_v41  ;;  %v7796_v41 = vld [vmem:[#allocation8 + $0x88] sm:$0xff]  }
 0x4b3   : > { %7470 = vmatprep.mubr.bf16.mxu0 %v7763_v61  ;;  %5435 = vxpose.xlu0.c.b16.cont [2/8] %v7795_v23, 128 }
 0x4b4   : > { %5419 = vxpose.xlu1.c.b16.cont [2/8] %v7796_v41, 128  ;;  %v7804_v41 = vld [vmem:[#allocation8 + $0xa8] sm:$0xff]  }
 0x4ba   : > { %7471 = vmatmul.mubr.bf16.gmra.mxu0 %v7764_v1 }
 0x4bb   : > { %7474 = vmatprep.mubr.bf16.mxu0 %v7765_v34 }
 0x4c2   : > { %7475 = vmatmul.mubr.bf16.gmra.mxu0 %v7766_v47 }
 0x4c3   : > { %7478 = vmatprep.mubr.bf16.mxu0 %v7767_v7  ;;  %v7797_v7 = vld [vmem:[#allocation8 + $0xd0] sm:$0xff]  }
 0x4c4   : > { %5436 = vxpose.xlu0.c.b16.cont [3/8] %v7797_v7, 128 }
 0x4ca   : > { %7479 = vmatmul.mubr.bf16.gmra.mxu0 %v7768_v43 }
 0x4cb   : > { %7482 = vmatprep.mubr.bf16.mxu0 %v7769_v33  ;;  %v7798_v33 = vld [vmem:[#allocation8 + $0x90] sm:$0xff]  }
 0x4cc   : > { %5420 = vxpose.xlu1.c.b16.cont [3/8] %v7798_v33, 128 }
 0x4d0   : > { %5421 = vxpose.xlu1.c.b16.cont [4/8] %v7800_v44, 128 }
 0x4d2   : > { %7483 = vmatmul.mubr.bf16.gmra.mxu0 %v7770_v42 }
 0x4d3   : > { %7486 = vmatprep.mubr.bf16.mxu0 %v7771_v27 }
 0x4d4   : > { %5422 = vxpose.xlu1.c.b16.cont [5/8] %v7802_v46, 128  ;;  %v7807_v46 = vld [vmem:[#allocation8 + $0xf8] sm:$0xff]  }
 0x4d8   : > { %5423 = vxpose.xlu1.c.b16.cont [6/8] %v7804_v41, 128 }
 0x4da   : > { %7487 = vmatmul.mubr.bf16.gmra.mxu0 %v7772_v8 }
 0x4db   : > { %7490 = vmatprep.mubr.bf16.mxu0 %v7773_v56 }
 0x4e2   : > { %7491 = vmatmul.mubr.bf16.gmra.mxu0 %v7774_v12 }
 0x4e3   : > { %7494 = vmatprep.mubr.bf16.mxu0 %v7775_v6 }
 0x4ea   : > { %7495 = vmatmul.mubr.bf16.gmra.mxu0 %v7776_v17  ;;  %v7799_v17 = vld [vmem:[#allocation8 + $0xd8] sm:$0xff]  }
 0x4eb   : > { %5437 = vxpose.xlu0.c.b16.cont [4/8] %v7799_v17, 128  ;;  %v7806_v17 = vld [vmem:[#allocation8 + $0xb0] sm:$0xff]  }
 0x4ec   : > { %5424 = vxpose.xlu1.c.b16.cont [7/8] %v7806_v17, 128 }
 0x4ef   : > { %5438 = vxpose.xlu0.c.b16.cont [5/8] %v7801_v36, 128 }
 0x562   : > { %v10173_v10 = vpop.f32.mrf.mxu0 }
 0x564   : > { %v10175_v35 = vpop.f32.mrf.mxu0 }
 0x566   : > { %v10177_v4 = vpop.f32.mrf.mxu0 }
 0x568   : > { %v10179_v62 = vpop.f32.mrf.mxu0 }
 0x56a   : > { %v10181_v15 = vpop.f32.mrf.mxu0 }
 0x56b   : > { %v4782_v28 = vmax.f32 %v10173_v10, %v10181_v15 }
 0x56c   : > { %v10183_v48 = vpop.f32.mrf.mxu0 }
 0x56d   : > { %v4780_v56 = vmax.f32 %v10175_v35, %v10183_v48 }
 0x56e   : > { %v10185_v59 = vpop.f32.mrf.mxu0 }
 0x56f   : > { %v4783_v34 = vmax.f32 %v10177_v4, %v10185_v59 }
 0x570   : > { %v10187_v38 = vpop.f32.mrf.mxu0 }
 0x571   : > { %v4781_v26 = vmax.f32 %v10179_v62, %v10187_v38 }
 0x572   : > { %v10189_v18 = vpop.f32.mrf.mxu0 }
 0x573   : > { %v4786_v61 = vmax.f32 %v4782_v28, %v10189_v18  ;;  %v7803_v28 = vld [vmem:[#allocation8 + $0xe8] sm:$0xff]  }
 0x574   : > { %v10191_v21 = vpop.f32.mrf.mxu0  ;;  %5439 = vxpose.xlu0.c.b16.cont [6/8] %v7803_v28, 128 }
 0x575   : > { %v4784_v3 = vmax.f32 %v4780_v56, %v10191_v21 }
 0x576   : > { %v10193_v30 = vpop.f32.mrf.mxu0 }
 0x577   : > { %v4787_v42 = vmax.f32 %v4783_v34, %v10193_v30 }
 0x578   : > { %v10195_v22 = vpop.f32.mrf.mxu0 }
 0x579   : > { %v4785_v0 = vmax.f32 %v4781_v26, %v10195_v22 }
 0x57a   : > { %v10197_v19 = vpop.f32.mrf.mxu0 }
 0x57b   : > { %v4790_v47 = vmax.f32 %v4786_v61, %v10197_v19 }
 0x57c   : > { %v10199_v31 = vpop.f32.mrf.mxu0 }
 0x57d   : > { %v4788_v63 = vmax.f32 %v4784_v3, %v10199_v31 }
 0x57e   : > { %v10201_v20 = vpop.f32.mrf.mxu0 }
 0x57f   : > { %v4791_v12 = vmax.f32 %v4787_v42, %v10201_v20 }
 0x580   : > { %v10203_v11 = vpop.f32.mrf.mxu0 }
 0x581   : > { %v4789_v61 = vmax.f32 %v4785_v0, %v10203_v11 }
 0x582   : > { %v10205_v45 = vpop.f32.mrf.mxu0 }
 0x583   : > { %v4794_v27 = vmax.f32 %v4790_v47, %v10205_v45 }
 0x584   : > { %v10207_v53 = vpop.f32.mrf.mxu0 }
 0x585   : > { %v4792_v40 = vmax.f32 %v4788_v63, %v10207_v53 }
 0x586   : > { %v10209_v5 = vpop.f32.mrf.mxu0 }
 0x587   : > { %v4795_v54 = vmax.f32 %v4791_v12, %v10209_v5  ;;  %v7805_v12 = vld [vmem:[#allocation8 + $0xf0] sm:$0xff]  }
 0x588   : > { %v10211_v50 = vpop.f32.mrf.mxu0  ;;  %5440 = vxpose.xlu0.c.b16.cont [7/8] %v7805_v12, 128  ;;  %v5410_v12 = vpop.trf.xlu0 }
 0x589   : > { %v4793_v42 = vmax.f32 %v4789_v61, %v10211_v50  ;;  %v11172_v61 = vld [vmem:[#allocation52_spill] sm:$0xff]  ;;  %5482 = vmatprep.mubr.bf16.mxu1 %v5410_v12  ;;  %v11174_v12 = vld [vmem:[#allocation15_spill] sm:$0xff] }
 0x58a   : > { %v10213_v29 = vpop.f32.mrf.mxu0  ;;  %vm11173_vm13 = vcmp.lt.s32.totalorder %v11172_v61, 300 }
 0x58b   : > { %v4798_v6 = vmax.f32 %v4794_v27, %v10213_v29 }
 0x58c   : > { %v10215_v57 = vpop.f32.mrf.mxu0  ;;  %5441 = vxpose.xlu0.c.b16.end [8/8] %v7807_v46, 128 }
 0x58d   : > { %v4796_v9 = vmax.f32 %v4792_v40, %v10215_v57  ;;  %v7808_v40 = vld [vmem:[#allocation8 + $0xb8] sm:$0xff]  }
 0x58e   : > { %v10217_v32 = vpop.f32.mrf.mxu0  ;;  %5425 = vxpose.xlu1.c.b16.end [8/8] %v7808_v40, 128 }
 0x58f   : > { %v4799_v24 = vmax.f32 %v4795_v54, %v10217_v32 }
 0x590   : > { %v10219_v37 = vpop.f32.mrf.mxu0 }
 0x591   : > { %v4797_v44 = vmax.f32 %v4793_v42, %v10219_v37 }
 0x592   : > { %v10221_v13 = vpop.f32.mrf.mxu0 }
 0x593   : > { %v4802_v14 = vmax.f32 %v4798_v6, %v10221_v13 }
 0x594   : > { %v10223_v60 = vpop.f32.mrf.mxu0 }
 0x595   : > { %v4800_v34 = vmax.f32 %v4796_v9, %v10223_v60 }
 0x596   : > { %v10227_v49 = vpop.f32.mrf.mxu0 }
 0x597   : > { %v4803_v25 = vmax.f32 %v4799_v24, %v10227_v49 }
 0x598   : > { %v10230_v1 = vpop.f32.mrf.mxu0 }
 0x599   : > { %v4801_v24 = vmax.f32 %v4797_v44, %v10230_v1 }
 0x59a   : > { %v10235_v43 = vpop.f32.mrf.mxu0 }
 0x59b   : > { %v4806_v58 = vmax.f32 %v4802_v14, %v10235_v43 }
 0x59c   : > { %v10239_v8 = vpop.f32.mrf.mxu0 }
 0x59d   : > { %v4804_v27 = vmax.f32 %v4800_v34, %v10239_v8 }
 0x59e   : > { %v10245_v16 = vpop.f32.mrf.mxu0 }
 0x59f   : > { %v4807_v39 = vmax.f32 %v4803_v25, %v10245_v16 }
 0x5a0   : > { %v10250_v55 = vpop.f32.mrf.mxu0 }
 0x5a1   : > { %v4805_v25 = vmax.f32 %v4801_v24, %v10250_v55 }
 0x5a2   : > { %v10255_v52 = vpop.f32.mrf.mxu0 }
 0x5a3   : > { %v4810_v2 = vmax.f32 %v4806_v58, %v10255_v52 }
 0x5a4   : > { %v10262_v51 = vpop.f32.mrf.mxu0 }
 0x5a5   : > { %v4814_v47 = vmax.f32 %v4810_v2, -1e+30  ;;  %v4808_v54 = vmax.f32 %v4804_v27, %v10262_v51 }
 0x5a6   : > { %v10267_v23 = vpop.f32.mrf.mxu0 }
 0x5a7   : > { %v4811_v7 = vmax.f32 %v4807_v39, %v10267_v23  ;;  %v4818_v3 = vmax.f32 %v4814_v47, -1e+30 }
 0x5a8   : > { %v10272_v33 = vpop.f32.mrf.mxu0 }
 0x5a9   : > { %v4815_v56 = vmax.f32 %v4811_v7, -1e+30  ;;  %v4822_v2 = vmax.f32 %v4818_v3, -1e+30  ;;  %v4809_v28 = vmax.f32 %v4805_v25, %v10272_v33 }
 0x5aa   : > { %v7496_v6 = vpop.f32.mrf.mxu0 }
 0x5ab   : > { %v4819_v14 = vmax.f32 %v4815_v56, -1e+30  ;;  %v4826_v47 = vmax.f32 %v4822_v2, -1e+30 }
 0x5ac   : > { %v10278_v63 = vpop.f32.mrf.mxu0 }
 0x5ad   : > { %v4823_v58 = vmax.f32 %v4819_v14, -1e+30  ;;  %v4812_v36 = vmax.f32 %v4808_v54, %v10278_v63  ;;  %v4830_v6 = vmax.f32 %v4826_v47, -1e+30 }
 0x5ae   : > { %v7497_v26 = vpop.f32.mrf.mxu0 }
 0x5af   : > { %v4816_v0 = vmax.f32 %v4812_v36, -1e+30  ;;  %v4827_v39 = vmax.f32 %v4823_v58, -1e+30  ;;  %v4834_v14 = vmax.f32 %v4830_v6, -1e+30 }
 0x5b0   : > { %v4479_v9 = vpop.f32.mrf.mxu0  ;;  %v10297_v6 = vsub.s32 0, %v11174_v12 }
 0x5b1   : > { %v4820_v41 = vmax.f32 %v4816_v0, -1e+30  ;;  %v10286_v34 = vsel %vm11173_vm13, %v4479_v9, -1e+30  ;;  %v4831_v27 = vmax.f32 %v4827_v39, -1e+30 }
 0x5b2   : > { %v4813_v42 = vmax.f32 %v4809_v28, %v10286_v34  ;;  %v4838_v26 = vmax.f32 %v4834_v14, -1e+30 }
 0x5b3   : > { %v4824_v7 = vmax.f32 %v4820_v41, -1e+30  ;;  %v4835_v3 = vmax.f32 %v4831_v27, -1e+30 }
 0x5b4   : > { %v4817_v56 = vmax.f32 %v4813_v42, -1e+30 }
 0x5b5   : > { %v4828_v17 = vmax.f32 %v4824_v7, -1e+30  ;;  %v4839_v36 = vmax.f32 %v4835_v3, -1e+30  ;;  %v10289_v7 = vld [vmem:[#allocation4] sm:$0x1] }
 0x5b6   : > { %v4821_v44 = vmax.f32 %v4817_v56, -1e+30 }
 0x5b7   : > { %v4832_v24 = vmax.f32 %v4828_v17, -1e+30  ;;  %v4841_v2 = vmax.f32 %v4838_v26, %v4839_v36 }
 0x5b8   : > { %v4825_v54 = vmax.f32 %v4821_v44, -1e+30 }
 0x5b9   : > { %v4836_v40 = vmax.f32 %v4832_v24, -1e+30 }
 0x5ba   : > { %v4829_v58 = vmax.f32 %v4825_v54, -1e+30 }
 0x5bc   : > { %v4833_v46 = vmax.f32 %v4829_v58, -1e+30 }
 0x5be   : > { %v4837_v25 = vmax.f32 %v4833_v46, -1e+30 }
 0x5c0   : > { %v4840_v0 = vmax.f32 %v4836_v40, %v4837_v25 }
 0x5c2   : > { %v4842_v9 = vmax.f32 %v4840_v0, %v4841_v2 }
 0x5c4   : > { %v4843_v39 = vrot.slane %v4842_v9, 4 }
 0x5c6   : > { %v4844_v28 = vmax.f32 %v4842_v9, %v4843_v39 }
 0x5c8   : > { %v4845_v41 = vrot.slane %v4844_v28, 2 }
 0x5ca   : > { %v4846_v61 = vmax.f32 %v4844_v28, %v4845_v41 }
 0x5cc   : > { %v4847_v47 = vrot.slane %v4846_v61, 1 }
 0x5ce   : > { %v4848_v42 = vmax.f32 %v4846_v61, %v4847_v47 }
 0x5d0   : > { %v10292_v27 = vmax.f32 %v10289_v7, %v4848_v42 }
 0x5d2   : > { %v4850_v56 = vsub.f32 %v10289_v7, %v10292_v27  ;;  %5676 = vst [vmem:[#allocation4] sm:$0x1] %v10292_v27  ;;  %v10302_v17 = vrot.slane %v10292_v27, %v10297_v6 }
 0x5d4   : > { %v4859_v44 = vsub.f32 %v10175_v35, %v10302_v17  ;;  %v4860_v3 = vsub.f32 %v10179_v62, %v10302_v17  ;;  %v4861_v54 = vsub.f32 %v10173_v10, %v10302_v17  ;;  %v4862_v14 = vsub.f32 %v10177_v4, %v10302_v17 }
 0x5d5   : > { %v4892_v24 = vsub.f32 %v10272_v33, %v10302_v17  ;;  %v4893_v58 = vsub.f32 %v10255_v52, %v10302_v17  ;;  %v4894_v36 = vsub.f32 %v10267_v23, %v10302_v17  ;;  %v4895_v35 = vsub.f32 %v10278_v63, %v10302_v17 }
 0x5d6   : > { %v4896_v62 = vsub.f32 %v10286_v34, %v10302_v17  ;;  %v4923_v46 = vmul.f32 1.442695, %v4859_v44  ;;  %v4925_v10 = vmul.f32 1.442695, %v4860_v3  ;;  %v4863_v4 = vsub.f32 %v10183_v48, %v10302_v17 }
 0x5d7   : > { %v4927_v26 = vmul.f32 1.442695, %v4861_v54  ;;  %v4929_v40 = vmul.f32 1.442695, %v4862_v14  ;;  %v4864_v25 = vsub.f32 %v10187_v38, %v10302_v17  ;;  %v4865_v2 = vsub.f32 %v10181_v15, %v10302_v17 }
 0x5d8   : > { %7821 = vpow2.f32 %v4923_v46  ;;  %v4931_v0 = vmul.f32 1.442695, %v4863_v4  ;;  %v4866_v9 = vsub.f32 %v10185_v59, %v10302_v17  ;;  %v4867_v39 = vsub.f32 %v10191_v21, %v10302_v17 }
 0x5d9   : > { %7823 = vpow2.f32 %v4925_v10  ;;  %v4933_v48 = vmul.f32 1.442695, %v4864_v25  ;;  %v4868_v28 = vsub.f32 %v10195_v22, %v10302_v17  ;;  %v4869_v38 = vsub.f32 %v10189_v18, %v10302_v17 }
 0x5da   : > { %7825 = vpow2.f32 %v4927_v26  ;;  %v4935_v41 = vmul.f32 1.442695, %v4865_v2  ;;  %v4870_v15 = vsub.f32 %v10193_v30, %v10302_v17  ;;  %v4937_v61 = vmul.f32 1.442695, %v4866_v9 }
 0x5db   : > { %7827 = vpow2.f32 %v4929_v40  ;;  %v4871_v47 = vsub.f32 %v10199_v31, %v10302_v17  ;;  %v4939_v59 = vmul.f32 1.442695, %v4867_v39  ;;  %v4872_v21 = vsub.f32 %v10203_v11, %v10302_v17 }
 0x5dc   : > { %7829 = vpow2.f32 %v4931_v0  ;;  %v4941_v42 = vmul.f32 1.442695, %v4868_v28  ;;  %v4873_v22 = vsub.f32 %v10197_v19, %v10302_v17  ;;  %v4943_v18 = vmul.f32 1.442695, %v4869_v38 }
 0x5dd   : > { %7831 = vpow2.f32 %v4933_v48  ;;  %v4874_v12 = vsub.f32 %v10201_v20, %v10302_v17  ;;  %v4945_v30 = vmul.f32 1.442695, %v4870_v15  ;;  %v4875_v31 = vsub.f32 %v10207_v53, %v10302_v17 }
 0x5de   : > { %7833 = vpow2.f32 %v4935_v41  ;;  %v4947_v3 = vmul.f32 1.442695, %v4871_v47  ;;  %v4876_v11 = vsub.f32 %v10211_v50, %v10302_v17  ;;  %v4877_v19 = vsub.f32 %v10205_v45, %v10302_v17 }
 0x5df   : > { %7835 = vpow2.f32 %v4937_v61  ;;  %v4949_v14 = vmul.f32 1.442695, %v4872_v21  ;;  %v4951_v46 = vmul.f32 1.442695, %v4873_v22  ;;  %v4878_v50 = vsub.f32 %v10209_v5, %v10302_v17 }
 0x5e0   : > { %7837 = vpow2.f32 %v4939_v59  ;;  %v4879_v45 = vsub.f32 %v10215_v57, %v10302_v17  ;;  %v4953_v26 = vmul.f32 1.442695, %v4874_v12  ;;  %v4955_v40 = vmul.f32 1.442695, %v4875_v31 }
 0x5e1   : > { %7839 = vpow2.f32 %v4941_v42  ;;  %v4885_v0 = vsub.f32 %v10221_v13, %v10302_v17  ;;  %v4957_v9 = vmul.f32 1.442695, %v4876_v11  ;;  %v4886_v5 = vsub.f32 %v10227_v49, %v10302_v17 }
 0x5e2   : > { %7841 = vpow2.f32 %v4943_v18  ;;  %v4959_v39 = vmul.f32 1.442695, %v4877_v19  ;;  %v4887_v28 = vsub.f32 %v10239_v8, %v10302_v17  ;;  %v4961_v38 = vmul.f32 1.442695, %v4878_v50 }
 0x5e3   : > { %7843 = vpow2.f32 %v4945_v30  ;;  %v4888_v41 = vsub.f32 %v10250_v55, %v10302_v17  ;;  %v4963_v13 = vmul.f32 1.442695, %v4879_v45  ;;  %v4889_v49 = vsub.f32 %v10235_v43, %v10302_v17 }
 0x5e4   : > { %7845 = vpow2.f32 %v4947_v3  ;;  %v4975_v47 = vmul.f32 1.442695, %v4885_v0  ;;  %v4890_v59 = vsub.f32 %v10245_v16, %v10302_v17  ;;  %v4977_v8 = vmul.f32 1.442695, %v4886_v5 }
 0x5e5   : > { %v10346_v44 = vpop.eup %7821  ;;  %7847 = vpow2.f32 %v4949_v14  ;;  %v4891_v55 = vsub.f32 %v10262_v51, %v10302_v17  ;;  %v4979_v22 = vmul.f32 1.442695, %v4887_v28  ;;  %v4981_v43 = vmul.f32 1.442695, %v4888_v41 }
 0x5e6   : > { %v10350_v54 = vpop.eup %7823  ;;  %7849 = vpow2.f32 %v4951_v46  ;;  %v4983_v16 = vmul.f32 1.442695, %v4889_v49  ;;  %v4985_v3 = vmul.f32 1.442695, %v4890_v59  ;;  %v4989_v46 = vmul.f32 1.442695, %v4892_v24 }
 0x5e7   : > { %v10356_v20 = vpop.eup %7825  ;;  %v5053_v10 = vadd.f32 %v10350_v54, %v10346_v44  ;;  %v5162_v53 = vpack.c.bf16 %v10350_v54, %v10346_v44  ;;  %7851 = vpow2.f32 %v4953_v26  ;;  %v4987_v51 = vmul.f32 1.442695, %v4891_v55 }
 0x5e8   : > { %v10362_v4 = vpop.eup %7827  ;;  %7853 = vpow2.f32 %v4955_v40  ;;  %v4883_v45 = vsub.f32 %v10223_v60, %v10302_v17  ;;  %v4991_v26 = vmul.f32 1.442695, %v4893_v58  ;;  %v4993_v33 = vmul.f32 1.442695, %v4894_v36 }
 0x5e9   : > { %v5054_v25 = vadd.f32 %v10356_v20, %v5053_v10  ;;  %v5163_v2 = vpack.c.bf16 %v10362_v4, %v10356_v20  ;;  %v10376_v48 = vpop.eup %7829  ;;  %7855 = vpow2.f32 %v4957_v9  ;;  %v4995_v60 = vmul.f32 1.442695, %v4895_v35 }
 0x5ea   : > { %v10383_v61 = vpop.eup %7831  ;;  %7857 = vpow2.f32 %v4959_v39  ;;  %v4880_v58 = vsub.f32 %v10219_v37, %v10302_v17  ;;  %v4881_v9 = vsub.f32 %v10213_v29, %v10302_v17  ;;  %v4971_v5 = vmul.f32 1.442695, %v4883_v45 }
 0x5eb   : > { %v5055_v57 = vadd.f32 %v10362_v4, %v5054_v25  ;;  %v10390_v42 = vpop.eup %7833  ;;  %7859 = vpow2.f32 %v4961_v38  ;;  %v4884_v25 = vsub.f32 %v10230_v1, %v10302_v17  ;;  %v4997_v1 = vmul.f32 1.442695, %v4896_v62 }
 0x5ec   : > { %v10394_v18 = vpop.eup %7835  ;;  %7861 = vpow2.f32 %v4963_v13  ;;  %v4882_v35 = vsub.f32 %v10217_v32, %v10302_v17  ;;  %v4967_v38 = vmul.f32 1.442695, %v4881_v9 }
 0x5ed   : > { %v5056_v15 = vadd.f32 %v10376_v48, %v5055_v57  ;;  %v10397_v30 = vpop.eup %7837  ;;  %7863 = vpow2.f32 %v4975_v47  ;;  %v4973_v37 = vmul.f32 1.442695, %v4884_v25  ;;  %v4965_v57 = vmul.f32 1.442695, %v4880_v58 }
 0x5ee   : > { %v10399_v31 = vpop.eup %7839  ;;  %7865 = vpow2.f32 %v4977_v8  ;;  %v4969_v13 = vmul.f32 1.442695, %v4882_v35 }
 0x5ef   : > { %v5057_v21 = vadd.f32 %v10383_v61, %v5056_v15  ;;  %v10402_v19 = vpop.eup %7841  ;;  %7867 = vpow2.f32 %v4979_v22 }
 0x5f0   : > { %v10404_v14 = vpop.eup %7843  ;;  %7869 = vpow2.f32 %v4981_v43 }
 0x5f1   : > { %v5058_v12 = vadd.f32 %v10390_v42, %v5057_v21  ;;  %v10410_v50 = vpop.eup %7845  ;;  %7871 = vpow2.f32 %v4983_v16 }
 0x5f2   : > { %v10417_v40 = vpop.eup %7847  ;;  %7873 = vpow2.f32 %v4985_v3 }
 0x5f3   : > { %v5059_v11 = vadd.f32 %v10394_v18, %v5058_v12  ;;  %v7850_v0 = vpop.eup %7849  ;;  %7875 = vpow2.f32 %v4987_v51 }
 0x5f4   : > { %v7852_v52 = vpop.eup %7851  ;;  %7877 = vpow2.f32 %v4989_v46 }
 0x5f5   : > { %v5060_v10 = vadd.f32 %v10397_v30, %v5059_v11  ;;  %v10434_v36 = vpop.eup %7853  ;;  %7879 = vpow2.f32 %v4991_v26  ;;  %v5169_v43 = vpack.c.bf16 %v7852_v52, %v7850_v0 }
 0x5f6   : > { %v10438_v63 = vpop.eup %7855  ;;  %7881 = vpow2.f32 %v4993_v33 }
 0x5f7   : > { %v5061_v24 = vadd.f32 %v10399_v31, %v5060_v10  ;;  %v10443_v34 = vpop.eup %7857  ;;  %7883 = vpow2.f32 %v4995_v60 }
 0x5f8   : > { %v10445_v62 = vpop.eup %7859  ;;  %7885 = vpow2.f32 %v4997_v1 }
 0x5f9   : > { %v5062_v23 = vadd.f32 %v10402_v19, %v5061_v24  ;;  %v10448_v28 = vpop.eup %7861  ;;  %7887 = vpow2.f32 %v4971_v5 }
 0x5fa   : > { %v7864_v41 = vpop.eup %7863  ;;  %7889 = vpow2.f32 %v4973_v37  ;;  %v5167_v37 = vpack.c.bf16 %v10404_v14, %v10402_v19  ;;  %v5165_v19 = vpack.c.bf16 %v10394_v18, %v10390_v42  ;;  %v5170_v42 = vpack.c.bf16 %v10438_v63, %v10434_v36 }
 0x5fb   : > { %v5063_v39 = vadd.f32 %v10404_v14, %v5062_v23  ;;  %v7866_v15 = vpop.eup %7865  ;;  %7891 = vpow2.f32 %v4965_v57 }
 0x5fc   : > { %v10451_v49 = vpop.eup %7867  ;;  %7893 = vpow2.f32 %v4967_v38  ;;  %v5175_v1 = vpack.c.bf16 %v7866_v15, %v7864_v41  ;;  %v5166_v38 = vpack.c.bf16 %v10399_v31, %v10397_v30  ;;  %v5171_v30 = vpack.c.bf16 %v10445_v62, %v10443_v34 }
 0x5fd   : > { %v5064_v29 = vadd.f32 %v10410_v50, %v5063_v39  ;;  %v7870_v59 = vpop.eup %7869  ;;  %7895 = vpow2.f32 %v4969_v13 }
 0x5fe   : > { %v10453_v8 = vpop.eup %7871  ;;  %v5176_v55 = vpack.c.bf16 %v7870_v59, %v10451_v49 }
 0x5ff   : > { %v5065_v32 = vadd.f32 %v10417_v40, %v5064_v29  ;;  %v7874_v22 = vpop.eup %7873 }
 0x600   : > { %v10456_v12 = vpop.eup %7875  ;;  %v5177_v3 = vpack.c.bf16 %v7874_v22, %v10453_v8 }
 0x601   : > { %v5066_v47 = vadd.f32 %v7850_v0, %v5065_v32  ;;  %v10460_v11 = vpop.eup %7877  ;;  %v5168_v0 = vpack.c.bf16 %v10417_v40, %v10410_v50 }
 0x602   : > { %v10462_v51 = vpop.eup %7879  ;;  %7162 = vmatprep.subr.bf16.mxu1 %v5177_v3  ;;  %v5178_v10 = vpack.c.bf16 %v10460_v11, %v10456_v12 }
 0x603   : > { %v5067_v21 = vadd.f32 %v7852_v52, %v5066_v47  ;;  %v10467_v45 = vpop.eup %7881  ;;  %7163 = vmatpush3.bf16.msra.mxu1 %v5169_v43  ;;  %v4897_v52 = vsub.f32 -1e+30, %v10302_v17  ;;  %v5164_v43 = vpack.c.bf16 %v10383_v61, %v10376_v48 }
 0x604   : > { %v10469_v26 = vpop.eup %7883  ;;  %7164 = vmatprep.subr.bf16.mxu1 %v5176_v55  ;;  %v5179_v33 = vpack.c.bf16 %v10467_v45, %v10462_v51 }
 0x605   : > { %v5068_v16 = vadd.f32 %v10434_v36, %v5067_v21  ;;  %v10474_v24 = vpop.eup %7885  ;;  %v4999_v50 = vmul.f32 1.442695, %v4897_v52 }
 0x606   : > { %v7888_v60 = vpop.eup %7887  ;;  %v5180_v23 = vpack.c.bf16 %v10474_v24, %v10469_v26 }
 0x607   : > { %v5069_v46 = vadd.f32 %v10438_v63, %v5068_v16  ;;  %v7890_v9 = vpop.eup %7889  ;;  %7165 = vmatpush3.bf16.msra.mxu1 %v5168_v0  ;;  %7897 = vpow2.f32 %v4999_v50  ;;  %v5411_v63 = vpop.trf.xlu0 }
 0x608   : > { %7166 = vmatprep.subr.bf16.mxu1 %v5175_v1  ;;  %v7892_v35 = vpop.eup %7891  ;;  %v5174_v57 = vpack.c.bf16 %v7890_v9, %v7888_v60 }
 0x609   : > { %v5070_v25 = vadd.f32 %v10443_v34, %v5069_v46  ;;  %v7894_v39 = vpop.eup %7893  ;;  %v5172_v21 = vpack.c.bf16 %v7892_v35, %v10448_v28 }
 0x60a   : > { %v7896_v17 = vpop.eup %7895 }
 0x60b   : > { %v5071_v58 = vadd.f32 %v10445_v62, %v5070_v25  ;;  %7167 = vmatpush3.bf16.msra.mxu1 %v5167_v37  ;;  %v5173_v32 = vpack.c.bf16 %v7896_v17, %v7894_v39  ;;  %v5394_v62 = vpop.trf.xlu1  ;;  %v5412_v54 = vpop.trf.xlu0 }
 0x60c   : > { %7168 = vmatprep.subr.bf16.mxu1 %v5174_v57 }
 0x60d   : > { %v5072_v5 = vadd.f32 %v10448_v28, %v5071_v58 }
 0x60f   : > { %v5073_v40 = vadd.f32 %v7892_v35, %v5072_v5  ;;  %7169 = vmatpush3.bf16.msra.mxu1 %v5166_v38 }
 0x610   : > { %7170 = vmatprep.subr.bf16.mxu1 %v5173_v32 }
 0x611   : > { %v5074_v29 = vadd.f32 %v7894_v39, %v5073_v40 }
 0x613   : > { %v5075_v13 = vadd.f32 %v7896_v17, %v5074_v29  ;;  %7171 = vmatpush3.bf16.msra.mxu1 %v5165_v19  ;;  %v4851_v29 = vmul.f32 1.442695, %v4850_v56 }
 0x614   : > { %7172 = vmatprep.subr.bf16.mxu1 %v5172_v21  ;;  %v10497_v18 = vpop.eup %7897 }
 0x615   : > { %v5076_v47 = vadd.f32 %v7888_v60, %v5075_v13  ;;  %v5181_v34 = vpack.c.bf16 %v10497_v18, %v10497_v18  ;;  %7899 = vpow2.f32 %v4851_v29 }
 0x617   : > { %v5077_v14 = vadd.f32 %v7890_v9, %v5076_v47  ;;  %7173 = vmatpush3.bf16.msra.mxu1 %v5164_v43 }
 0x618   : > { %7174 = vmatprep.subr.bf16.mxu1 %v5171_v30 }
 0x619   : > { %v5078_v55 = vadd.f32 %v7864_v41, %v5077_v14 }
 0x61b   : > { %v5079_v16 = vadd.f32 %v7866_v15, %v5078_v55  ;;  %7175 = vmatpush3.bf16.msra.mxu1 %v5163_v2  ;;  %v5395_v2 = vpop.trf.xlu1 }
 0x61c   : > { %7176 = vmatprep.subr.bf16.mxu1 %v5170_v42 }
 0x61d   : > { %v5080_v31 = vadd.f32 %v10451_v49, %v5079_v16 }
 0x61f   : > { %v5081_v3 = vadd.f32 %v7870_v59, %v5080_v31  ;;  %7177 = vmatpush3.bf16.msra.mxu1 %v5162_v53  ;;  %v5396_v49 = vpop.trf.xlu1  ;;  %v5051_v31 = vld [vmem:[#allocation5] sm:$0x1] }
 0x620   : > { %7226 = vmatprep.subr.bf16.mxu1 %v5181_v34 }
 0x621   : > { %v5082_v48 = vadd.f32 %v10453_v8, %v5081_v3  ;;  %v5413_v8 = vpop.trf.xlu0 }
 0x622   : > { %5483 = vmatmul.mubr.bf16.vlgmr.msra.gmra.mxu1 %v5394_v62  ;;  %v10552_v30 = vpop.eup %7899 }
 0x623   : > { %v5083_v61 = vadd.f32 %v7874_v22, %v5082_v48  ;;  %7227 = vmatpush3.bf16.msra.mxu1 %v5181_v34  ;;  %5490 = vmatprep.mubr.bf16.mxu1 %v5411_v63  ;;  %v5397_v0 = vpop.trf.xlu1 }
 0x624   : > { %7228 = vmatprep.subr.bf16.mxu1 %v5181_v34 }
 0x625   : > { %v5084_v36 = vadd.f32 %v10456_v12, %v5083_v61  ;;  %v5414_v52 = vpop.trf.xlu0  ;;  %v5052_v61 = vmul.f32 %v10552_v30, %v5051_v31 }
 0x627   : > { %v5085_v28 = vadd.f32 %v10460_v11, %v5084_v36  ;;  %7229 = vmatpush3.bf16.msra.mxu1 %v5181_v34 }
 0x628   : > { %7230 = vmatprep.subr.bf16.mxu1 %v5181_v34 }
 0x629   : > { %v5086_v20 = vadd.f32 %v10462_v51, %v5085_v28 }
 0x62a   : > { %5491 = vmatmul.mubr.bf16.gmra.mxu1 %v5395_v2 }
 0x62b   : > { %v5087_v4 = vadd.f32 %v10467_v45, %v5086_v20  ;;  %7231 = vmatpush3.bf16.msra.mxu1 %v5181_v34  ;;  %5498 = vmatprep.mubr.bf16.mxu1 %v5412_v54 }
 0x62c   : > { %7232 = vmatprep.subr.bf16.mxu1 %v5181_v34 }
 0x62d   : > { %v5088_v44 = vadd.f32 %v10469_v26, %v5087_v4  ;;  %v5398_v26 = vpop.trf.xlu1 }
 0x62f   : > { %v5089_v53 = vadd.f32 %v10474_v24, %v5088_v44  ;;  %7233 = vmatpush3.bf16.msra.mxu1 %v5181_v34 }
 0x630   : > { %7234 = vmatprep.subr.bf16.mxu1 %v5181_v34 }
 0x631   : > { %v5090_v41 = vadd.f32 %v10497_v18, %v5089_v53 }
 0x632   : > { %5499 = vmatmul.mubr.bf16.gmra.mxu1 %v5396_v49 }
 0x633   : > { %v5091_v15 = vadd.f32 %v10497_v18, %v5090_v41  ;;  %7235 = vmatpush3.bf16.msra.mxu1 %v5181_v34  ;;  %5506 = vmatprep.mubr.bf16.mxu1 %v5413_v8  ;;  %v7809_v41 = vld [vmem:[#allocation7 + $0xa0] sm:$0xff]   ;;  %v7812_v8 = vld [vmem:[#allocation7 + $0xb8] sm:$0xff]  }
 0x634   : > { %7236 = vmatprep.subr.bf16.mxu1 %v5181_v34  ;;  %7498 = vmatprep.mubr.bf16.mxu0 %v7809_v41 }
 0x635   : > { %v5092_v59 = vadd.f32 %v10497_v18, %v5091_v15  ;;  %v7810_v15 = vld [vmem:[#allocation7 + $0xa8] sm:$0xff]  }
 0x636   : > { %7499 = vmatmul.mubr.bf16.gmra.mxu0 %v7810_v15  ;;  %v5144_v15 = vrot.slane %v10552_v30, %v10297_v6  ;;  %v5723_v30 = vld [vmem:[%s10769_s7] sm:$0xff] }
 0x637   : > { %v5093_v22 = vadd.f32 %v10497_v18, %v5092_v59  ;;  %7237 = vmatpush3.bf16.msra.mxu1 %v5180_v23  ;;  %v5415_v23 = vpop.trf.xlu0  ;;  %v7811_v59 = vld [vmem:[#allocation7 + $0xb0] sm:$0xff]  }
 0x638   : > { %7238 = vmatprep.subr.bf16.mxu1 %v5181_v34  ;;  %7502 = vmatprep.mubr.bf16.mxu0 %v7811_v59 }
 0x639   : > { %v5094_v46 = vadd.f32 %v10497_v18, %v5093_v22  ;;  %v7813_v22 = vld [vmem:[#allocation7 + $0xc0] sm:$0xff]  }
 0x63a   : > { %5507 = vmatmul.mubr.bf16.gmra.mxu1 %v5397_v0  ;;  %v7816_v0 = vld [vmem:[#allocation7 + $0xd8] sm:$0xff]  }
 0x63b   : > { %v5095_v25 = vadd.f32 %v10497_v18, %v5094_v46  ;;  %7239 = vmatpush3.bf16.msra.mxu1 %v5179_v33  ;;  %5514 = vmatprep.mubr.bf16.mxu1 %v5414_v52  ;;  %v5399_v33 = vpop.trf.xlu1  ;;  %v5416_v37 = vpop.trf.xlu0  ;;  %v7814_v46 = vld [vmem:[#allocation7 + $0xc8] sm:$0xff]  }
 0x63c   : > { %7240 = vmatprep.subr.bf16.mxu1 %v5181_v34  ;;  %v7818_v52 = vld [vmem:[#allocation7 + $0xe8] sm:$0xff]  }
 0x63d   : > { %v5096_v60 = vadd.f32 %v10497_v18, %v5095_v25  ;;  %v7815_v25 = vld [vmem:[#allocation7 + $0xd0] sm:$0xff]  }
 0x63e   : > { %7503 = vmatmul.mubr.bf16.gmra.mxu0 %v7812_v8 }
 0x63f   : > { %v5097_v58 = vadd.f32 %v10497_v18, %v5096_v60  ;;  %7241 = vmatpush3.bf16.msra.mxu1 %v5178_v10  ;;  %v5400_v10 = vpop.trf.xlu1  ;;  %v5417_v40 = vpop.trf.xlu0  ;;  %7506 = vmatprep.mubr.bf16.mxu0 %v7813_v22  ;;  %v7817_v60 = vld [vmem:[#allocation7 + $0xe0] sm:$0xff]  }
 0x641   : > { %v5098_v1 = vadd.f32 %v10497_v18, %v5097_v58  ;;  %v7819_v58 = vld [vmem:[#allocation7 + $0xf0] sm:$0xff]  }
 0x642   : > { %5515 = vmatmul.mubr.bf16.gmra.mxu1 %v5398_v26 }
 0x643   : > { %v5099_v9 = vadd.f32 %v10497_v18, %v5098_v1  ;;  %5522 = vmatprep.mubr.bf16.mxu1 %v5415_v23  ;;  %v5401_v13 = vpop.trf.xlu1  ;;  %v5442_v47 = vpop.trf.xlu0  ;;  %v7820_v1 = vld [vmem:[#allocation7 + $0xf8] sm:$0xff]  }
 0x645   : > { %v5100_v24 = vadd.f32 %v10497_v18, %v5099_v9 }
 0x646   : > { %7507 = vmatmul.mubr.bf16.gmra.mxu0 %v7814_v46  ;;  %v10585_v46 = vmul.f32 0.0, %v5144_v15 }
 0x647   : > { %v5101_v5 = vadd.f32 %v10497_v18, %v5100_v24  ;;  %v5426_v55 = vpop.trf.xlu1  ;;  %v5443_v16 = vpop.trf.xlu0  ;;  %7510 = vmatprep.mubr.bf16.mxu0 %v7815_v25 }
 0x649   : > { %v5102_v51 = vadd.f32 %v10497_v18, %v5101_v5 }
 0x64a   : > { %5523 = vmatmul.mubr.bf16.gmra.mxu1 %v5399_v33 }
 0x64b   : > { %v5103_v45 = vadd.f32 %v10497_v18, %v5102_v51  ;;  %5530 = vmatprep.mubr.bf16.mxu1 %v5416_v37  ;;  %v5427_v3 = vpop.trf.xlu1  ;;  %v5444_v48 = vpop.trf.xlu0 }
 0x64d   : > { %v5104_v35 = vadd.f32 %v10497_v18, %v5103_v45 }
 0x64e   : > { %7511 = vmatmul.mubr.bf16.gmra.mxu0 %v7816_v0 }
 0x64f   : > { %v5105_v39 = vadd.f32 %v10497_v18, %v5104_v35  ;;  %v5428_v62 = vpop.trf.xlu1  ;;  %v5445_v36 = vpop.trf.xlu0  ;;  %7514 = vmatprep.mubr.bf16.mxu0 %v7817_v60 }
 0x651   : > { %v5106_v12 = vadd.f32 %v10497_v18, %v5105_v39 }
 0x652   : > { %5531 = vmatmul.mubr.bf16.gmra.mxu1 %v5400_v10 }
 0x653   : > { %v5107_v11 = vadd.f32 %v10497_v18, %v5106_v12  ;;  %5538 = vmatprep.mubr.bf16.mxu1 %v5417_v40  ;;  %v5429_v63 = vpop.trf.xlu1  ;;  %v5446_v28 = vpop.trf.xlu0 }
 0x655   : > { %v5108_v50 = vadd.f32 %v10497_v18, %v5107_v11 }
 0x656   : > { %7515 = vmatmul.mubr.bf16.gmra.mxu0 %v7818_v52 }
 0x657   : > { %v5109_v57 = vadd.f32 %v10497_v18, %v5108_v50  ;;  %v5430_v20 = vpop.trf.xlu1  ;;  %v5447_v4 = vpop.trf.xlu0  ;;  %7518 = vmatprep.mubr.bf16.mxu0 %v7819_v58 }
 0x659   : > { %v5110_v17 = vadd.f32 %v10497_v18, %v5109_v57 }
 0x65a   : > { %5539 = vmatmul.mubr.bf16.gmra.mxu1 %v5401_v13 }
 0x65b   : > { %v5111_v38 = vadd.f32 %v10497_v18, %v5110_v17  ;;  %5579 = vmatprep.mubr.bf16.mxu1 %v5442_v47  ;;  %v5431_v2 = vpop.trf.xlu1  ;;  %v5448_v44 = vpop.trf.xlu0 }
 0x65d   : > { %v5112_v32 = vadd.f32 %v10497_v18, %v5111_v38 }
 0x65e   : > { %7519 = vmatmul.mubr.bf16.gmra.mxu0 %v7820_v1 }
 0x65f   : > { %v5113_v19 = vadd.f32 %v10497_v18, %v5112_v32  ;;  %v5432_v54 = vpop.trf.xlu1  ;;  %v5449_v53 = vpop.trf.xlu0 }
 0x661   : > { %v5114_v14 = vadd.f32 %v10497_v18, %v5113_v19 }
 0x662   : > { %5580 = vmatmul.mubr.bf16.vlgmr.msra.gmra.mxu1 %v5426_v55 }
 0x663   : > { %v5115_v21 = vadd.f32 %v10497_v18, %v5114_v14  ;;  %5587 = vmatprep.mubr.bf16.mxu1 %v5443_v16  ;;  %v5433_v49 = vpop.trf.xlu1 }
 0x665   : > { %v5116_v43 = vrot.slane %v5115_v21, 4 }
 0x667   : > { %v5117_v7 = vadd.f32 %v5116_v43, %v5115_v21 }
 0x669   : > { %v5118_v27 = vrot.slane %v5117_v7, 2 }
 0x66a   : > { %5588 = vmatmul.mubr.bf16.gmra.mxu1 %v5427_v3 }
 0x66b   : > { %v5119_v56 = vadd.f32 %v5118_v27, %v5117_v7  ;;  %5595 = vmatprep.mubr.bf16.mxu1 %v5444_v48 }
 0x66d   : > { %v5120_v42 = vrot.slane %v5119_v56, 1 }
 0x66f   : > { %v5121_v34 = vadd.f32 %v5120_v42, %v5119_v56 }
 0x671   : > { %v5122_v18 = vadd.f32 %v5121_v34, %v5052_v61 }
 0x672   : > { %5596 = vmatmul.mubr.bf16.gmra.mxu1 %v5428_v62 }
 0x673   : > { %5123 = vst [vmem:[#allocation5] sm:$0x1] %v5122_v18  ;;  %5603 = vmatprep.mubr.bf16.mxu1 %v5445_v36 }
 0x67a   : > { %5604 = vmatmul.mubr.bf16.gmra.mxu1 %v5429_v63  ;;  %v5696_v36 = vld [vmem:[#allocation5] sm:$0x1] }
 0x67b   : > { %5611 = vmatprep.mubr.bf16.mxu1 %v5446_v28  ;;  %7901 = vrcp.f32 %v5696_v36  ;;  %v6391_v36 = vld [vmem:[%s10769_s7 + $0x98] sm:$0xff] }
 0x682   : > { %5612 = vmatmul.mubr.bf16.gmra.mxu1 %v5430_v20 }
 0x683   : > { %5619 = vmatprep.mubr.bf16.mxu1 %v5447_v4 }
 0x688   : > { %v7902_v22 = vpop.eup %7901 }
 0x689   : > { %v10589_v58 = vrot.slane %v7902_v22, %v10297_v6  ;;  %v5724_v6 = vld [vmem:[%s10769_s7 + $0x8] sm:$0xff]  ;;  %v6392_v22 = vld [vmem:[%s10769_s7 + $0xa0] sm:$0xff] }
 0x68a   : > { %5620 = vmatmul.mubr.bf16.gmra.mxu1 %v5431_v2 }
 0x68b   : > { %5627 = vmatprep.mubr.bf16.mxu1 %v5448_v44 }
 0x692   : > { %5628 = vmatmul.mubr.bf16.gmra.mxu1 %v5432_v54 }
 0x693   : > { %5635 = vmatprep.mubr.bf16.mxu1 %v5449_v53 }
 0x69a   : > { %5636 = vmatmul.mubr.bf16.gmra.mxu1 %v5433_v49 }
 0x6e2   : > { %v7178_v9 = vpop.f32.mrf.mxu1 }
 0x6e4   : > { %v7179_v26 = vpop.f32.mrf.mxu1 }
 0x6e5   : > { %v7180_v24 = vadd.f32 %v7179_v26, %v7178_v9 }
 0x6e6   : > { %v7181_v23 = vpop.f32.mrf.mxu1 }
 0x6e8   : > { %v7182_v5 = vpop.f32.mrf.mxu1 }
 0x6e9   : > { %v7183_v51 = vadd.f32 %v7182_v5, %v7181_v23 }
 0x6ea   : > { %v7184_v45 = vpop.f32.mrf.mxu1 }
 0x6ec   : > { %v7185_v33 = vpop.f32.mrf.mxu1 }
 0x6ed   : > { %v10555_v35 = vadd.f32 %v7185_v33, %v7184_v45 }
 0x6ee   : > { %v7187_v37 = vpop.f32.mrf.mxu1 }
 0x6f0   : > { %v7188_v39 = vpop.f32.mrf.mxu1 }
 0x6f1   : > { %v10557_v12 = vadd.f32 %v7188_v39, %v7187_v37 }
 0x6f2   : > { %v7190_v11 = vpop.f32.mrf.mxu1 }
 0x6f4   : > { %v7191_v10 = vpop.f32.mrf.mxu1 }
 0x6f5   : > { %v10559_v50 = vadd.f32 %v7191_v10, %v7190_v11 }
 0x6f6   : > { %v7193_v40 = vpop.f32.mrf.mxu1 }
 0x6f8   : > { %v7194_v57 = vpop.f32.mrf.mxu1 }
 0x6f9   : > { %v10561_v17 = vadd.f32 %v7194_v57, %v7193_v40 }
 0x6fa   : > { %v7196_v29 = vpop.f32.mrf.mxu1 }
 0x6fc   : > { %v7197_v38 = vpop.f32.mrf.mxu1 }
 0x6fd   : > { %v10563_v13 = vadd.f32 %v7197_v38, %v7196_v29 }
 0x6fe   : > { %v7199_v32 = vpop.f32.mrf.mxu1 }
 0x700   : > { %v7200_v47 = vpop.f32.mrf.mxu1 }
 0x701   : > { %v10565_v19 = vadd.f32 %v7200_v47, %v7199_v32  ;;  %v5725_v47 = vld [vmem:[%s10769_s7 + $0x10] sm:$0xff] }
 0x702   : > { %v7202_v14 = vpop.f32.mrf.mxu1 }
 0x704   : > { %v7203_v21 = vpop.f32.mrf.mxu1 }
 0x705   : > { %v10567_v55 = vadd.f32 %v7203_v21, %v7202_v14  ;;  %v6390_v14 = vld [vmem:[%s10769_s7 + $0x90] sm:$0xff] }
 0x706   : > { %v7205_v43 = vpop.f32.mrf.mxu1 }
 0x708   : > { %v7206_v16 = vpop.f32.mrf.mxu1 }
 0x709   : > { %v10569_v7 = vadd.f32 %v7206_v16, %v7205_v43 }
 0x70a   : > { %v7208_v27 = vpop.f32.mrf.mxu1 }
 0x70c   : > { %v7209_v56 = vpop.f32.mrf.mxu1 }
 0x70d   : > { %v10571_v31 = vadd.f32 %v7209_v56, %v7208_v27 }
 0x70e   : > { %v7211_v3 = vpop.f32.mrf.mxu1 }
 0x710   : > { %v7212_v42 = vpop.f32.mrf.mxu1 }
 0x711   : > { %v10573_v48 = vadd.f32 %v7212_v42, %v7211_v3 }
 0x712   : > { %v7214_v61 = vpop.f32.mrf.mxu1 }
 0x714   : > { %v7215_v34 = vpop.f32.mrf.mxu1 }
 0x715   : > { %v10575_v18 = vadd.f32 %v7215_v34, %v7214_v61 }
 0x716   : > { %v7217_v62 = vpop.f32.mrf.mxu1 }
 0x718   : > { %v7218_v63 = vpop.f32.mrf.mxu1 }
 0x719   : > { %v10577_v28 = vadd.f32 %v7218_v63, %v7217_v62  ;;  %v5726_v62 = vld [vmem:[%s10769_s7 + $0x18] sm:$0xff] }
 0x71a   : > { %v7220_v20 = vpop.f32.mrf.mxu1 }
 0x71c   : > { %v7221_v4 = vpop.f32.mrf.mxu1 }
 0x71d   : > { %v10579_v2 = vadd.f32 %v7221_v4, %v7220_v20 }
 0x71e   : > { %v7223_v44 = vpop.f32.mrf.mxu1 }
 0x720   : > { %v7224_v54 = vpop.f32.mrf.mxu1 }
 0x721   : > { %v10581_v53 = vadd.f32 %v7224_v54, %v7223_v44 }
 0x722   : > { %v7242_v41 = vpop.f32.mrf.mxu1 }
 0x724   : > { %v7243_v49 = vpop.f32.mrf.mxu1 }
 0x725   : > { %v7244_v59 = vadd.f32 %v7243_v49, %v7242_v41 }
 0x726   : > { %v7245_v8 = vpop.f32.mrf.mxu1 }
 0x727   : > { %v5582_v25 = vadd.f32 %v7244_v59, %v7180_v24  ;;  %v6388_v24 = vld [vmem:[%s10769_s7 + $0x80] sm:$0xff] }
 0x728   : > { %v7246_v0 = vpop.f32.mrf.mxu1 }
 0x729   : > { %v5644_v60 = vadd.f32 %v5582_v25, %v10585_v46  ;;  %v7247_v52 = vadd.f32 %v7246_v0, %v7245_v8  ;;  %v5727_v8 = vld [vmem:[%s10769_s7 + $0x20] sm:$0xff] }
 0x72a   : > { %v7248_v1 = vpop.f32.mrf.mxu1 }
 0x72b   : > { %v5585_v9 = vadd.f32 %v7247_v52, %v7183_v51  ;;  %v5704_v26 = vmul.f32 %v10589_v58, %v5644_v60  ;;  %v6389_v51 = vld [vmem:[%s10769_s7 + $0x88] sm:$0xff] }
 0x72c   : > { %v7249_v23 = vpop.f32.mrf.mxu1 }
 0x72d   : > { %v5645_v5 = vadd.f32 %v5585_v9, %v10585_v46  ;;  %v7250_v45 = vadd.f32 %v7249_v23, %v7248_v1  ;;  %v5739_v11 = vmul.f32 %v5723_v30, %v5704_v26  ;;  %v5798_v10 = vmul.f32 %v6388_v24, %v5704_v26  ;;  %v5728_v24 = vld [vmem:[%s10769_s7 + $0x28] sm:$0xff] }
 0x72e   : > { %v7251_v33 = vpop.f32.mrf.mxu1 }
 0x72f   : > { %v5705_v37 = vmul.f32 %v10589_v58, %v5645_v5  ;;  %v5590_v39 = vadd.f32 %v7250_v45, %v10555_v35  ;;  %v6393_v5 = vld [vmem:[%s10769_s7 + $0xa8] sm:$0xff] }
 0x730   : > { %v7252_v40 = vpop.f32.mrf.mxu1 }
 0x731   : > { %v5740_v57 = vmul.f32 %v5724_v6, %v5705_v37  ;;  %v5799_v29 = vmul.f32 %v6389_v51, %v5705_v37  ;;  %v5646_v38 = vadd.f32 %v5590_v39, %v10585_v46  ;;  %v7253_v32 = vadd.f32 %v7252_v40, %v7251_v33 }
 0x732   : > { %v7254_v21 = vpop.f32.mrf.mxu1 }
 0x733   : > { %v5755_v43 = vadd.f32 %v5740_v57, %v5739_v11  ;;  %v5814_v16 = vadd.f32 %v5799_v29, %v5798_v10  ;;  %v5706_v35 = vmul.f32 %v10589_v58, %v5646_v38  ;;  %v5593_v27 = vadd.f32 %v7253_v32, %v10557_v12  ;;  %v5729_v57 = vld [vmem:[%s10769_s7 + $0x30] sm:$0xff] }
 0x734   : > { %v7255_v56 = vpop.f32.mrf.mxu1  ;;  %v6394_v29 = vld [vmem:[%s10769_s7 + $0xb0] sm:$0xff] }
 0x735   : > { %v5741_v3 = vmul.f32 %v5725_v47, %v5706_v35  ;;  %v5800_v42 = vmul.f32 %v6390_v14, %v5706_v35  ;;  %v5647_v61 = vadd.f32 %v5593_v27, %v10585_v46  ;;  %v7256_v34 = vadd.f32 %v7255_v56, %v7254_v21  ;;  %v5730_v56 = vld [vmem:[%s10769_s7 + $0x38] sm:$0xff] }
 0x736   : > { %v7257_v63 = vpop.f32.mrf.mxu1 }
 0x737   : > { %v5756_v20 = vadd.f32 %v5755_v43, %v5741_v3  ;;  %v5815_v4 = vadd.f32 %v5814_v16, %v5800_v42  ;;  %v5707_v44 = vmul.f32 %v10589_v58, %v5647_v61  ;;  %v5598_v12 = vadd.f32 %v7256_v34, %v10559_v50  ;;  %v6395_v3 = vld [vmem:[%s10769_s7 + $0xb8] sm:$0xff] }
 0x738   : > { %v7258_v54 = vpop.f32.mrf.mxu1 }
 0x739   : > { %v5742_v41 = vmul.f32 %v5726_v62, %v5707_v44  ;;  %v5801_v15 = vmul.f32 %v6391_v36, %v5707_v44  ;;  %v5648_v49 = vadd.f32 %v5598_v12, %v10585_v46  ;;  %v7259_v59 = vadd.f32 %v7258_v54, %v7257_v63  ;;  %v5731_v12 = vld [vmem:[%s10769_s7 + $0x40] sm:$0xff] }
 0x73a   : > { %v7260_v25 = vpop.f32.mrf.mxu1  ;;  %v6396_v54 = vld [vmem:[%s10769_s7 + $0xc0] sm:$0xff] }
 0x73b   : > { %v5757_v0 = vadd.f32 %v5756_v20, %v5742_v41  ;;  %v5816_v60 = vadd.f32 %v5815_v4, %v5801_v15  ;;  %v5708_v52 = vmul.f32 %v10589_v58, %v5648_v49  ;;  %v5601_v50 = vadd.f32 %v7259_v59, %v10561_v17 }
 0x73c   : > { %v7261_v1 = vpop.f32.mrf.mxu1 }
 0x73d   : > { %v5743_v9 = vmul.f32 %v5727_v8, %v5708_v52  ;;  %v5802_v26 = vmul.f32 %v6392_v22, %v5708_v52  ;;  %v5649_v23 = vadd.f32 %v5601_v50, %v10585_v46  ;;  %v7262_v30 = vadd.f32 %v7261_v1, %v7260_v25  ;;  %v5732_v52 = vld [vmem:[%s10769_s7 + $0x48] sm:$0xff] }
 0x73e   : > { %v7263_v45 = vpop.f32.mrf.mxu1  ;;  %v6397_v50 = vld [vmem:[%s10769_s7 + $0xc8] sm:$0xff] }
 0x73f   : > { %v5758_v6 = vadd.f32 %v5757_v0, %v5743_v9  ;;  %v5817_v51 = vadd.f32 %v5816_v60, %v5802_v26  ;;  %v5709_v33 = vmul.f32 %v10589_v58, %v5649_v23  ;;  %v5606_v17 = vadd.f32 %v7262_v30, %v10563_v13 }
 0x740   : > { %v7264_v37 = vpop.f32.mrf.mxu1 }
 0x741   : > { %v5744_v39 = vmul.f32 %v5728_v24, %v5709_v33  ;;  %v5803_v11 = vmul.f32 %v6393_v5, %v5709_v33  ;;  %v5650_v10 = vadd.f32 %v5606_v17, %v10585_v46  ;;  %v7265_v40 = vadd.f32 %v7264_v37, %v7263_v45  ;;  %v6398_v33 = vld [vmem:[%s10769_s7 + $0xd0] sm:$0xff] }
 0x742   : > { %v7266_v38 = vpop.f32.mrf.mxu1 }
 0x743   : > { %v5759_v32 = vadd.f32 %v5758_v6, %v5744_v39  ;;  %v5818_v47 = vadd.f32 %v5817_v51, %v5803_v11  ;;  %v5710_v14 = vmul.f32 %v10589_v58, %v5650_v10  ;;  %v5609_v13 = vadd.f32 %v7265_v40, %v10565_v19  ;;  %v5733_v51 = vld [vmem:[%s10769_s7 + $0x50] sm:$0xff] }
 0x744   : > { %v7267_v21 = vpop.f32.mrf.mxu1 }
 0x745   : > { %v5745_v43 = vmul.f32 %v5729_v57, %v5710_v14  ;;  %v5804_v16 = vmul.f32 %v6394_v29, %v5710_v14  ;;  %v5651_v35 = vadd.f32 %v5609_v13, %v10585_v46  ;;  %v7268_v27 = vadd.f32 %v7267_v21, %v7266_v38 }
 0x746   : > { %v7269_v42 = vpop.f32.mrf.mxu1 }
 0x747   : > { %v5760_v61 = vadd.f32 %v5759_v32, %v5745_v43  ;;  %v5819_v34 = vadd.f32 %v5818_v47, %v5804_v16  ;;  %v5711_v62 = vmul.f32 %v10589_v58, %v5651_v35  ;;  %v5614_v19 = vadd.f32 %v7268_v27, %v10567_v55  ;;  %v5734_v32 = vld [vmem:[%s10769_s7 + $0x58] sm:$0xff]  ;;  %v7500_v16 = vpop.f32.mrf.mxu0 }
 0x748   : > { %v7270_v36 = vpop.f32.mrf.mxu1  ;;  %v6399_v47 = vld [vmem:[%s10769_s7 + $0xd8] sm:$0xff] }
 0x749   : > { %v5746_v63 = vmul.f32 %v5730_v56, %v5711_v62  ;;  %v5805_v20 = vmul.f32 %v6395_v3, %v5711_v62  ;;  %v5652_v4 = vadd.f32 %v5614_v19, %v10585_v46  ;;  %v7271_v44 = vadd.f32 %v7270_v36, %v7269_v42  ;;  %v6400_v62 = vld [vmem:[%s10769_s7 + $0xe0] sm:$0xff] }
 0x74a   : > { %v7272_v41 = vpop.f32.mrf.mxu1 }
 0x74b   : > { %v5761_v15 = vadd.f32 %v5760_v61, %v5746_v63  ;;  %v5820_v49 = vadd.f32 %v5819_v34, %v5805_v20  ;;  %v5712_v59 = vmul.f32 %v10589_v58, %v5652_v4  ;;  %v5617_v55 = vadd.f32 %v7271_v44, %v10569_v7  ;;  %v4492_v61 = vpop.f32.mrf.mxu0  ;;  %v5735_v34 = vld [vmem:[%s10769_s7 + $0x60] sm:$0xff] }
 0x74c   : > { %v7273_v8 = vpop.f32.mrf.mxu1 }
 0x74d   : > { %v5747_v22 = vmul.f32 %v5731_v12, %v5712_v59  ;;  %v5806_v25 = vmul.f32 %v6396_v54, %v5712_v59  ;;  %v5653_v0 = vadd.f32 %v5617_v55, %v10585_v46  ;;  %v7274_v60 = vadd.f32 %v7273_v8, %v7272_v41  ;;  %v7501_v4 = vpop.f32.mrf.mxu0  ;;  %v5736_v59 = vld [vmem:[%s10769_s7 + $0x68] sm:$0xff] }
 0x74e   : > { %v7275_v1 = vpop.f32.mrf.mxu1  ;;  %v6401_v55 = vld [vmem:[%s10769_s7 + $0xe8] sm:$0xff] }
 0x74f   : > { %v5762_v9 = vadd.f32 %v5761_v15, %v5747_v22  ;;  %v5821_v26 = vadd.f32 %v5820_v49, %v5806_v25  ;;  %v5713_v23 = vmul.f32 %v10589_v58, %v5653_v0  ;;  %v5622_v7 = vadd.f32 %v7274_v60, %v10571_v31  ;;  %v4495_v49 = vpop.f32.mrf.mxu0 }
 0x750   : > { %v7276_v30 = vpop.f32.mrf.mxu1 }
 0x751   : > { %v5748_v24 = vmul.f32 %v5732_v52, %v5713_v23  ;;  %v5807_v5 = vmul.f32 %v6397_v50, %v5713_v23  ;;  %v5654_v45 = vadd.f32 %v5622_v7, %v10585_v46  ;;  %v7277_v6 = vadd.f32 %v7276_v30, %v7275_v1  ;;  %v7504_v60 = vpop.f32.mrf.mxu0  ;;  %v5737_v7 = vld [vmem:[%s10769_s7 + $0x70] sm:$0xff] }
 0x752   : > { %v7278_v17 = vpop.f32.mrf.mxu1  ;;  %v6402_v30 = vld [vmem:[%s10769_s7 + $0xf0] sm:$0xff] }
 0x753   : > { %v5763_v37 = vadd.f32 %v5762_v9, %v5748_v24  ;;  %v5822_v39 = vadd.f32 %v5821_v26, %v5807_v5  ;;  %v5714_v11 = vmul.f32 %v10589_v58, %v5654_v45  ;;  %v5625_v31 = vadd.f32 %v7277_v6, %v10573_v48  ;;  %v4508_v23 = vpop.f32.mrf.mxu0 }
 0x754   : > { %v7279_v10 = vpop.f32.mrf.mxu1 }
 0x755   : > { %v5749_v40 = vmul.f32 %v5733_v51, %v5714_v11  ;;  %v5808_v57 = vmul.f32 %v6398_v33, %v5714_v11  ;;  %v5655_v29 = vadd.f32 %v5625_v31, %v10585_v46  ;;  %v7280_v38 = vadd.f32 %v7279_v10, %v7278_v17  ;;  %v7505_v6 = vpop.f32.mrf.mxu0  ;;  %v6403_v11 = vld [vmem:[%s10769_s7 + $0xf8] sm:$0xff] }
 0x756   : > { %v7281_v14 = vpop.f32.mrf.mxu1 }
 0x757   : > { %v5764_v13 = vadd.f32 %v5763_v37, %v5749_v40  ;;  %v5823_v21 = vadd.f32 %v5822_v39, %v5808_v57  ;;  %v5715_v43 = vmul.f32 %v10589_v58, %v5655_v29  ;;  %v5630_v48 = vadd.f32 %v7280_v38, %v10575_v18  ;;  %v4511_v37 = vpop.f32.mrf.mxu0  ;;  %v5738_v39 = vld [vmem:[%s10769_s7 + $0x78] sm:$0xff] }
 0x758   : > { %v7282_v35 = vpop.f32.mrf.mxu1 }
 0x759   : > { %v5750_v27 = vmul.f32 %v5734_v32, %v5715_v43  ;;  %v5809_v56 = vmul.f32 %v6399_v47, %v5715_v43  ;;  %v5656_v3 = vadd.f32 %v5630_v48, %v10585_v46  ;;  %v7283_v42 = vadd.f32 %v7282_v35, %v7281_v14  ;;  %v7508_v32 = vpop.f32.mrf.mxu0 }
 0x75a   : > { %v7284_v19 = vpop.f32.mrf.mxu1 }
 0x75b   : > { %v5765_v36 = vadd.f32 %v5764_v13, %v5750_v27  ;;  %v5824_v63 = vadd.f32 %v5823_v21, %v5809_v56  ;;  %v5716_v18 = vmul.f32 %v10589_v58, %v5656_v3  ;;  %v5633_v20 = vadd.f32 %v7283_v42, %v10577_v28  ;;  %v4524_v14 = vpop.f32.mrf.mxu0 }
 0x75c   : > { %v7285_v44 = vpop.f32.mrf.mxu1 }
 0x75d   : > { %v5751_v12 = vmul.f32 %v5735_v34, %v5716_v18  ;;  %v5810_v54 = vmul.f32 %v6400_v62, %v5716_v18  ;;  %v5657_v41 = vadd.f32 %v5633_v20, %v10585_v46  ;;  %v7286_v15 = vadd.f32 %v7285_v44, %v7284_v19  ;;  %v7509_v43 = vpop.f32.mrf.mxu0 }
 0x75e   : > { %v7287_v8 = vpop.f32.mrf.mxu1 }
 0x75f   : > { %v5766_v22 = vadd.f32 %v5765_v36, %v5751_v12  ;;  %v5825_v25 = vadd.f32 %v5824_v63, %v5810_v54  ;;  %v5717_v28 = vmul.f32 %v10589_v58, %v5657_v41  ;;  %v5638_v0 = vadd.f32 %v7286_v15, %v10579_v2  ;;  %v4527_v35 = vpop.f32.mrf.mxu0 }
 0x760   : > { %v7288_v52 = vpop.f32.mrf.mxu1  ;;  %v11175_v15 = vlaneseq }
 0x761   : > { %v5752_v50 = vmul.f32 %v5736_v59, %v5717_v28  ;;  %v5811_v1 = vmul.f32 %v6401_v55, %v5717_v28  ;;  %v5658_v9 = vadd.f32 %v5638_v0, %v10585_v46  ;;  %v7289_v26 = vadd.f32 %v7288_v52, %v7287_v8  ;;  %v7512_v3 = vpop.f32.mrf.mxu0  ;;  %v5722_v59 = vld [vmem:[%s10770_s8] sm:$0x1] }
 0x762   : > { %v5721_v49 = vand.u32 127, %v11175_v15 }
 0x763   : > { %v5767_v24 = vadd.f32 %v5766_v22, %v5752_v50  ;;  %v5826_v5 = vadd.f32 %v5825_v25, %v5811_v1  ;;  %v5718_v2 = vmul.f32 %v10589_v58, %v5658_v9  ;;  %v5641_v45 = vadd.f32 %v7289_v26, %v10581_v53  ;;  %v4540_v61 = vpop.f32.mrf.mxu0 }
 0x764   : > { %vm5778_vm14 = vcmp.eq.s32.totalorder %v5721_v49, 0  ;;  %vm5837_vm1 = vcmp.eq.s32.totalorder %v5721_v49, 1 }
 0x765   : > { %v5753_v51 = vmul.f32 %v5737_v7, %v5718_v2  ;;  %v5812_v33 = vmul.f32 %v6402_v30, %v5718_v2  ;;  %v5659_v17 = vadd.f32 %v5641_v45, %v10585_v46  ;;  %v7513_v19 = vpop.f32.mrf.mxu0 }
 0x767   : > { %v5719_v31 = vmul.f32 %v10589_v58, %v5659_v17  ;;  %v5827_v10 = vadd.f32 %v5826_v5, %v5812_v33  ;;  %v5768_v40 = vadd.f32 %v5767_v24, %v5753_v51  ;;  %v4543_v36 = vpop.f32.mrf.mxu0 }
 0x769   : > { %v5754_v57 = vmul.f32 %v5738_v39, %v5719_v31  ;;  %v5813_v53 = vmul.f32 %v6403_v11, %v5719_v31  ;;  %v7516_v63 = vpop.f32.mrf.mxu0 }
 0x76b   : > { %v5828_v29 = vadd.f32 %v5827_v10, %v5813_v53  ;;  %v5769_v38 = vadd.f32 %v5768_v40, %v5754_v57  ;;  %v4556_v18 = vpop.f32.mrf.mxu0 }
 0x76d   : > { %v5829_v47 = vrot.slane %v5828_v29, 4  ;;  %v5770_v46 = vrot.slane %v5769_v38, 4  ;;  %v7517_v20 = vpop.f32.mrf.mxu0 }
 0x76f   : > { %v5830_v13 = vadd.f32 %v5829_v47, %v5828_v29  ;;  %v5771_v21 = vadd.f32 %v5770_v46, %v5769_v38  ;;  %v4559_v4 = vpop.f32.mrf.mxu0 }
 0x771   : > { %v5831_v48 = vrot.slane %v5830_v13, 2  ;;  %v5772_v16 = vrot.slane %v5771_v21, 2  ;;  %v7520_v44 = vpop.f32.mrf.mxu0 }
 0x773   : > { %v5832_v27 = vadd.f32 %v5831_v48, %v5830_v13  ;;  %v5773_v56 = vadd.f32 %v5772_v16, %v5771_v21  ;;  %v4572_v12 = vpop.f32.mrf.mxu0 }
 0x775   : > { %v5833_v58 = vrot.slane %v5832_v27, 1  ;;  %v5774_v42 = vrot.slane %v5773_v56, 1  ;;  %v7521_v54 = vpop.f32.mrf.mxu0 }
 0x777   : > { %v5834_v34 = vadd.f32 %v5833_v58, %v5832_v27  ;;  %v5775_v62 = vadd.f32 %v5774_v42, %v5773_v56  ;;  %v4575_v41 = vpop.f32.mrf.mxu0 }
 0x779   : > { %5835 = vadd.xlane.f32.xlu1 %v5834_v34  ;;  %5776 = vadd.xlane.f32.xlu0 %v5775_v62 }
 0x802   : > { %v5836_v55 = vpop.xlane.xlu1 %5835  ;;  %v5777_v8 = vpop.xlane.xlu0 %5776 }
 0x803   : > { %v5779_v22 = vsel %vm5778_vm14, %v5777_v8, 0.0  ;;  %v5838_v28 = vsel %vm5837_vm1, %v5836_v55, 0.0 }
 0x804   : > { %v5780_v25 = vadd.f32 %v5779_v22, %v5722_v59 }
 0x806   : > { %v5839_v0 = vadd.f32 %v5838_v28, %v5780_v25 }
 0x808   : > { %5840 = vst [vmem:[#allocation12] sm:$0x1] %v5839_v0 }
 0x809 PF: > { %p10738_p3 = scmp.eq.s32.totalorder %s5916_s10, 1  ;;  %s7993_s16 = smov [#allocation12]  }
 0x80a   : > { %s5848_s17 = sshll.u32 %s7993_s16, 4  ;;  %s5849_s17 = int_to_ptr.vmem [resolvable:$true] %s5848_s17 }
 0x80b   : > { %s7929_s18 = scalar_lea.vmem %s5849_s17, 16  ;;  %s7935_s19 = scalar_lea.vmem %s5849_s17, 32 }
 0x80c   : > { %p7930_p4 = scmp.ne.s32.totalorder %s5849_s17, %s7929_s18  ;;  %p7936_p7 = scmp.lt.s32.totalorder %s5849_s17, %s5849_s17 }
 0x80d   : > { %p7937_p8 = scmp.lt.s32.totalorder %s7935_s19, %s7929_s18 }
 0x80e   : > { %p7931_p5 = pnand %p7930_p4, %p10738_p3 }
 0x80f   : > { %p7938_p9 = por %p7937_p8, %p7936_p7 }
 0x810   : > { %p7932_p6 = pneg %p7931_p5 }
 0x812   : > { %p7939_p10 = pnand %p7938_p9, %p7932_p6 }
 0x814   : > { %7942 = shalt.err (!%p7939_p10)
}
 0x815   : > { %7527 = dma.vmem_to_hbm [thread:$0]  (%p10738_p3), %s5849_s17, 16, %s10771_s9, [#allocation11]  }
 0x816   : > { %7970 = dma.done.wait (%p10738_p3), [#allocation11], 16  }
 0x817   : > { %7972 = vsyncadd (%p10738_p3), [#allocation11], 4294967280 }
 0x818 PF: > { %s21_s30 = sadd.s32 1, %s7983_s30   ;;  %s11177_s3 = smov %s7979_s4 }
 0x819   : > { %p18_p11 = scmp.ge.s32.totalorder %s21_s30, 4   ;;  %s11178_s4 = smov %s11180_s11 }
 0x81b   :  { %20 = sbr.rel (!%p18_p11) target bundleno = 3 (0x3), region = 113 }
 0x820   :  { %5861 = vsyncpa [#allocation10], 1 }
 0x821   :  { %5863 = vsyncpa [#allocation10 + $0x1], 1 }
 0x822   :  { %5864 = vsyncpa [#allocation11], 1 }
 0x823   :  { %5866 = vsyncpa [#allocation11 + $0x1], 1 }

</bundles_post_ra>
